<compile_context>
chip_gen: v7x
topology: tpu7x:2x2x1
jax: 0.10.0
libtpu: 0.0.40
codegen_flags: <defaults>
</compile_context>

<pallas_src>
import jax
import jax.numpy as jnp
from jax.experimental import pallas as pl
from jax.experimental.pallas import tpu as pltpu

HIGHEST = jax.lax.Precision.HIGHEST


# --------------------------------------------------------------------------------------
# Kernel
# --------------------------------------------------------------------------------------
def critic_kernel(
    x_ref, h_ref,
    wih_ref, bih_ref, whh_ref, bhh_ref,                  # fused GRU params
    w1_ref, b1_ref, w2_ref, b2_ref,                      # shared trunk
    wh1_ref, bh1_ref, wh2_ref, bh2_ref, wh3_ref, bh3_ref,  # fused (movement|attack) heads
    wq_ref, bq_ref,                                      # fused final layer -> (B, 2)
    q_out_ref, hout_ref,
):
    x = x_ref[...]
    h = h_ref[...]
    H = h.shape[-1]

    def mm(a, w_ref, b_ref):
        return jnp.dot(a, w_ref[...], preferred_element_type=jnp.float32,
                       precision=HIGHEST) + b_ref[...]

    # ---- GRUCell, fused: 2 matmuls instead of 6 (PyTorch gate order r, z, n) ----
    gi = mm(x, wih_ref, bih_ref)   # (B, 3H)
    gh = mm(h, whh_ref, bhh_ref)   # (B, 3H)
    r = jax.nn.sigmoid(gi[:, 0:H] + gh[:, 0:H])
    z = jax.nn.sigmoid(gi[:, H:2 * H] + gh[:, H:2 * H])
    n = jnp.tanh(gi[:, 2 * H:3 * H] + r * gh[:, 2 * H:3 * H])
    h_new = (1.0 - z) * n + z * h
    hout_ref[...] = h_new

    def dense_relu(a, w_ref, b_ref):
        return jax.nn.relu(mm(a, w_ref, b_ref))

    # ---- shared trunk (dropout == identity in eval mode) ----
    t = dense_relu(h_new, w1_ref, b1_ref)
    t = dense_relu(t, w2_ref, b2_ref)

    # ---- movement + attack heads fused into 128-lane block-diagonal matmuls ----
    u = dense_relu(t, wh1_ref, bh1_ref)   # (B, 2*hidden): [movement | attack]
    u = dense_relu(u, wh2_ref, bh2_ref)
    u = dense_relu(u, wh3_ref, bh3_ref)
    q_out_ref[...] = jnp.tanh(mm(u, wq_ref, bq_ref))   # (B, 2): [:,0]=q_movement, [:,1]=q_attack


# --------------------------------------------------------------------------------------
# Host-side glue (matches the torch forward's onehot()/concat)
# --------------------------------------------------------------------------------------
def build_action_features(actions, move_size, attack_size):
    """actions (B, 2, A) int -> (A, B*(move+attack)); mirrors the torch loop (assumes A == B)."""
    move = actions[:, 0, :].T      # (A, B)
    attack = actions[:, 1, :].T    # (A, B)
    A = move.shape[0]
    oh_mov = jax.nn.one_hot(move, move_size, dtype=jnp.float32)
    oh_atk = jax.nn.one_hot(attack, attack_size, dtype=jnp.float32)
    return jnp.concatenate([oh_mov.reshape(A, -1), oh_atk.reshape(A, -1)], axis=-1)


def critic_forward(state, actions, h_in, fused_params, action_sizes, input_size_padded):
    B = state.shape[0]
    H = h_in.shape[-1]
    state_flat = state.reshape(B, -1).astype(jnp.float32)
    action_feat = build_action_features(actions, *action_sizes)
    x = jnp.concatenate([state_flat, action_feat], axis=-1).astype(jnp.float32)
    # lane-pad the input features to 128 (rows of the fused W_ih are zero-padded to match)
    x = jnp.pad(x, ((0, 0), (0, input_size_padded - x.shape[-1])))

    ins = (x, h_in.astype(jnp.float32)) + tuple(fused_params)

    hidden = fused_params[4].shape[1]          # w1: (H, hidden)
    flops = 2 * B * (input_size_padded * 3 * H + H * 3 * H       # GRU
                     + H * hidden + hidden * hidden              # trunk
                     + hidden * 2 * hidden + 2 * (2 * hidden) ** 2 + 2 * hidden * 2)  # heads
    transcendentals = B * (3 * H + 2)
    bytes_accessed = sum(int(a.size) * 4 for a in ins) + (B * 2 + B * H) * 4

    out_shape = (
        jax.ShapeDtypeStruct((B, 2), jnp.float32),          # [q_movement | q_attack]
        jax.ShapeDtypeStruct((B, H), jnp.float32),          # h_out
    )
    fn = pl.pallas_call(
        critic_kernel,
        out_shape=out_shape,
        in_specs=[pl.BlockSpec(memory_space=pltpu.MemorySpace.VMEM)] * len(ins),
        out_specs=tuple(pl.BlockSpec(memory_space=pltpu.MemorySpace.VMEM) for _ in range(2)),
        cost_estimate=pl.CostEstimate(flops=flops, transcendentals=transcendentals,
                                      bytes_accessed=bytes_accessed),
    )
    q, h_out = fn(*ins)
    return q[:, 0:1], q[:, 1:2], h_out


# --------------------------------------------------------------------------------------
# Parameter construction: raw PyTorch-layout params, then host-side fusion for the kernel
# --------------------------------------------------------------------------------------
def init_raw_params(key, input_size, rnn_hidden, hidden):
    H = rnn_hidden
    keys = iter(jax.random.split(key, 32))

    def unif(k, shape, fan_in):
        bound = 1.0 / jnp.sqrt(jnp.float32(fan_in))
        return jax.random.uniform(k, shape, jnp.float32, -bound, bound)

    raw = {
        "w_ih": unif(next(keys), (3 * H, input_size), H),   # PyTorch GRUCell layout
        "w_hh": unif(next(keys), (3 * H, H), H),
        "b_ih": unif(next(keys), (3 * H,), H),
        "b_hh": unif(next(keys), (3 * H,), H),
    }

    def linear(name, in_f, out_f):
        raw[name + "_w"] = unif(next(keys), (out_f, in_f), in_f)   # PyTorch (out, in)
        raw[name + "_b"] = unif(next(keys), (out_f,), in_f)

    linear("l1", rnn_hidden, hidden)
    linear("l2", hidden, hidden)
    for p in ("m", "a"):
        linear(p + "1", hidden, hidden)
        linear(p + "2", hidden, hidden)
        linear(p + "3", hidden, hidden)
        linear("q" + p, hidden, 1)
    return raw


def fuse_params(raw, input_size_padded, input_size, rnn_hidden, hidden):
    H, Hd = rnn_hidden, hidden

    # GRU: (3H, in) -> (in_pad, 3H), gate order (r, z, n) preserved; zero-pad extra rows.
    w_ih = jnp.zeros((input_size_padded, 3 * H), jnp.float32).at[:input_size].set(raw["w_ih"].T)
    w_hh = raw["w_hh"].T                       # (H, 3H)
    b_ih = raw["b_ih"].reshape(1, 3 * H)
    b_hh = raw["b_hh"].reshape(1, 3 * H)

    def wt(name):
        return raw[name + "_w"].T              # kernel layout (in, out)

    def bt(name):
        return raw[name + "_b"].reshape(1, -1)

    w1, b1 = wt("l1"), bt("l1")
    w2, b2 = wt("l2"), bt("l2")

    # Heads: layer1 concat (Hd, 2Hd); layers 2/3 block-diagonal (2Hd, 2Hd); final (2Hd, 2).
    wh1 = jnp.concatenate([wt("m1"), wt("a1")], axis=1)
    bh1 = jnp.concatenate([bt("m1"), bt("a1")], axis=1)

    def blockdiag(wm, wa):
        z = jnp.zeros((Hd, Hd), jnp.float32)
        return jnp.concatenate(
            [jnp.concatenate([wm, z], axis=1),
             jnp.concatenate([z, wa], axis=1)], axis=0)

    wh2 = blockdiag(wt("m2"), wt("a2"))
    bh2 = jnp.concatenate([bt("m2"), bt("a2")], axis=1)
    wh3 = blockdiag(wt("m3"), wt("a3"))
    bh3 = jnp.concatenate([bt("m3"), bt("a3")], axis=1)

    zcol = jnp.zeros((Hd, 1), jnp.float32)
    wq = jnp.concatenate(
        [jnp.concatenate([wt("qm"), zcol], axis=1),
         jnp.concatenate([zcol, wt("qa")], axis=1)], axis=0)     # (2Hd, 2)
    bq = jnp.concatenate([bt("qm"), bt("qa")], axis=1)           # (1, 2)

    return (w_ih, b_ih, w_hh, b_hh, w1, b1, w2, b2,
            wh1, bh1, wh2, bh2, wh3, bh3, wq, bq)


# --------------------------------------------------------------------------------------
# Pure-JAX reference (unfused weights) for verification
# --------------------------------------------------------------------------------------
def reference_forward(state, actions, h_in, raw, action_sizes):
    B = state.shape[0]
    x = jnp.concatenate(
        [state.reshape(B, -1), build_action_features(actions, *action_sizes)], axis=-1
    ).astype(jnp.float32)
    h = h_in.astype(jnp.float32)
    H = h.shape[-1]

    def dot(a, w):
        return jnp.dot(a, w, precision=HIGHEST)

    wir, wiz, win = (raw["w_ih"][i * H:(i + 1) * H].T for i in range(3))
    whr, whz, whn = (raw["w_hh"][i * H:(i + 1) * H].T for i in range(3))
    bir, biz, bin_ = (raw["b_ih"][i * H:(i + 1) * H] for i in range(3))
    bhr, bhz, bhn = (raw["b_hh"][i * H:(i + 1) * H] for i in range(3))

    r = jax.nn.sigmoid(dot(x, wir) + bir + dot(h, whr) + bhr)
    z = jax.nn.sigmoid(dot(x, wiz) + biz + dot(h, whz) + bhz)
    n = jnp.tanh(dot(x, win) + bin_ + r * (dot(h, whn) + bhn))
    h_out = (1.0 - z) * n + z * h

    def dense_relu(a, name):
        return jax.nn.relu(dot(a, raw[name + "_w"].T) + raw[name + "_b"])

    t = dense_relu(dense_relu(h_out, "l1"), "l2")
    xm = dense_relu(dense_relu(dense_relu(t, "m1"), "m2"), "m3")
    qm = jnp.tanh(dot(xm, raw["qm_w"].T) + raw["qm_b"])
    xa = dense_relu(dense_relu(dense_relu(t, "a1"), "a2"), "a3")
    qa = jnp.tanh(dot(xa, raw["qa_w"].T) + raw["qa_b"])
    return qm, qa, h_out


if __name__ == "__main__":
    B = 8                      # module default batch_size
    A = B                      # torch forward's concat implies #agents == batch
    action_sizes = (5, 3)      # (movement_action_size, attack_action_size)
    hidden = 64
    rnn_hidden = 64

    key = jax.random.PRNGKey(0)
    k1, k2, k3, k4 = jax.random.split(key, 4)
    state = jax.random.normal(k1, (B, 2, 5), jnp.float32)          # flattened -> (B, 10)
    actions = jnp.stack(
        [
            jax.random.randint(k2, (B, A), 0, action_sizes[0]),
            jax.random.randint(k3, (B, A), 0, action_sizes[1]),
        ],
        axis=1,
    )                                                              # (B, 2, A) int32
    h_in = jnp.zeros((B, rnn_hidden), jnp.float32)

    state_flat_dim = state.reshape(B, -1).shape[-1]
    input_size = state_flat_dim + A * (action_sizes[0] + action_sizes[1])   # 74
    input_size_padded = ((input_size + 127) // 128) * 128                    # 128

    raw = init_raw_params(k4, input_size, rnn_hidden, hidden)
    fused = fuse_params(raw, input_size_padded, input_size, rnn_hidden, hidden)

    q_movement, q_attack, h_out = critic_forward(
        state, actions, h_in, fused, action_sizes, input_size_padded)
    jax.block_until_ready((q_movement, q_attack, h_out))

    qm_ref, qa_ref, h_ref = reference_forward(state, actions, h_in, raw, action_sizes)
    assert q_movement.shape == (B, 1) and q_attack.shape == (B, 1) and h_out.shape == (B, rnn_hidden)
    assert jnp.allclose(q_movement, qm_ref, atol=1e-4, rtol=1e-4)
    assert jnp.allclose(q_attack, qa_ref, atol=1e-4, rtol=1e-4)
    assert jnp.allclose(h_out, h_ref, atol=1e-4, rtol=1e-4)

    print("KERNEL_OK")
</pallas_src>

<mosaic_0001>
module attributes {stable_mosaic.version = 11 : i64} {
  func.func @critic_kernel(%arg0: memref<8x128xf32, #tpu.memory_space<vmem>>, %arg1: memref<8x64xf32, #tpu.memory_space<vmem>>, %arg2: memref<128x192xf32, #tpu.memory_space<vmem>>, %arg3: memref<1x192xf32, #tpu.memory_space<vmem>>, %arg4: memref<64x192xf32, #tpu.memory_space<vmem>>, %arg5: memref<1x192xf32, #tpu.memory_space<vmem>>, %arg6: memref<64x64xf32, #tpu.memory_space<vmem>>, %arg7: memref<1x64xf32, #tpu.memory_space<vmem>>, %arg8: memref<64x64xf32, #tpu.memory_space<vmem>>, %arg9: memref<1x64xf32, #tpu.memory_space<vmem>>, %arg10: memref<64x128xf32, #tpu.memory_space<vmem>>, %arg11: memref<1x128xf32, #tpu.memory_space<vmem>>, %arg12: memref<128x128xf32, #tpu.memory_space<vmem>>, %arg13: memref<1x128xf32, #tpu.memory_space<vmem>>, %arg14: memref<128x128xf32, #tpu.memory_space<vmem>>, %arg15: memref<1x128xf32, #tpu.memory_space<vmem>>, %arg16: memref<128x2xf32, #tpu.memory_space<vmem>>, %arg17: memref<1x2xf32, #tpu.memory_space<vmem>>, %arg18: memref<8x2xf32, #tpu.memory_space<vmem>>, %arg19: memref<8x64xf32, #tpu.memory_space<vmem>>) attributes {dimension_semantics = [], scalar_prefetch = 0 : i64, scratch_operands = 0 : i64, tpu.core_type = #tpu.core_type<tc>} {
    %c0 = arith.constant 0 : index
    %c0_0 = arith.constant 0 : index
    %0 = vector.load %arg0[%c0, %c0_0] : memref<8x128xf32, #tpu.memory_space<vmem>>, vector<8x128xf32>
    %c0_1 = arith.constant 0 : index
    %c0_2 = arith.constant 0 : index
    %1 = vector.load %arg1[%c0_1, %c0_2] : memref<8x64xf32, #tpu.memory_space<vmem>>, vector<8x64xf32>
    %c0_3 = arith.constant 0 : index
    %c0_4 = arith.constant 0 : index
    %2 = vector.load %arg2[%c0_3, %c0_4] : memref<128x192xf32, #tpu.memory_space<vmem>>, vector<128x192xf32>
    %cst = arith.constant dense<0.000000e+00> : vector<8x192xf32>
    %3 = tpu.matmul %0, %2, %cst {dimension_numbers = #tpu.dot_dimension_numbers<[1], [0], [0], [1], [0, 0, 1, 1], [], []>, precision = #tpu.contract_precision<fp32>} : vector<8x128xf32>, vector<128x192xf32>, vector<8x192xf32> -> vector<8x192xf32>
    %c0_5 = arith.constant 0 : index
    %c0_6 = arith.constant 0 : index
    %4 = vector.load %arg3[%c0_5, %c0_6] : memref<1x192xf32, #tpu.memory_space<vmem>>, vector<1x192xf32>
    %5 = vector.broadcast %4 : vector<1x192xf32> to vector<8x192xf32>
    %6 = arith.addf %3, %5 : vector<8x192xf32>
    %c0_7 = arith.constant 0 : index
    %c0_8 = arith.constant 0 : index
    %7 = vector.load %arg4[%c0_7, %c0_8] : memref<64x192xf32, #tpu.memory_space<vmem>>, vector<64x192xf32>
    %cst_9 = arith.constant dense<0.000000e+00> : vector<8x192xf32>
    %8 = tpu.matmul %1, %7, %cst_9 {dimension_numbers = #tpu.dot_dimension_numbers<[1], [0], [0], [1], [0, 0, 1, 1], [], []>, precision = #tpu.contract_precision<fp32>} : vector<8x64xf32>, vector<64x192xf32>, vector<8x192xf32> -> vector<8x192xf32>
    %c0_10 = arith.constant 0 : index
    %c0_11 = arith.constant 0 : index
    %9 = vector.load %arg5[%c0_10, %c0_11] : memref<1x192xf32, #tpu.memory_space<vmem>>, vector<1x192xf32>
    %10 = vector.broadcast %9 : vector<1x192xf32> to vector<8x192xf32>
    %11 = arith.addf %8, %10 : vector<8x192xf32>
    %12 = vector.extract_strided_slice %6 {offsets = [0, 0], sizes = [8, 64], strides = [1, 1]} : vector<8x192xf32> to vector<8x64xf32>
    %13 = vector.extract_strided_slice %11 {offsets = [0, 0], sizes = [8, 64], strides = [1, 1]} : vector<8x192xf32> to vector<8x64xf32>
    %14 = arith.addf %12, %13 : vector<8x64xf32>
    %15 = arith.negf %14 : vector<8x64xf32>
    %16 = math.exp %15 : vector<8x64xf32>
    %cst_12 = arith.constant 1.000000e+00 : f32
    %17 = vector.broadcast %cst_12 : f32 to vector<8x64xf32>
    %18 = arith.addf %17, %16 : vector<8x64xf32>
    %19 = arith.divf %17, %18 : vector<8x64xf32>
    %20 = vector.extract_strided_slice %6 {offsets = [0, 64], sizes = [8, 64], strides = [1, 1]} : vector<8x192xf32> to vector<8x64xf32>
    %21 = vector.extract_strided_slice %11 {offsets = [0, 64], sizes = [8, 64], strides = [1, 1]} : vector<8x192xf32> to vector<8x64xf32>
    %22 = arith.addf %20, %21 : vector<8x64xf32>
    %23 = arith.negf %22 : vector<8x64xf32>
    %24 = math.exp %23 : vector<8x64xf32>
    %cst_13 = arith.constant 1.000000e+00 : f32
    %25 = vector.broadcast %cst_13 : f32 to vector<8x64xf32>
    %26 = arith.addf %25, %24 : vector<8x64xf32>
    %27 = arith.divf %25, %26 : vector<8x64xf32>
    %28 = vector.extract_strided_slice %6 {offsets = [0, 128], sizes = [8, 64], strides = [1, 1]} : vector<8x192xf32> to vector<8x64xf32>
    %29 = vector.extract_strided_slice %11 {offsets = [0, 128], sizes = [8, 64], strides = [1, 1]} : vector<8x192xf32> to vector<8x64xf32>
    %30 = arith.mulf %19, %29 : vector<8x64xf32>
    %31 = arith.addf %28, %30 : vector<8x64xf32>
    %32 = math.tanh %31 : vector<8x64xf32>
    %cst_14 = arith.constant 1.000000e+00 : f32
    %33 = vector.broadcast %cst_14 : f32 to vector<8x64xf32>
    %34 = arith.subf %33, %27 : vector<8x64xf32>
    %35 = arith.mulf %34, %32 : vector<8x64xf32>
    %36 = arith.mulf %27, %1 : vector<8x64xf32>
    %37 = arith.addf %35, %36 : vector<8x64xf32>
    %c0_15 = arith.constant 0 : index
    %c0_16 = arith.constant 0 : index
    %38 = vector.load %arg19[%c0_15, %c0_16] : memref<8x64xf32, #tpu.memory_space<vmem>>, vector<8x64xf32>
    tpu.vector_store %arg19[%c0_15, %c0_16], %37 {strides = array<i32>} : memref<8x64xf32, #tpu.memory_space<vmem>>, vector<8x64xf32>,
    %c0_17 = arith.constant 0 : index
    %c0_18 = arith.constant 0 : index
    %39 = vector.load %arg6[%c0_17, %c0_18] : memref<64x64xf32, #tpu.memory_space<vmem>>, vector<64x64xf32>
    %cst_19 = arith.constant dense<0.000000e+00> : vector<8x64xf32>
    %40 = tpu.matmul %37, %39, %cst_19 {dimension_numbers = #tpu.dot_dimension_numbers<[1], [0], [0], [1], [0, 0, 1, 1], [], []>, precision = #tpu.contract_precision<fp32>} : vector<8x64xf32>, vector<64x64xf32>, vector<8x64xf32> -> vector<8x64xf32>
    %c0_20 = arith.constant 0 : index
    %c0_21 = arith.constant 0 : index
    %41 = vector.load %arg7[%c0_20, %c0_21] : memref<1x64xf32, #tpu.memory_space<vmem>>, vector<1x64xf32>
    %42 = vector.broadcast %41 : vector<1x64xf32> to vector<8x64xf32>
    %43 = arith.addf %40, %42 : vector<8x64xf32>
    %cst_22 = arith.constant 0.000000e+00 : f32
    %44 = vector.broadcast %cst_22 : f32 to vector<8x64xf32>
    %45 = arith.maximumf %43, %44 : vector<8x64xf32>
    %c0_23 = arith.constant 0 : index
    %c0_24 = arith.constant 0 : index
    %46 = vector.load %arg8[%c0_23, %c0_24] : memref<64x64xf32, #tpu.memory_space<vmem>>, vector<64x64xf32>
    %cst_25 = arith.constant dense<0.000000e+00> : vector<8x64xf32>
    %47 = tpu.matmul %45, %46, %cst_25 {dimension_numbers = #tpu.dot_dimension_numbers<[1], [0], [0], [1], [0, 0, 1, 1], [], []>, precision = #tpu.contract_precision<fp32>} : vector<8x64xf32>, vector<64x64xf32>, vector<8x64xf32> -> vector<8x64xf32>
    %c0_26 = arith.constant 0 : index
    %c0_27 = arith.constant 0 : index
    %48 = vector.load %arg9[%c0_26, %c0_27] : memref<1x64xf32, #tpu.memory_space<vmem>>, vector<1x64xf32>
    %49 = vector.broadcast %48 : vector<1x64xf32> to vector<8x64xf32>
    %50 = arith.addf %47, %49 : vector<8x64xf32>
    %cst_28 = arith.constant 0.000000e+00 : f32
    %51 = vector.broadcast %cst_28 : f32 to vector<8x64xf32>
    %52 = arith.maximumf %50, %51 : vector<8x64xf32>
    %c0_29 = arith.constant 0 : index
    %c0_30 = arith.constant 0 : index
    %53 = vector.load %arg10[%c0_29, %c0_30] : memref<64x128xf32, #tpu.memory_space<vmem>>, vector<64x128xf32>
    %cst_31 = arith.constant dense<0.000000e+00> : vector<8x128xf32>
    %54 = tpu.matmul %52, %53, %cst_31 {dimension_numbers = #tpu.dot_dimension_numbers<[1], [0], [0], [1], [0, 0, 1, 1], [], []>, precision = #tpu.contract_precision<fp32>} : vector<8x64xf32>, vector<64x128xf32>, vector<8x128xf32> -> vector<8x128xf32>
    %c0_32 = arith.constant 0 : index
    %c0_33 = arith.constant 0 : index
    %55 = vector.load %arg11[%c0_32, %c0_33] : memref<1x128xf32, #tpu.memory_space<vmem>>, vector<1x128xf32>
    %56 = vector.broadcast %55 : vector<1x128xf32> to vector<8x128xf32>
    %57 = arith.addf %54, %56 : vector<8x128xf32>
    %cst_34 = arith.constant 0.000000e+00 : f32
    %58 = vector.broadcast %cst_34 : f32 to vector<8x128xf32>
    %59 = arith.maximumf %57, %58 : vector<8x128xf32>
    %c0_35 = arith.constant 0 : index
    %c0_36 = arith.constant 0 : index
    %60 = vector.load %arg12[%c0_35, %c0_36] : memref<128x128xf32, #tpu.memory_space<vmem>>, vector<128x128xf32>
    %cst_37 = arith.constant dense<0.000000e+00> : vector<8x128xf32>
    %61 = tpu.matmul %59, %60, %cst_37 {dimension_numbers = #tpu.dot_dimension_numbers<[1], [0], [0], [1], [0, 0, 1, 1], [], []>, precision = #tpu.contract_precision<fp32>} : vector<8x128xf32>, vector<128x128xf32>, vector<8x128xf32> -> vector<8x128xf32>
    %c0_38 = arith.constant 0 : index
    %c0_39 = arith.constant 0 : index
    %62 = vector.load %arg13[%c0_38, %c0_39] : memref<1x128xf32, #tpu.memory_space<vmem>>, vector<1x128xf32>
    %63 = vector.broadcast %62 : vector<1x128xf32> to vector<8x128xf32>
    %64 = arith.addf %61, %63 : vector<8x128xf32>
    %cst_40 = arith.constant 0.000000e+00 : f32
    %65 = vector.broadcast %cst_40 : f32 to vector<8x128xf32>
    %66 = arith.maximumf %64, %65 : vector<8x128xf32>
    %c0_41 = arith.constant 0 : index
    %c0_42 = arith.constant 0 : index
    %67 = vector.load %arg14[%c0_41, %c0_42] : memref<128x128xf32, #tpu.memory_space<vmem>>, vector<128x128xf32>
    %cst_43 = arith.constant dense<0.000000e+00> : vector<8x128xf32>
    %68 = tpu.matmul %66, %67, %cst_43 {dimension_numbers = #tpu.dot_dimension_numbers<[1], [0], [0], [1], [0, 0, 1, 1], [], []>, precision = #tpu.contract_precision<fp32>} : vector<8x128xf32>, vector<128x128xf32>, vector<8x128xf32> -> vector<8x128xf32>
    %c0_44 = arith.constant 0 : index
    %c0_45 = arith.constant 0 : index
    %69 = vector.load %arg15[%c0_44, %c0_45] : memref<1x128xf32, #tpu.memory_space<vmem>>, vector<1x128xf32>
    %70 = vector.broadcast %69 : vector<1x128xf32> to vector<8x128xf32>
    %71 = arith.addf %68, %70 : vector<8x128xf32>
    %cst_46 = arith.constant 0.000000e+00 : f32
    %72 = vector.broadcast %cst_46 : f32 to vector<8x128xf32>
    %73 = arith.maximumf %71, %72 : vector<8x128xf32>
    %c0_47 = arith.constant 0 : index
    %c0_48 = arith.constant 0 : index
    %74 = vector.load %arg16[%c0_47, %c0_48] : memref<128x2xf32, #tpu.memory_space<vmem>>, vector<128x2xf32>
    %cst_49 = arith.constant dense<0.000000e+00> : vector<8x2xf32>
    %75 = tpu.matmul %73, %74, %cst_49 {dimension_numbers = #tpu.dot_dimension_numbers<[1], [0], [0], [1], [0, 0, 1, 1], [], []>, precision = #tpu.contract_precision<fp32>} : vector<8x128xf32>, vector<128x2xf32>, vector<8x2xf32> -> vector<8x2xf32>
    %c0_50 = arith.constant 0 : index
    %c0_51 = arith.constant 0 : index
    %76 = vector.load %arg17[%c0_50, %c0_51] : memref<1x2xf32, #tpu.memory_space<vmem>>, vector<1x2xf32>
    %77 = vector.broadcast %76 : vector<1x2xf32> to vector<8x2xf32>
    %78 = arith.addf %75, %77 : vector<8x2xf32>
    %79 = math.tanh %78 : vector<8x2xf32>
    %c0_52 = arith.constant 0 : index
    %c0_53 = arith.constant 0 : index
    %80 = vector.load %arg18[%c0_52, %c0_53] : memref<8x2xf32, #tpu.memory_space<vmem>>, vector<8x2xf32>
    tpu.vector_store %arg18[%c0_52, %c0_53], %79 {strides = array<i32>} : memref<8x2xf32, #tpu.memory_space<vmem>>, vector<8x2xf32>,
    return
  }
}

</mosaic_0001>

<bundles_post_ra>
// kernel: tpu_custom_call.1
= control target key start
LH: loop header
LB: loop body
LE: loop exit
PB: predicated region body
PF: predicated region fallthrough
CT: control target
= control target key end

     0   :  { %s10057_s0 = inlined_call_operand.hbm [shape: f32[8,128], index: 0, kind: input, shape index: {}]   ;;  %s10058_s1 = inlined_call_operand.hbm [shape: f32[8,64], index: 1, kind: input, shape index: {}]   ;;  %s10059_s2 = inlined_call_operand.vmem [shape: f32[128,192], index: 2, kind: input, shape index: {}]   ;;  %s10060_s3 = inlined_call_operand.vmem [shape: f32[1,192], index: 3, kind: input, shape index: {}]   ;;  %s10061_s4 = inlined_call_operand.vmem [shape: f32[64,192], index: 4, kind: input, shape index: {}]   ;;  %s10062_s5 = inlined_call_operand.vmem [shape: f32[1,192], index: 5, kind: input, shape index: {}]   ;;  %s10063_s6 = inlined_call_operand.vmem [shape: f32[64,64], index: 6, kind: input, shape index: {}]   ;;  %s10064_s7 = inlined_call_operand.vmem [shape: f32[1,64], index: 7, kind: input, shape index: {}]   ;;  %s10065_s8 = inlined_call_operand.vmem [shape: f32[64,64], index: 8, kind: input, shape index: {}]   ;;  %s10066_s9 = inlined_call_operand.vmem [shape: f32[1,64], index: 9, kind: input, shape index: {}]   ;;  %s10067_s10 = inlined_call_operand.vmem [shape: f32[64,128], index: 10, kind: input, shape index: {}]   ;;  %s10068_s11 = inlined_call_operand.vmem [shape: f32[1,128], index: 11, kind: input, shape index: {}]   ;;  %s10069_s12 = inlined_call_operand.vmem [shape: f32[128,128], index: 12, kind: input, shape index: {}]   ;;  %s10070_s13 = inlined_call_operand.vmem [shape: f32[1,128], index: 13, kind: input, shape index: {}]   ;;  %s10071_s14 = inlined_call_operand.vmem [shape: f32[128,128], index: 14, kind: input, shape index: {}]   ;;  %s10072_s15 = inlined_call_operand.vmem [shape: f32[1,128], index: 15, kind: input, shape index: {}]   ;;  %s10073_s16 = inlined_call_operand.vmem [shape: f32[128,2], index: 16, kind: input, shape index: {}]   ;;  %s10074_s17 = inlined_call_operand.vmem [shape: f32[1,2], index: 17, kind: input, shape index: {}]   ;;  %s10075_s18 = inlined_call_operand.vmem [shape: f32[8,2], index: 18, kind: output, shape index: {0}]   ;;  %s10076_s19 = inlined_call_operand.hbm [shape: f32[8,64], index: 19, kind: output, shape index: {1}]  }
   0x1   :  { %10136 = sst [smem:[#allocation35_spill]] %s10057_s0 }
   0x2   :  { %10137 = sst [smem:[#allocation36_spill]] %s10058_s1 }
   0x3   :  { %10138 = sst [smem:[#allocation37_spill]] %s10059_s2 }
   0x4   :  { %10139 = sst [smem:[#allocation38_spill]] %s10060_s3 }
   0x5   :  { %25 = vsyncpa [#allocation3], 0 }
   0x6   :  { %26 = vsyncpa [#allocation6], 0 }
   0x7   :  { %27 = vsyncpa [#allocation4], 0  ;;  %s7936_s0 = smov [#allocation2]   ;;  %s7937_s20 = smov [#allocation5]  }
   0x8   :  { %s34_s30 = sshll.u32 %s7936_s0, 4  ;;  %s44_s21 = sshll.u32 %s7937_s20, 4  ;;  %s35_s30 = int_to_ptr.vmem [resolvable:$true] %s34_s30  ;;  %s45_s21 = int_to_ptr.vmem [resolvable:$true] %s44_s21 }
   0x9   :  { %s10140_s2 = sld [smem:[#allocation35_spill]] }
   0xf   :  { %s7864_s23 = scalar_lea.hbm %s10140_s2, 128 }
  0x10   :  { %p7865_p0 = scmp.ne.s32.totalorder %s10140_s2, %s7864_s23  ;;  %p7868_p1 = scmp.lt.u32.totalorder %s7864_s23, %s10140_s2 }
  0x12   :  { %p7870_p2 = pnand %p7868_p1, %p7865_p0 }
  0x14   :  { %7873 = shalt.err (!%p7870_p2)
}
  0x15   :  { %s7874_s27 = scalar_lea.vmem %s35_s30, 128  ;;  %p7879_p4 = scmp.lt.s32.totalorder %s35_s30, %s35_s30 }
  0x16   :  { %p7875_p3 = scmp.ne.s32.totalorder %s35_s30, %s7874_s27  ;;  %p7880_p5 = scmp.lt.s32.totalorder %s7874_s27, %s7874_s27 }
  0x18   :  { %p7881_p6 = por %p7880_p5, %p7879_p4 }
  0x1a   :  { %p7882_p7 = pnand %p7881_p6, %p7875_p3 }
  0x1c   :  { %7885 = shalt.err (!%p7882_p7)
}
  0x1d   :  { %37 = dma.hbm_to_vmem [thread:$0]  %s10140_s2, 128, %s35_s30, [#allocation3]  }
  0x1e   :  { %s10141_s1 = sld [smem:[#allocation36_spill]] }
  0x24   :  { %s7886_s22 = scalar_lea.hbm %s10141_s1, 128 }
  0x25   :  { %p7887_p8 = scmp.ne.s32.totalorder %s10141_s1, %s7886_s22  ;;  %p7890_p9 = scmp.lt.u32.totalorder %s7886_s22, %s10141_s1 }
  0x27   :  { %p7892_p10 = pnand %p7890_p9, %p7887_p8 }
  0x29   :  { %7895 = shalt.err (!%p7892_p10)
}
  0x2a   :  { %s7896_s26 = scalar_lea.vmem %s45_s21, 128  ;;  %p7901_p12 = scmp.lt.s32.totalorder %s45_s21, %s45_s21 }
  0x2b   :  { %p7897_p11 = scmp.ne.s32.totalorder %s45_s21, %s7896_s26  ;;  %p7902_p13 = scmp.lt.s32.totalorder %s7896_s26, %s7896_s26 }
  0x2d   :  { %p7903_p0 = por %p7902_p13, %p7901_p12 }
  0x2f   :  { %p7904_p1 = pnand %p7903_p0, %p7897_p11 }
  0x31   :  { %7907 = shalt.err (!%p7904_p1)
}
  0x32   :  { %47 = dma.hbm_to_vmem [thread:$0]  %s10141_s1, 128, %s45_s21, [#allocation6]  }
  0x33   :  { %7930 = dma.done.wait [#allocation3], 128  }
  0x34   :  { %7931 = vsyncadd [#allocation3], 4294967168 }
  0x35   :  { %7932 = dma.done.wait [#allocation6], 128  }
  0x36   :  { %7933 = vsyncadd [#allocation6], 4294967168  ;;  %v10080_v0 = vmov 0.0   ;;  %s10142_s29 = sld [smem:[#allocation37_spill]]  ;;  %vm1015_vm0 = vcmask 523264   ;;  %s10193_s3 = sld [smem:[#allocation38_spill]] }
  0x37   :  { %228 = vmatprep.mubr.f32.mxu1 %v10080_v0  ;;  %705 = vmatprep.mubr.f32.mxu0 %v10080_v0  ;;  %s7940_s21 = smov 64   ;;  %vm7941_vm1 = vmmov 0  }
  0x3c   :  { %v89_v1 = vld [vmem:[%s10142_s29 + $0x8] sm:$0xff]  ;;  %v91_v2 = vld [vmem:[%s10142_s29 + $0x18] sm:$0xff]  ;;  %v88_v3 = vld [vmem:[%s10142_s29] sm:$0xff] }
  0x3d   :  { %v132_v4 = vand.u32 4294901760, %v89_v1  ;;  %v136_v5 = vand.u32 4294901760, %v91_v2  ;;  %v90_v6 = vld [vmem:[%s10142_s29 + $0x10] sm:$0xff]  ;;  %v134_v7 = vand.u32 4294901760, %v88_v3  ;;  %v93_v8 = vld [vmem:[%s10142_s29 + $0x28] sm:$0xff]  ;;  %v95_v9 = vld [vmem:[%s10142_s29 + $0x38] sm:$0xff] }
  0x3e   :  { %v138_v10 = vand.u32 4294901760, %v90_v6  ;;  %v140_v11 = vand.u32 4294901760, %v93_v8  ;;  %v144_v12 = vand.u32 4294901760, %v95_v9  ;;  %v92_v13 = vld [vmem:[%s10142_s29 + $0x20] sm:$0xff]  ;;  %v94_v14 = vld [vmem:[%s10142_s29 + $0x30] sm:$0xff]  ;;  %v97_v15 = vld [vmem:[%s10142_s29 + $0x48] sm:$0xff] }
  0x3f   :  { %v8096_v16 = vpack.c.bf16 %v136_v5, %v132_v4  ;;  %v99_v17 = vld [vmem:[%s10142_s29 + $0x58] sm:$0xff]  ;;  %v96_v18 = vld [vmem:[%s10142_s29 + $0x40] sm:$0xff]  ;;  %v98_v19 = vld [vmem:[%s10142_s29 + $0x50] sm:$0xff]  ;;  %v142_v24 = vand.u32 4294901760, %v92_v13  ;;  %v146_v25 = vand.u32 4294901760, %v94_v14  ;;  %v148_v26 = vand.u32 4294901760, %v97_v15 }
  0x40   :  { %v8107_v20 = vpack.c.bf16 %v138_v10, %v134_v7  ;;  %v8109_v21 = vpack.c.bf16 %v144_v12, %v140_v11  ;;  %v101_v22 = vld [vmem:[%s10142_s29 + $0x68] sm:$0xff]  ;;  %v103_v23 = vld [vmem:[%s10142_s29 + $0x78] sm:$0xff]  ;;  %v8119_v27 = vsub.f32 %v89_v1, %v132_v4  ;;  %v152_v28 = vand.u32 4294901760, %v99_v17  ;;  %v100_v35 = vld [vmem:[%s10142_s29 + $0x60] sm:$0xff] }
  0x41   :  { %6824 = vmatprep.subr.bf16.mxu1 %v8096_v16  ;;  %6920 = vmatprep.subr.bf16.mxu0 %v8096_v16  ;;  %v150_v29 = vand.u32 4294901760, %v96_v18  ;;  %v154_v30 = vand.u32 4294901760, %v98_v19  ;;  %v8123_v31 = vsub.f32 %v91_v2, %v136_v5  ;;  %v8126_v32 = vpack.c.bf16 %v146_v25, %v142_v24  ;;  %v102_v36 = vld [vmem:[%s10142_s29 + $0x70] sm:$0xff]  ;;  %v105_v41 = vld [vmem:[%s10142_s29 + $0x88] sm:$0xff]  ;;  %v107_v42 = vld [vmem:[%s10142_s29 + $0x98] sm:$0xff] }
  0x42   :  { %10143 = vst [vmem:[#allocation11_spill] sm:$0xff] %v8107_v20  ;;  %10144 = vst [vmem:[#allocation12_spill] sm:$0xff] %v8109_v21  ;;  %6826 = vmatpush1.bf16.msra.mxu1 %v8107_v20  ;;  %6922 = vmatpush1.bf16.msra.mxu0 %v8107_v20  ;;  %v156_v33 = vand.u32 4294901760, %v101_v22  ;;  %v160_v34 = vand.u32 4294901760, %v103_v23  ;;  %v8135_v37 = vsub.f32 %v88_v3, %v134_v7  ;;  %v104_v47 = vld [vmem:[%s10142_s29 + $0x80] sm:$0xff]  ;;  %v106_v48 = vld [vmem:[%s10142_s29 + $0x90] sm:$0xff] }
  0x43   :  { %6828 = vmatprep.subr.bf16.mxu1 %v8109_v21  ;;  %10145 = vst [vmem:[#allocation13_spill] sm:$0xff] %v8126_v32  ;;  %6924 = vmatprep.subr.bf16.mxu0 %v8109_v21  ;;  %v8137_v38 = vsub.f32 %v90_v6, %v138_v10  ;;  %v8139_v39 = vsub.f32 %v93_v8, %v140_v11  ;;  %v158_v51 = vand.u32 4294901760, %v100_v35  ;;  %v162_v52 = vand.u32 4294901760, %v102_v36  ;;  %v109_v53 = vld [vmem:[%s10142_s29 + $0xa8] sm:$0xff]  ;;  %v111_v58 = vld [vmem:[%s10142_s29 + $0xb8] sm:$0xff]  ;;  %v108_v59 = vld [vmem:[%s10142_s29 + $0xa0] sm:$0xff] }
  0x44   :  { %v8141_v40 = vpack.c.bf16 %v152_v28, %v148_v26  ;;  %v8149_v43 = vsub.f32 %v95_v9, %v144_v12  ;;  %v8151_v44 = vsub.f32 %v92_v13, %v142_v24  ;;  %v8153_v45 = vsub.f32 %v94_v14, %v146_v25  ;;  %v110_v1 = vld [vmem:[%s10142_s29 + $0xb0] sm:$0xff]  ;;  %v113_v2 = vld [vmem:[%s10142_s29 + $0xc8] sm:$0xff]  ;;  %v115_v3 = vld [vmem:[%s10142_s29 + $0xd8] sm:$0xff] }
  0x45   :  { %v8155_v46 = vsub.f32 %v97_v15, %v148_v26  ;;  %v8165_v49 = vsub.f32 %v99_v17, %v152_v28  ;;  %v8167_v50 = vpack.c.bf16 %v154_v30, %v150_v29  ;;  %v8173_v54 = vsub.f32 %v96_v18, %v150_v29  ;;  %v112_v12 = vld [vmem:[%s10142_s29 + $0xc0] sm:$0xff]  ;;  %v114_v13 = vld [vmem:[%s10142_s29 + $0xd0] sm:$0xff]  ;;  %v117_v25 = vld [vmem:[%s10142_s29 + $0xe8] sm:$0xff] }
  0x46   :  { %10146 = vst [vmem:[#allocation14_spill] sm:$0xff] %v8141_v40  ;;  %10147 = vst [vmem:[#allocation15_spill] sm:$0xff] %v8151_v44  ;;  %6830 = vmatpush1.bf16.msra.mxu1 %v8126_v32  ;;  %6926 = vmatpush1.bf16.msra.mxu0 %v8126_v32  ;;  %v8176_v55 = vpack.c.bf16 %v160_v34, %v156_v33  ;;  %v164_v56 = vand.u32 4294901760, %v105_v41  ;;  %v168_v57 = vand.u32 4294901760, %v107_v42  ;;  %v166_v62 = vand.u32 4294901760, %v104_v47 }
  0x47   :  { %10148 = vst [vmem:[#allocation16_spill] sm:$0xff] %v8153_v45  ;;  %10149 = vst [vmem:[#allocation17_spill] sm:$0xff] %v8155_v46  ;;  %6832 = vmatprep.subr.bf16.mxu1 %v8141_v40  ;;  %6928 = vmatprep.subr.bf16.mxu0 %v8141_v40  ;;  %v8184_v60 = vsub.f32 %v98_v19, %v154_v30  ;;  %v8186_v61 = vsub.f32 %v101_v22, %v156_v33  ;;  %v170_v63 = vand.u32 4294901760, %v106_v48  ;;  %v119_v33 = vld [vmem:[%s10142_s29 + $0xf8] sm:$0xff] }
  0x48   :  { %10150 = vst [vmem:[#allocation18_spill] sm:$0xff] %v8165_v49  ;;  %10151 = vst [vmem:[#allocation19_spill] sm:$0xff] %v8167_v50  ;;  %v8197_v4 = vsub.f32 %v103_v23, %v160_v34  ;;  %v8199_v5 = vpack.c.bf16 %v162_v52, %v158_v51  ;;  %v8201_v6 = vsub.f32 %v100_v35, %v158_v51  ;;  %v172_v7 = vand.u32 4294901760, %v109_v53  ;;  %v86_v34 = vld [vmem:[#allocation2] sm:$0xff] }
  0x49   :  { %10152 = vst [vmem:[#allocation20_spill] sm:$0xff] %v8173_v54  ;;  %10153 = vst [vmem:[#allocation21_spill] sm:$0xff] %v8176_v55  ;;  %v8205_v8 = vsub.f32 %v102_v36, %v162_v52  ;;  %v8207_v9 = vsub.f32 %v105_v41, %v164_v56  ;;  %v176_v10 = vand.u32 4294901760, %v111_v58  ;;  %v174_v11 = vand.u32 4294901760, %v108_v59  ;;  %v116_v52 = vld [vmem:[%s10142_s29 + $0xe0] sm:$0xff] }
  0x4a   :  { %10154 = vst [vmem:[#allocation22_spill] sm:$0xff] %v8184_v60  ;;  %10155 = vst [vmem:[#allocation23_spill] sm:$0xff] %v8197_v4  ;;  %6834 = vmatpush1.bf16.msra.mxu1 %v8167_v50  ;;  %6930 = vmatpush1.bf16.msra.mxu0 %v8167_v50  ;;  %v8217_v14 = vpack.c.bf16 %v168_v57, %v164_v56  ;;  %v178_v15 = vand.u32 4294901760, %v110_v1  ;;  %v180_v17 = vand.u32 4294901760, %v113_v2  ;;  %v184_v18 = vand.u32 4294901760, %v115_v3  ;;  %v118_v56 = vld [vmem:[%s10142_s29 + $0xf0] sm:$0xff] }
  0x4b   :  { %10156 = vst [vmem:[#allocation24_spill] sm:$0xff] %v8199_v5  ;;  %6836 = vmatprep.subr.bf16.mxu1 %v8176_v55  ;;  %6932 = vmatprep.subr.bf16.mxu0 %v8176_v55  ;;  %v8219_v19 = vsub.f32 %v107_v42, %v168_v57  ;;  %v8221_v22 = vpack.c.bf16 %v170_v63, %v166_v62  ;;  %v182_v29 = vand.u32 4294901760, %v112_v12  ;;  %v186_v30 = vand.u32 4294901760, %v114_v13 }
  0x4c   :  { %10157 = vst [vmem:[#allocation25_spill] sm:$0xff] %v8217_v14  ;;  %v8223_v23 = vsub.f32 %v104_v47, %v166_v62  ;;  %v8225_v24 = vsub.f32 %v106_v48, %v170_v63  ;;  %v8230_v26 = vpack.c.bf16 %v176_v10, %v172_v7  ;;  %v8232_v28 = vsub.f32 %v109_v53, %v172_v7 }
  0x4d   :  { %10158 = vst [vmem:[#allocation26_spill] sm:$0xff] %v8221_v22  ;;  %v8239_v35 = vsub.f32 %v111_v58, %v176_v10  ;;  %v8241_v36 = vpack.c.bf16 %v178_v15, %v174_v11  ;;  %v8243_v41 = vsub.f32 %v108_v59, %v174_v11  ;;  %v8247_v42 = vsub.f32 %v110_v1, %v178_v15 }
  0x4e   :  { %10159 = vst [vmem:[#allocation27_spill] sm:$0xff] %v8230_v26  ;;  %6838 = vmatpush1.bf16.msra.mxu1 %v8199_v5  ;;  %6934 = vmatpush1.bf16.msra.mxu0 %v8199_v5  ;;  %v8249_v47 = vpack.c.bf16 %v184_v18, %v180_v17  ;;  %v8251_v48 = vsub.f32 %v113_v2, %v180_v17  ;;  %v188_v51 = vand.u32 4294901760, %v117_v25  ;;  %v192_v53 = vand.u32 4294901760, %v119_v33 }
  0x4f   :  { %10160 = vst [vmem:[#allocation28_spill] sm:$0xff] %v8241_v36  ;;  %6840 = vmatprep.subr.bf16.mxu1 %v8217_v14  ;;  %6936 = vmatprep.subr.bf16.mxu0 %v8217_v14  ;;  %v242_v57 = vand.u32 4294901760, %v8119_v27  ;;  %v254_v58 = vand.u32 4294901760, %v8123_v31  ;;  %v8261_v59 = vand.u32 4294901760, %v86_v34  ;;  %v8263_v62 = vsub.f32 %v115_v3, %v184_v18 }
  0x50   :  { %10161 = vst [vmem:[#allocation29_spill] sm:$0xff] %v8249_v47  ;;  %v8265_v63 = vpack.c.bf16 %v186_v30, %v182_v29  ;;  %v8267_v1 = vsub.f32 %v112_v12, %v182_v29  ;;  %v8269_v2 = vsub.f32 %v114_v13, %v186_v30  ;;  %v190_v7 = vand.u32 4294901760, %v116_v52 }
  0x51   :  { %10162 = vst [vmem:[#allocation30_spill] sm:$0xff] %v8261_v59  ;;  %v243_v10 = vsub.f32 %v8119_v27, %v242_v57  ;;  %v255_v11 = vsub.f32 %v8123_v31, %v254_v58  ;;  %v248_v15 = vand.u32 4294901760, %v8135_v37  ;;  %v194_v3 = vand.u32 4294901760, %v118_v56 }
  0x52   :  { %10163 = vst [vmem:[#allocation31_spill] sm:$0xff] %v8265_v63  ;;  %6842 = vmatpush1.bf16.msra.mxu1 %v8221_v22  ;;  %6938 = vmatpush1.bf16.msra.mxu0 %v8221_v22  ;;  %v8279_v12 = vsub.f32 %v86_v34, %v8261_v59  ;;  %v260_v13 = vand.u32 4294901760, %v8137_v38  ;;  %v266_v17 = vand.u32 4294901760, %v8139_v39  ;;  %v8283_v18 = vpack.c.bf16 %v192_v53, %v188_v51 }
  0x53   :  { %6844 = vmatprep.subr.bf16.mxu1 %v8230_v26  ;;  %6940 = vmatprep.subr.bf16.mxu0 %v8230_v26  ;;  %v8285_v29 = vsub.f32 %v117_v25, %v188_v51  ;;  %v8287_v30 = vsub.f32 %v119_v33, %v192_v53  ;;  %v278_v0 = vand.u32 4294901760, %v8149_v43  ;;  %v244_v22 = vand.u32 4294901760, %v243_v10 }
  0x54   :  { %10164 = vst [vmem:[#allocation32_spill] sm:$0xff] %v8279_v12  ;;  %10165 = vst [vmem:[#allocation33_spill] sm:$0xff] %v8283_v18  ;;  %v256_v14 = vand.u32 4294901760, %v255_v11  ;;  %v231_v26 = vand.u32 4294901760, %v8279_v12  ;;  %v249_v5 = vsub.f32 %v8135_v37, %v248_v15  ;;  %v261_v34 = vsub.f32 %v8137_v38, %v260_v13 }
  0x55   :  { %v267_v55 = vsub.f32 %v8139_v39, %v266_v17  ;;  %v279_v25 = vsub.f32 %v8149_v43, %v278_v0  ;;  %v272_v33 = vand.u32 4294901760, %v8151_v44  ;;  %v8300_v51 = vpack.c.bf16 %v194_v3, %v190_v7 }
  0x56   :  { %6846 = vmatpush1.bf16.msra.mxu1 %v8241_v36  ;;  %6942 = vmatpush1.bf16.msra.mxu0 %v8241_v36  ;;  %v8302_v53 = vsub.f32 %v116_v52, %v190_v7  ;;  %v8304_v10 = vsub.f32 %v118_v56, %v194_v3  ;;  %v284_v11 = vand.u32 4294901760, %v8153_v45  ;;  %v6951_v36 = vpack.c.bf16 %v254_v58, %v242_v57 }
  0x57   :  { %6848 = vmatprep.subr.bf16.mxu1 %v8249_v47  ;;  %6944 = vmatprep.subr.bf16.mxu0 %v8249_v47  ;;  %10166 = vst [vmem:[#allocation34_spill] sm:$0xff] %v8300_v51  ;;  %v6953_v50 = vpack.c.bf16 %v260_v13, %v248_v15  ;;  %v273_v40 = vsub.f32 %v8151_v44, %v272_v33  ;;  %v290_v32 = vand.u32 4294901760, %v8155_v46  ;;  %v250_v59 = vand.u32 4294901760, %v249_v5 }
  0x58   :  { %v6855_v21 = vpack.c.bf16 %v256_v14, %v244_v22  ;;  %v232_v20 = vsub.f32 %v8279_v12, %v231_v26  ;;  %v285_v47 = vsub.f32 %v8153_v45, %v284_v11  ;;  %v262_v52 = vand.u32 4294901760, %v261_v34 }
  0x59   :  { %v268_v56 = vand.u32 4294901760, %v267_v55  ;;  %v280_v7 = vand.u32 4294901760, %v279_v25  ;;  %v302_v57 = vand.u32 4294901760, %v8165_v49  ;;  %v291_v14 = vsub.f32 %v8155_v46, %v290_v32 }
  0x5a   :  { %6850 = vmatpush1.bf16.msra.mxu1 %v8265_v63  ;;  %6946 = vmatpush1.bf16.msra.mxu0 %v8265_v63  ;;  %v296_v22 = vand.u32 4294901760, %v8173_v54  ;;  %v308_v5 = vand.u32 4294901760, %v8184_v60  ;;  %v314_v58 = vand.u32 4294901760, %v8186_v61  ;;  %v274_v15 = vand.u32 4294901760, %v273_v40 }
  0x5b   :  { %6852 = vmatprep.subr.bf16.mxu1 %v8283_v18  ;;  %6948 = vmatprep.subr.bf16.mxu0 %v8283_v18  ;;  %v286_v3 = vand.u32 4294901760, %v285_v47  ;;  %v303_v13 = vsub.f32 %v8165_v49, %v302_v57  ;;  %v326_v55 = vand.u32 4294901760, %v8197_v4  ;;  %v233_v34 = vand.u32 4294901760, %v232_v20 }
  0x5c   :  { %v6955_v25 = vpack.c.bf16 %v278_v0, %v266_v17  ;;  %v297_v12 = vsub.f32 %v8173_v54, %v296_v22  ;;  %v309_v18 = vsub.f32 %v8184_v60, %v308_v5  ;;  %v6857_v63 = vpack.c.bf16 %v262_v52, %v250_v59 }
  0x5d   :  { %v315_v46 = vsub.f32 %v8186_v61, %v314_v58  ;;  %v327_v40 = vsub.f32 %v8197_v4, %v326_v55  ;;  %v320_v47 = vand.u32 4294901760, %v8201_v6  ;;  %v6859_v49 = vpack.c.bf16 %v280_v7, %v268_v56 }
  0x5e   :  { %6854 = vmatpush1.bf16.msra.mxu1 %v8300_v51  ;;  %6950 = vmatpush1.bf16.msra.mxu0 %v8300_v51  ;;  %v292_v20 = vand.u32 4294901760, %v291_v14  ;;  %v304_v0 = vand.u32 4294901760, %v303_v13  ;;  %v332_v17 = vand.u32 4294901760, %v8205_v8  ;;  %v6861_v54 = vpack.c.bf16 %v286_v3, %v274_v15 }
  0x5f   :  { %6856 = vmatprep.subr.bf16.mxu1 %v6855_v21  ;;  %6952 = vmatprep.subr.bf16.mxu0 %v6951_v36  ;;  %v6957_v60 = vpack.c.bf16 %v284_v11, %v272_v33  ;;  %v298_v45 = vand.u32 4294901760, %v297_v12  ;;  %v6959_v44 = vpack.c.bf16 %v302_v57, %v290_v32  ;;  %v310_v59 = vand.u32 4294901760, %v309_v18 }
  0x60   :  { %v316_v52 = vand.u32 4294901760, %v315_v46  ;;  %v328_v51 = vand.u32 4294901760, %v327_v40  ;;  %v338_v4 = vand.u32 4294901760, %v8207_v9  ;;  %v321_v21 = vsub.f32 %v8201_v6, %v320_v47 }
  0x61   :  { %234 = vmatmul.mubr.f32.vlgmr.msra.gmra.mrb[0].mxu1 %v233_v34  ;;  %709 = vmatmul.mubr.f32.vlgmr.msra.gmra.mrb[0].mxu0 %v231_v26  ;;  %v333_v36 = vsub.f32 %v8205_v8, %v332_v17  ;;  %v350_v56 = vand.u32 4294901760, %v8219_v19  ;;  %v344_v7 = vand.u32 4294901760, %v8223_v23  ;;  %v6863_v32 = vpack.c.bf16 %v304_v0, %v292_v20 }
  0x62   :  { %6858 = vmatpush1.bf16.msra.mxu1 %v6857_v63  ;;  %6954 = vmatpush1.bf16.msra.mxu0 %v6953_v50  ;;  %v339_v26 = vsub.f32 %v8207_v9, %v338_v4  ;;  %v356_v46 = vand.u32 4294901760, %v8225_v24  ;;  %v362_v12 = vand.u32 4294901760, %v8232_v28  ;;  %v6961_v18 = vpack.c.bf16 %v308_v5, %v296_v22 }
  0x63   :  { %6860 = vmatprep.subr.bf16.mxu1 %v6859_v49  ;;  %6956 = vmatprep.subr.bf16.mxu0 %v6955_v25  ;;  %v351_v50 = vsub.f32 %v8219_v19, %v350_v56  ;;  %v345_v63 = vsub.f32 %v8223_v23, %v344_v7  ;;  %v374_v33 = vand.u32 4294901760, %v8239_v35  ;;  %v10167_v11 = vmov 0.0  }
  0x64   :  { %464 = vmatprep.mubr.f32.mxu1 %v10167_v11  ;;  %875 = vmatprep.mubr.f32.mxu0 %v10167_v11  ;;  %v6865_v49 = vpack.c.bf16 %v310_v59, %v298_v45  ;;  %v6867_v57 = vpack.c.bf16 %v328_v51, %v316_v52  ;;  %v6963_v14 = vpack.c.bf16 %v326_v55, %v314_v58  ;;  %v322_v3 = vand.u32 4294901760, %v321_v21 }
  0x65   :  { %v357_v15 = vsub.f32 %v8225_v24, %v356_v46  ;;  %v334_v13 = vand.u32 4294901760, %v333_v36  ;;  %v363_v22 = vsub.f32 %v8232_v28, %v362_v12  ;;  %v375_v5 = vsub.f32 %v8239_v35, %v374_v33 }
  0x66   :  { %6862 = vmatpush1.bf16.msra.mxu1 %v6861_v54  ;;  %6958 = vmatpush1.bf16.msra.mxu0 %v6957_v60  ;;  %v340_v34 = vand.u32 4294901760, %v339_v26  ;;  %v352_v25 = vand.u32 4294901760, %v351_v50  ;;  %v368_v40 = vand.u32 4294901760, %v8243_v41  ;;  %v380_v45 = vand.u32 4294901760, %v8247_v42 }
  0x67   :  { %6864 = vmatprep.subr.bf16.mxu1 %v6863_v32  ;;  %6960 = vmatprep.subr.bf16.mxu0 %v6959_v44  ;;  %v6965_v51 = vpack.c.bf16 %v332_v17, %v320_v47  ;;  %v346_v58 = vand.u32 4294901760, %v345_v63  ;;  %v358_v55 = vand.u32 4294901760, %v357_v15  ;;  %v386_v54 = vand.u32 4294901760, %v8251_v48 }
  0x68   :  { %v364_v60 = vand.u32 4294901760, %v363_v22  ;;  %v376_v20 = vand.u32 4294901760, %v375_v5  ;;  %v369_v0 = vsub.f32 %v8243_v41, %v368_v40  ;;  %v381_v59 = vsub.f32 %v8247_v42, %v380_v45 }
  0x69   :  { %v6869_v44 = vpack.c.bf16 %v334_v13, %v322_v3  ;;  %v6967_v52 = vpack.c.bf16 %v350_v56, %v338_v4  ;;  %v398_v21 = vand.u32 4294901760, %v8263_v62  ;;  %v392_v36 = vand.u32 4294901760, %v8267_v1 }
  0x6a   :  { %6866 = vmatpush1.bf16.msra.mxu1 %v6865_v49  ;;  %6962 = vmatpush1.bf16.msra.mxu0 %v6961_v18  ;;  %v6871_v47 = vpack.c.bf16 %v352_v25, %v340_v34  ;;  %v387_v17 = vsub.f32 %v8251_v48, %v386_v54  ;;  %v404_v32 = vand.u32 4294901760, %v8269_v2  ;;  %v410_v26 = vand.u32 4294901760, %v8285_v29 }
  0x6b   :  { %6868 = vmatprep.subr.bf16.mxu1 %v6867_v57  ;;  %6964 = vmatprep.subr.bf16.mxu0 %v6963_v14  ;;  %v6969_v50 = vpack.c.bf16 %v356_v46, %v344_v7  ;;  %v6971_v63 = vpack.c.bf16 %v374_v33, %v362_v12  ;;  %v399_v49 = vsub.f32 %v8263_v62, %v398_v21  ;;  %v370_v4 = vand.u32 4294901760, %v369_v0 }
  0x6c   :  { %v6873_v18 = vpack.c.bf16 %v358_v55, %v346_v58  ;;  %v6875_v15 = vpack.c.bf16 %v376_v20, %v364_v60  ;;  %v382_v56 = vand.u32 4294901760, %v381_v59  ;;  %v393_v57 = vsub.f32 %v8267_v1, %v392_v36 }
  0x6d   :  { %v405_v14 = vsub.f32 %v8269_v2, %v404_v32  ;;  %v422_v3 = vand.u32 4294901760, %v8287_v30  ;;  %v416_v13 = vand.u32 4294901760, %v8302_v53  ;;  %v388_v7 = vand.u32 4294901760, %v387_v17 }
  0x6e   :  { %6870 = vmatpush1.bf16.msra.mxu1 %v6869_v44  ;;  %6966 = vmatpush1.bf16.msra.mxu0 %v6965_v51  ;;  %v400_v46 = vand.u32 4294901760, %v399_v49  ;;  %v411_v12 = vsub.f32 %v8285_v29, %v410_v26  ;;  %v428_v33 = vand.u32 4294901760, %v8304_v10  ;;  %v6877_v5 = vpack.c.bf16 %v382_v56, %v370_v4  ;;  %v10178_v56 = vld [vmem:[#allocation14_spill] sm:$0xff] }
  0x6f   :  { %6872 = vmatprep.subr.bf16.mxu1 %v6871_v47  ;;  %6968 = vmatprep.subr.bf16.mxu0 %v6967_v52  ;;  %v423_v22 = vsub.f32 %v8287_v30, %v422_v3  ;;  %v6973_v34 = vpack.c.bf16 %v380_v45, %v368_v40  ;;  %v394_v25 = vand.u32 4294901760, %v393_v57  ;;  %v406_v51 = vand.u32 4294901760, %v405_v14  ;;  %v10179_v57 = vld [vmem:[#allocation23_spill] sm:$0xff] }
  0x70   :  { %v417_v58 = vsub.f32 %v8302_v53, %v416_v13  ;;  %v429_v55 = vsub.f32 %v8304_v10, %v428_v33  ;;  %v6879_v60 = vpack.c.bf16 %v400_v46, %v388_v7  ;;  %v6975_v20 = vpack.c.bf16 %v398_v21, %v386_v54  ;;  %v10181_v7 = vld [vmem:[#allocation21_spill] sm:$0xff] }
  0x71   :  { %v412_v0 = vand.u32 4294901760, %v411_v12  ;;  %v424_v59 = vand.u32 4294901760, %v423_v22  ;;  %v6881_v44 = vpack.c.bf16 %v406_v51, %v394_v25  ;;  %v6977_v52 = vpack.c.bf16 %v404_v32, %v392_v36  ;;  %v10168_v32 = vld [vmem:[#allocation30_spill] sm:$0xff]  ;;  %v10182_v12 = vld [vmem:[#allocation24_spill] sm:$0xff] }
  0x72   :  { %6874 = vmatpush1.bf16.msra.mxu1 %v6873_v18  ;;  %6970 = vmatpush1.bf16.msra.mxu0 %v6969_v50  ;;  %v418_v47 = vand.u32 4294901760, %v417_v58  ;;  %v430_v40 = vand.u32 4294901760, %v429_v55  ;;  %v6979_v17 = vpack.c.bf16 %v422_v3, %v410_v26  ;;  %v6981_v49 = vpack.c.bf16 %v428_v33, %v416_v13  ;;  %v10169_v26 = vld [vmem:[#allocation11_spill] sm:$0xff]  ;;  %v10172_v18 = vld [vmem:[#allocation12_spill] sm:$0xff]  ;;  %v993_v51 = vld [vmem:[%s10061_s4 + $0x30] sm:$0xff] }
  0x73   :  { %6876 = vmatprep.subr.bf16.mxu1 %v6875_v15  ;;  %6972 = vmatprep.subr.bf16.mxu0 %v6971_v63  ;;  %v6883_v45 = vpack.c.bf16 %v424_v59, %v412_v0  ;;  %v6887_v54 = vpack.c.bf16 %v8123_v31, %v8119_v27  ;;  %v6889_v21 = vpack.c.bf16 %v8137_v38, %v8135_v37  ;;  %v10170_v63 = vld [vmem:[#allocation15_spill] sm:$0xff]  ;;  %v10171_v27 = vld [vmem:[#allocation16_spill] sm:$0xff]  ;;  %v10173_v37 = vld [vmem:[#allocation17_spill] sm:$0xff] }
  0x74   :  { %v6885_v50 = vpack.c.bf16 %v430_v40, %v418_v47  ;;  %v6891_v36 = vpack.c.bf16 %v8149_v43, %v8139_v39  ;;  %v6893_v31 = vpack.c.bf16 %v10171_v27, %v10170_v63  ;;  %v10174_v38 = vld [vmem:[#allocation18_spill] sm:$0xff]  ;;  %v10176_v39 = vld [vmem:[#allocation20_spill] sm:$0xff]  ;;  %v6899_v14 = vpack.c.bf16 %v10179_v57, %v8186_v61  ;;  %v10180_v3 = vld [vmem:[#allocation19_spill] sm:$0xff] }
  0x75   :  { %v6895_v15 = vpack.c.bf16 %v10174_v38, %v10173_v37  ;;  %v10177_v43 = vld [vmem:[#allocation22_spill] sm:$0xff]  ;;  %v6901_v13 = vpack.c.bf16 %v8205_v8, %v8201_v6  ;;  %v6903_v46 = vpack.c.bf16 %v8219_v19, %v8207_v9  ;;  %v6905_v33 = vpack.c.bf16 %v8225_v24, %v8223_v23  ;;  %v10183_v61 = vld [vmem:[#allocation25_spill] sm:$0xff]  ;;  %v10185_v9 = vld [vmem:[#allocation27_spill] sm:$0xff] }
  0x76   :  { %6878 = vmatpush1.bf16.msra.mxu1 %v6877_v5  ;;  %6974 = vmatpush1.bf16.msra.mxu0 %v6973_v34  ;;  %v6897_v4 = vpack.c.bf16 %v10177_v43, %v10176_v39  ;;  %v6907_v22 = vpack.c.bf16 %v8239_v35, %v8232_v28  ;;  %v10184_v6 = vld [vmem:[#allocation26_spill] sm:$0xff]  ;;  %v6909_v8 = vpack.c.bf16 %v8247_v42, %v8243_v41  ;;  %v988_v23 = vld [vmem:[%s10061_s4 + $0x8] sm:$0xff]  ;;  %v990_v24 = vld [vmem:[%s10061_s4 + $0x18] sm:$0xff] }
  0x77   :  { %6880 = vmatprep.subr.bf16.mxu1 %v6879_v60  ;;  %6976 = vmatprep.subr.bf16.mxu0 %v6975_v20  ;;  %v6911_v19 = vpack.c.bf16 %v8263_v62, %v8251_v48  ;;  %v987_v28 = vld [vmem:[%s10061_s4] sm:$0xff]  ;;  %v6913_v41 = vpack.c.bf16 %v8269_v2, %v8267_v1  ;;  %v989_v42 = vld [vmem:[%s10061_s4 + $0x10] sm:$0xff]  ;;  %v992_v48 = vld [vmem:[%s10061_s4 + $0x28] sm:$0xff]  ;;  %v6915_v34 = vpack.c.bf16 %v8287_v30, %v8285_v29  ;;  %v1019_v25 = vand.u32 4294901760, %v988_v23 }
  0x78   :  { %v10186_v35 = vld [vmem:[#allocation28_spill] sm:$0xff]  ;;  %v994_v62 = vld [vmem:[%s10061_s4 + $0x38] sm:$0xff]  ;;  %v10187_v5 = vld [vmem:[#allocation29_spill] sm:$0xff]  ;;  %v1023_v1 = vand.u32 4294901760, %v990_v24  ;;  %v6917_v55 = vpack.c.bf16 %v8304_v10, %v8302_v53  ;;  %v1021_v60 = vand.u32 4294901760, %v987_v28  ;;  %v1025_v29 = vand.u32 4294901760, %v989_v42 }
  0x79   :  { %v991_v2 = vld [vmem:[%s10061_s4 + $0x20] sm:$0xff]  ;;  %v8437_v58 = vld [vmem:[#allocation5] sm:$0xff]  ;;  %v8441_v20 = vsub.f32 %v988_v23, %v1019_v25  ;;  %v1027_v30 = vand.u32 4294901760, %v992_v48  ;;  %v1031_v0 = vand.u32 4294901760, %v994_v62  ;;  %v1033_v10 = vand.u32 4294901760, %v993_v51  ;;  %v10190_v37 = vld [vmem:[#allocation34_spill] sm:$0xff] }
  0x7a   :  { %6882 = vmatpush1.bf16.msra.mxu1 %v6881_v44  ;;  %6978 = vmatpush1.bf16.msra.mxu0 %v6977_v52  ;;  %v996_v59 = vld [vmem:[%s10061_s4 + $0x48] sm:$0xff]  ;;  %v998_v44 = vld [vmem:[%s10061_s4 + $0x58] sm:$0xff]  ;;  %v8450_v47 = vsub.f32 %v990_v24, %v1023_v1  ;;  %v1029_v53 = vand.u32 4294901760, %v991_v2  ;;  %v1017_v40 = vsel %vm1015_vm0, %v8437_v58, 0  ;;  %v8467_v63 = vpack.c.bf16 %v1025_v29, %v1021_v60 }
  0x7b   :  { %6884 = vmatprep.subr.bf16.mxu1 %v6883_v45  ;;  %6980 = vmatprep.subr.bf16.mxu0 %v6979_v17  ;;  %v10188_v52 = vld [vmem:[#allocation31_spill] sm:$0xff]  ;;  %v10189_v45 = vld [vmem:[#allocation33_spill] sm:$0xff]  ;;  %v8455_v17 = vpack.c.bf16 %v1023_v1, %v1019_v25  ;;  %v8469_v27 = vsub.f32 %v992_v48, %v1027_v30  ;;  %v8476_v38 = vpack.c.bf16 %v1031_v0, %v1027_v30 }
  0x7c   :  { %v1125_v39 = vand.u32 4294901760, %v8450_v47  ;;  %v8483_v43 = vsub.f32 %v991_v2, %v1029_v53 }
  0x7e   :  { %6886 = vmatpush1.bf16.msra.mxu1 %v6885_v50  ;;  %6982 = vmatpush1.bf16.msra.mxu0 %v6981_v49  ;;  %v8457_v50 = vsub.f32 %v987_v28, %v1021_v60  ;;  %v8459_v49 = vsub.f32 %v989_v42, %v1025_v29  ;;  %v1126_v28 = vsub.f32 %v8450_v47, %v1125_v39  ;;  %v1143_v25 = vand.u32 4294901760, %v8483_v43 }
  0x7f   :  { %6888 = vmatprep.subr.bf16.mxu1 %v6887_v54  ;;  %6984 = vmatprep.subr.bf16.mxu0 %v8096_v16  ;;  %v10175_v16 = vld [vmem:[#allocation13_spill] sm:$0xff]  ;;  %v1035_v54 = vand.u32 4294901760, %v996_v59 }
  0x81   :  { %466 = vmatmul.mubr.f32.vlgmr.msra.gmra.mrb[0].mxu1 %v10168_v32  ;;  %877 = vmatmul.mubr.f32.vlgmr.msra.gmra.mrb[0].mxu0 %v10168_v32 }
  0x82   :  { %6890 = vmatpush1.bf16.msra.mxu1 %v6889_v21  ;;  %6986 = vmatpush1.bf16.msra.mxu0 %v10169_v26  ;;  %v1039_v21 = vand.u32 4294901760, %v998_v44  ;;  %v997_v26 = vld [vmem:[%s10061_s4 + $0x50] sm:$0xff] }
  0x83   :  { %6892 = vmatprep.subr.bf16.mxu1 %v6891_v36  ;;  %6988 = vmatprep.subr.bf16.mxu0 %v10172_v18  ;;  %v995_v36 = vld [vmem:[%s10061_s4 + $0x40] sm:$0xff]  ;;  %v8473_v18 = vand.u32 4294901760, %v1017_v40  ;;  %v1041_v57 = vand.u32 4294901760, %v997_v26 }
  0x84   :  { %600 = vmatprep.mubr.f32.mxu1 %v10167_v11  ;;  %979 = vmatprep.mubr.f32.mxu0 %v10167_v11 }
  0x85   :  { %v8527_v42 = vsub.f32 %v997_v26, %v1041_v57 }
  0x86   :  { %6894 = vmatpush1.bf16.msra.mxu1 %v6893_v31  ;;  %6990 = vmatpush1.bf16.msra.mxu0 %v10175_v16  ;;  %v8471_v31 = vsub.f32 %v994_v62, %v1031_v0  ;;  %v1113_v16 = vand.u32 4294901760, %v8441_v20  ;;  %v1127_v0 = vand.u32 4294901760, %v1126_v28 }
  0x87   :  { %6896 = vmatprep.subr.bf16.mxu1 %v6895_v15  ;;  %6992 = vmatprep.subr.bf16.mxu0 %v10178_v56  ;;  %v8478_v15 = vpack.c.bf16 %v1033_v10, %v1029_v53  ;;  %v1037_v56 = vand.u32 4294901760, %v995_v36 }
  0x8a   :  { %6898 = vmatpush1.bf16.msra.mxu1 %v6897_v4  ;;  %6994 = vmatpush1.bf16.msra.mxu0 %v10180_v3  ;;  %v8485_v4 = vsub.f32 %v993_v51, %v1033_v10  ;;  %v1002_v3 = vld [vmem:[%s10061_s4 + $0x78] sm:$0xff] }
  0x8b   :  { %6900 = vmatprep.subr.bf16.mxu1 %v6899_v14  ;;  %6996 = vmatprep.subr.bf16.mxu0 %v10181_v7  ;;  %v1000_v14 = vld [vmem:[%s10061_s4 + $0x68] sm:$0xff]  ;;  %v8495_v7 = vsub.f32 %v996_v59, %v1035_v54  ;;  %v1047_v24 = vand.u32 4294901760, %v1002_v3 }
  0x8c   :  { %v1043_v23 = vand.u32 4294901760, %v1000_v14 }
  0x8d   :  { %v8550_v59 = vsub.f32 %v1002_v3, %v1047_v24  ;;  %v1179_v3 = vand.u32 4294901760, %v8527_v42 }
  0x8e   :  { %6902 = vmatpush1.bf16.msra.mxu1 %v6901_v13  ;;  %6998 = vmatpush1.bf16.msra.mxu0 %v10182_v12  ;;  %v8493_v13 = vpack.c.bf16 %v1039_v21, %v1035_v54  ;;  %v1119_v12 = vand.u32 4294901760, %v8457_v50  ;;  %v8545_v60 = vpack.c.bf16 %v1047_v24, %v1043_v23  ;;  %v8547_v29 = vsub.f32 %v1000_v14, %v1043_v23 }
  0x8f   :  { %6904 = vmatprep.subr.bf16.mxu1 %v6903_v46  ;;  %7000 = vmatprep.subr.bf16.mxu0 %v10183_v61  ;;  %v999_v46 = vld [vmem:[%s10061_s4 + $0x60] sm:$0xff]  ;;  %v1144_v54 = vsub.f32 %v8483_v43, %v1143_v25 }
  0x90   :  { %v10191_v61 = vld [vmem:[#allocation32_spill] sm:$0xff]  ;;  %v1045_v48 = vand.u32 4294901760, %v999_v46  ;;  %v1185_v23 = vand.u32 4294901760, %v8547_v29 }
  0x91   :  { %v1145_v24 = vand.u32 4294901760, %v1144_v54 }
  0x92   :  { %6906 = vmatpush1.bf16.msra.mxu1 %v6905_v33  ;;  %7002 = vmatpush1.bf16.msra.mxu0 %v10184_v6  ;;  %v1131_v33 = vand.u32 4294901760, %v8459_v49  ;;  %v1001_v6 = vld [vmem:[%s10061_s4 + $0x70] sm:$0xff] }
  0x93   :  { %6908 = vmatprep.subr.bf16.mxu1 %v6907_v22  ;;  %7004 = vmatprep.subr.bf16.mxu0 %v10185_v9  ;;  %v8504_v22 = vsub.f32 %v998_v44, %v1039_v21  ;;  %v1137_v9 = vand.u32 4294901760, %v8469_v27  ;;  %v1049_v62 = vand.u32 4294901760, %v1001_v6  ;;  %v8552_v44 = vsub.f32 %v999_v46, %v1045_v48 }
  0x95   :  { %v1138_v2 = vsub.f32 %v8469_v27, %v1137_v9  ;;  %v1173_v53 = vand.u32 4294901760, %v8504_v22  ;;  %v8556_v10 = vpack.c.bf16 %v1049_v62, %v1045_v48 }
  0x96   :  { %6910 = vmatpush1.bf16.msra.mxu1 %v6909_v8  ;;  %7006 = vmatpush1.bf16.msra.mxu0 %v10186_v35  ;;  %v8510_v8 = vsub.f32 %v1017_v40, %v8473_v18  ;;  %v8523_v35 = vpack.c.bf16 %v1041_v57, %v1037_v56 }
  0x97   :  { %6912 = vmatprep.subr.bf16.mxu1 %v6911_v19  ;;  %7008 = vmatprep.subr.bf16.mxu0 %v10187_v5  ;;  %v1149_v19 = vand.u32 4294901760, %v8471_v31  ;;  %v1120_v5 = vsub.f32 %v8457_v50, %v1119_v12 }
  0x98   :  { %v1102_v1 = vand.u32 4294901760, %v8510_v8 }
  0x99   :  { %v1150_v51 = vsub.f32 %v8471_v31, %v1149_v19  ;;  %v1121_v40 = vand.u32 4294901760, %v1120_v5 }
  0x9a   :  { %6914 = vmatpush1.bf16.msra.mxu1 %v6913_v41  ;;  %7010 = vmatpush1.bf16.msra.mxu0 %v10188_v52  ;;  %v8525_v41 = vsub.f32 %v995_v36, %v1037_v56  ;;  %v1161_v52 = vand.u32 4294901760, %v8495_v7  ;;  %v1103_v21 = vsub.f32 %v8510_v8, %v1102_v1  ;;  %v1139_v36 = vand.u32 4294901760, %v1138_v2 }
  0x9b   :  { %6916 = vmatprep.subr.bf16.mxu1 %v6915_v34  ;;  %7012 = vmatprep.subr.bf16.mxu0 %v10189_v45  ;;  %v1132_v34 = vsub.f32 %v8459_v49, %v1131_v33  ;;  %v1151_v26 = vand.u32 4294901760, %v1150_v51  ;;  %v8568_v56 = vsub.f32 %v1001_v6, %v1049_v62  ;;  %v1197_v6 = vand.u32 4294901760, %v8550_v59 }
  0x9c   :  { %v1167_v14 = vand.u32 4294901760, %v8525_v41  ;;  %v1162_v46 = vsub.f32 %v8495_v7, %v1161_v52  ;;  %v1191_v2 = vand.u32 4294901760, %v8552_v44 }
  0x9d   :  { %v1133_v45 = vand.u32 4294901760, %v1132_v34  ;;  %v7035_v48 = vpack.c.bf16 %v1151_v26, %v1139_v36  ;;  %v1180_v34 = vsub.f32 %v8527_v42, %v1179_v3  ;;  %v10107_v51 = vand.u32 4294901760, %v8568_v56 }
  0x9e   :  { %6918 = vmatpush1.bf16.msra.mxu1 %v6917_v55  ;;  %7014 = vmatpush1.bf16.msra.mxu0 %v10190_v37  ;;  %v1155_v55 = vand.u32 4294901760, %v8485_v4  ;;  %v1168_v5 = vsub.f32 %v8525_v41, %v1167_v14  ;;  %v1192_v26 = vsub.f32 %v8552_v44, %v1191_v2 }
  0x9f   :  { %7016 = vmatprep.subr.bf16.mxu1 %v8455_v17  ;;  %v7033_v28 = vpack.c.bf16 %v1133_v45, %v1121_v40  ;;  %v1186_v40 = vsub.f32 %v8547_v29, %v1185_v23  ;;  %v1198_v45 = vsub.f32 %v8550_v59, %v1197_v6  ;;  %v1181_v36 = vand.u32 4294901760, %v1180_v34 }
  0xa0   :  { %v1156_v37 = vsub.f32 %v8485_v4, %v1155_v55  ;;  %v7047_v34 = vpack.c.bf16 %v8450_v47, %v8441_v20  ;;  %v7087_v47 = vpack.c.bf16 %v1173_v53, %v1161_v52 }
  0xa1   :  { %603 = vmatmul.mubr.f32.vlgmr.msra.gmra.mrb[0].mxu1 %v10191_v61  ;;  %981 = vmatmul.mubr.f32.vlgmr.msra.gmra.mrb[0].mxu0 %v10168_v32  ;;  %v1114_v32 = vsub.f32 %v8441_v20, %v1113_v16  ;;  %v1174_v61 = vsub.f32 %v8504_v22, %v1173_v53  ;;  %v7085_v20 = vpack.c.bf16 %v1155_v55, %v1143_v25 }
  0xa2   :  { %7018 = vmatpush1.bf16.msra.mxu1 %v8467_v63  ;;  %1099 = vmatprep.mubr.f32.mxu1 %v10167_v11  ;;  %v1157_v62 = vand.u32 4294901760, %v1156_v37  ;;  %v1204_v37 = vsub.f32 %v8568_v56, %v10107_v51  ;;  %v7049_v51 = vpack.c.bf16 %v8459_v49, %v8457_v50  ;;  %v7089_v50 = vpack.c.bf16 %v1179_v3, %v1167_v14  ;;  %v1694_v14 = vld [vmem:[%s10063_s6 + $0x10] sm:$0xff] }
  0xa3   :  { %7020 = vmatprep.subr.bf16.mxu1 %v8476_v38  ;;  %v1115_v30 = vand.u32 4294901760, %v1114_v32  ;;  %v1104_v32 = vand.u32 4294901760, %v1103_v21  ;;  %v1169_v21 = vand.u32 4294901760, %v1168_v5  ;;  %v7091_v49 = vpack.c.bf16 %v1197_v6, %v1185_v23  ;;  %5981 = vmatprep.mubr.msk.f32.mxu0 %vm7941_vm1, %v10167_v11 }
  0xa4   :  { %v7037_v54 = vpack.c.bf16 %v1157_v62, %v1145_v24  ;;  %v1193_v24 = vand.u32 4294901760, %v1192_v26  ;;  %v7939_v3 = vmov 0.0|0.0   ;;  %v1716_v26 = vand.u32 4294901760, %v1694_v14 }
  0xa5   :  { %v7031_v57 = vpack.c.bf16 %v1127_v0, %v1115_v30  ;;  %v1163_v30 = vand.u32 4294901760, %v1162_v46  ;;  %v1175_v0 = vand.u32 4294901760, %v1174_v61  ;;  %v1187_v46 = vand.u32 4294901760, %v1186_v40  ;;  %7183 = vmatprep.subr.bf16.mxu0 %v7939_v3 }
  0xa6   :  { %7022 = vmatpush1.bf16.msra.mxu1 %v8478_v15  ;;  %v1199_v61 = vand.u32 4294901760, %v1198_v45  ;;  %v7057_v40 = vpack.c.bf16 %v8527_v42, %v8525_v41  ;;  %v7059_v45 = vpack.c.bf16 %v8550_v59, %v8547_v29 }
  0xa7   :  { %7024 = vmatprep.subr.bf16.mxu1 %v8493_v13 }
  0xa8   :  { %v7043_v62 = vpack.c.bf16 %v1199_v61, %v1187_v46 }
  0xaa   :  { %7026 = vmatpush1.bf16.msra.mxu1 %v8523_v35 }
  0xab   :  { %7028 = vmatprep.subr.bf16.mxu1 %v8545_v60 }
  0xae   :  { %7030 = vmatpush1.bf16.msra.mxu1 %v8556_v10 }
  0xaf   :  { %7032 = vmatprep.subr.bf16.mxu1 %v7031_v57  ;;  %v7039_v57 = vpack.c.bf16 %v1175_v0, %v1163_v30  ;;  %v7053_v30 = vpack.c.bf16 %v8485_v4, %v8483_v43  ;;  %v7055_v0 = vpack.c.bf16 %v8504_v22, %v8495_v7 }
  0xb1   :  { %1105 = vmatmul.mubr.f32.vlgmr.msra.gmra.mrb[2].mxu1 %v1104_v32  ;;  %v7041_v32 = vpack.c.bf16 %v1181_v36, %v1169_v21  ;;  %v7081_v21 = vpack.c.bf16 %v1131_v33, %v1119_v12  ;;  %v7083_v36 = vpack.c.bf16 %v1149_v19, %v1137_v9 }
  0xb2   :  { %7034 = vmatpush1.bf16.msra.mxu1 %v7033_v28  ;;  %1255 = vmatprep.mubr.f32.mxu1 %v10167_v11  ;;  %v1205_v28 = vand.u32 4294901760, %v1204_v37 }
  0xb3   :  { %7036 = vmatprep.subr.bf16.mxu1 %v7035_v48  ;;  %v7051_v48 = vpack.c.bf16 %v8471_v31, %v8469_v27  ;;  %v10192_v27 = vand.u32 4294901760, %v8568_v56 }
  0xb4   :  { %v7045_v5 = vpack.c.bf16 %v1205_v28, %v1193_v24 }
  0xb5   :  { %v7093_v31 = vpack.c.bf16 %v10192_v27, %v1191_v2  ;;  %v1695_v2 = vld [vmem:[%s10063_s6 + $0x18] sm:$0xff] }
  0xb6   :  { %7038 = vmatpush1.bf16.msra.mxu1 %v7037_v54  ;;  %v7079_v54 = vpack.c.bf16 %v1125_v39, %v1113_v16  ;;  %v1719_v37 = vand.u32 4294901760, %v1695_v2 }
  0xb7   :  { %7040 = vmatprep.subr.bf16.mxu1 %v7039_v57 }
  0xb8   :  { %v8705_v28 = vsub.f32 %v1695_v2, %v1719_v37 }
  0xba   :  { %7042 = vmatpush1.bf16.msra.mxu1 %v7041_v32  ;;  %v8703_v32 = vsub.f32 %v1694_v14, %v1716_v26 }
  0xbb   :  { %7044 = vmatprep.subr.bf16.mxu1 %v7043_v62  ;;  %v8709_v62 = vpack.c.bf16 %v1719_v37, %v1716_v26 }
  0xbc   :  { %v7139_v14 = vpack.c.bf16 %v8705_v28, %v8703_v32 }
  0xbe   :  { %7046 = vmatpush1.bf16.msra.mxu1 %v7045_v5  ;;  %v1696_v5 = vld [vmem:[%s10063_s6 + $0x20] sm:$0xff] }
  0xbf   :  { %7048 = vmatprep.subr.bf16.mxu1 %v7047_v34  ;;  %v1697_v34 = vld [vmem:[%s10063_s6 + $0x28] sm:$0xff] }
  0xc1   :  { %1257 = vmatmul.mubr.f32.vlgmr.msra.gmra.mrb[2].mxu1 %v8473_v18 }
  0xc2   :  { %7050 = vmatpush1.bf16.msra.mxu1 %v7049_v51  ;;  %1359 = vmatprep.mubr.f32.mxu1 %v10167_v11  ;;  %v7061_v51 = vpack.c.bf16 %v8568_v56, %v8552_v44  ;;  %v1693_v56 = vld [vmem:[%s10063_s6 + $0x8] sm:$0xff] }
  0xc3   :  { %7052 = vmatprep.subr.bf16.mxu1 %v7051_v48  ;;  %v1713_v6 = vand.u32 4294901760, %v1693_v56  ;;  %v1722_v48 = vand.u32 4294901760, %v1696_v5 }
  0xc5   :  { %v8701_v61 = vsub.f32 %v1693_v56, %v1713_v6 }
  0xc6   :  { %7054 = vmatpush1.bf16.msra.mxu1 %v7053_v30  ;;  %v1725_v30 = vand.u32 4294901760, %v1697_v34 }
  0xc7   :  { %7056 = vmatprep.subr.bf16.mxu1 %v7055_v0 }
  0xc8   :  { %v8722_v0 = vpack.c.bf16 %v1725_v30, %v1722_v48 }
  0xca   :  { %7058 = vmatpush1.bf16.msra.mxu1 %v7057_v40  ;;  %v1699_v40 = vld [vmem:[%s10063_s6 + $0x38] sm:$0xff] }
  0xcb   :  { %7060 = vmatprep.subr.bf16.mxu1 %v7059_v45 }
  0xce   :  { %7062 = vmatpush1.bf16.msra.mxu1 %v7061_v51  ;;  %v1731_v51 = vand.u32 4294901760, %v1699_v40 }
  0xcf   :  { %7064 = vmatprep.subr.bf16.mxu1 %v8455_v17 }
  0xd1   :  { %1362 = vmatmul.mubr.f32.vlgmr.msra.gmra.mrb[2].mxu1 %v8510_v8 }
  0xd2   :  { %7066 = vmatpush1.bf16.msra.mxu1 %v8467_v63  ;;  %1448 = vmatprep.mubr.f32.mxu1 %v10167_v11 }
  0xd3   :  { %7068 = vmatprep.subr.bf16.mxu1 %v8476_v38 }
  0xd6   :  { %7070 = vmatpush1.bf16.msra.mxu1 %v8478_v15 }
  0xd7   :  { %7072 = vmatprep.subr.bf16.mxu1 %v8493_v13 }
  0xda   :  { %7074 = vmatpush1.bf16.msra.mxu1 %v8523_v35 }
  0xdb   :  { %7076 = vmatprep.subr.bf16.mxu1 %v8545_v60 }
  0xde   :  { %7078 = vmatpush1.bf16.msra.mxu1 %v8556_v10 }
  0xdf   :  { %7080 = vmatprep.subr.bf16.mxu1 %v7079_v54 }
  0xe1   :  { %1452 = vmatmul.mubr.f32.vlgmr.msra.gmra.mrb[2].mxu1 %v1102_v1 }
  0xe2   :  { %7082 = vmatpush1.bf16.msra.mxu1 %v7081_v21  ;;  %1570 = vmatprep.mubr.f32.mxu1 %v10167_v11  ;;  %v1802_v21 = vand.u32 4294901760, %v8701_v61 }
  0xe3   :  { %7084 = vmatprep.subr.bf16.mxu1 %v7083_v36 }
  0xe6   :  { %7086 = vmatpush1.bf16.msra.mxu1 %v7085_v20 }
  0xe7   :  { %7088 = vmatprep.subr.bf16.mxu1 %v7087_v47 }
  0xea   :  { %7090 = vmatpush1.bf16.msra.mxu1 %v7089_v50  ;;  %v1803_v50 = vsub.f32 %v8701_v61, %v1802_v21 }
  0xeb   :  { %7092 = vmatprep.subr.bf16.mxu1 %v7091_v49 }
  0xee   :  { %7094 = vmatpush1.bf16.msra.mxu1 %v7093_v31  ;;  %v1804_v31 = vand.u32 4294901760, %v1803_v50 }
  0xef   :  { %7096 = vmatprep.subr.bf16.mxu1 %v8455_v17  ;;  %v122_v17 = vlaneseq }
  0xf1   :  { %1572 = vmatmul.mubr.f32.vlgmr.msra.gmra.mrb[2].mxu1 %v8473_v18  ;;  %v123_v16 = vshrl.u32 %v122_v17, 7 }
  0xf2   :  { %7098 = vmatpush1.bf16.msra.mxu1 %v8467_v63  ;;  %1658 = vmatprep.mubr.f32.mxu1 %v10167_v11  ;;  %v120_v63 = vld [vmem:[%s10193_s3] sm:$0x3] }
  0xf3   :  { %7100 = vmatprep.subr.bf16.mxu1 %v8476_v38  ;;  %v124_v39 = vsub.s32 0, %v123_v16  ;;  %v128_v38 = vsub.s32 1, %v123_v16 }
  0xf5   :  { %v125_v43 = vrot.slane %v120_v63, %v124_v39 }
  0xf6   :  { %7102 = vmatpush1.bf16.msra.mxu1 %v8478_v15  ;;  %v129_v15 = vrot.slane %v120_v63, %v128_v38  ;;  %v1816_v63 = vand.u32 4294901760, %v8705_v28 }
  0xf7   :  { %7104 = vmatprep.subr.bf16.mxu1 %v8493_v13 }
  0xfa   :  { %7106 = vmatpush1.bf16.msra.mxu1 %v8523_v35 }
  0xfb   :  { %7108 = vmatprep.subr.bf16.mxu1 %v8545_v60 }
  0xfe   :  { %7110 = vmatpush1.bf16.msra.mxu1 %v8556_v10  ;;  %v1692_v10 = vld [vmem:[%s10063_s6] sm:$0xff] }
  0xff   :  { %7111 = vmatprep.subr.bf16.mxu1 %v7939_v3  ;;  %v1710_v23 = vand.u32 4294901760, %v1692_v10 }
 0x101   :  { %1660 = vmatmul.mubr.f32.vlgmr.msra.gmra.mrb[2].mxu1 %v8473_v18  ;;  %v1003_v18 = vld [vmem:[%s10062_s5] sm:$0x3]  ;;  %v8697_v57 = vpack.c.bf16 %v1713_v6, %v1710_v23  ;;  %v8699_v46 = vsub.f32 %v1692_v10, %v1710_v23 }
 0x102   :  { %v1008_v19 = vrot.slane %v1003_v18, %v124_v39  ;;  %v1012_v29 = vrot.slane %v1003_v18, %v128_v38  ;;  %v1809_v39 = vand.u32 4294901760, %v8703_v32  ;;  %5867 = vmatprep.mubr.msk.f32.mxu1 %vm7941_vm1, %v10167_v11 }
 0x103   :  { %7113 = vmatpush3.bf16.msra.mxu1 %v8697_v57  ;;  %v1795_v54 = vand.u32 4294901760, %v8699_v46  ;;  %v7136_v56 = vpack.c.bf16 %v8701_v61, %v8699_v46 }
 0x104   :  { %7114 = vmatprep.subr.bf16.mxu1 %v7939_v3  ;;  %v7163_v26 = vpack.c.bf16 %v1816_v63, %v1809_v39 }
 0x105   :  { %v1796_v47 = vsub.f32 %v8699_v46, %v1795_v54  ;;  %v7160_v2 = vpack.c.bf16 %v1802_v21, %v1795_v54  ;;  %v2248_v46 = vld [vmem:[%s10065_s8 + $0x8] sm:$0xff] }
 0x107   :  { %7116 = vmatpush3.bf16.msra.mxu1 %v8709_v62  ;;  %v1797_v27 = vand.u32 4294901760, %v1796_v47 }
 0x108   :  { %7117 = vmatprep.subr.bf16.mxu1 %v7939_v3 }
 0x10b   :  { %7119 = vmatpush3.bf16.msra.mxu1 %v8722_v0 }
 0x10c   :  { %7120 = vmatprep.subr.bf16.mxu1 %v7939_v3 }
 0x174   :  { %v604_v4 = vpop.f32.mrb[0].mxu1  ;;  %v982_v13 = vpop.f32.mrb[0].mxu0 }
 0x175   :  { %v7759_v7 = vadd.f32 %v604_v4, %v125_v43  ;;  %v606_v12 = vpop.f32.mrb[1].mxu1  ;;  %v984_v33 = vpop.f32.mrb[1].mxu0  ;;  %v1822_v43 = vsub.f32 %v1696_v5, %v1722_v48 }
 0x176   :  { %v7761_v22 = vadd.f32 %v606_v12, %v129_v15  ;;  %v1829_v15 = vsub.f32 %v1697_v34, %v1725_v30  ;;  %v1810_v12 = vsub.f32 %v8703_v32, %v1809_v39  ;;  %v2269_v32 = vand.u32 4294901760, %v2248_v46 }
 0x177   :  { %v7760_v8 = vadd.f32 %v7759_v7, %v982_v13  ;;  %v1843_v13 = vsub.f32 %v1699_v40, %v1731_v51  ;;  %v7124_v7 = vpack.c.bf16 %v1804_v31, %v1797_v27 }
 0x178   :  { %v7762_v9 = vadd.f32 %v7761_v22, %v984_v33  ;;  %v1817_v22 = vsub.f32 %v8705_v28, %v1816_v63  ;;  %v1830_v18 = vand.u32 4294901760, %v1829_v15  ;;  %v7142_v23 = vpack.c.bf16 %v1829_v15, %v1822_v43 }
 0x179   :  { %v8823_v27 = vsub.f32 %v2248_v46, %v2269_v32 }
 0x1d4   :  { %v1661_v35 = vpop.f32.mrb[2].mxu1 }
 0x1d5   :  { %v7763_v41 = vadd.f32 %v1661_v35, %v1008_v19  ;;  %v1663_v42 = vpop.f32.mrb[3].mxu1  ;;  %v1818_v19 = vand.u32 4294901760, %v1817_v22 }
 0x1d6   :  { %v7764_v59 = vadd.f32 %v1663_v42, %v1012_v29 }
 0x1d7   :  { %v1666_v25 = vadd.f32 %v7763_v41, %v7760_v8  ;;  %v1811_v8 = vand.u32 4294901760, %v1810_v12  ;;  %v1831_v41 = vsub.f32 %v1829_v15, %v1830_v18 }
 0x1d9   :  { %v5376_v1 = vmul.f32 -1.442695, %v1666_v25  ;;  %v7127_v42 = vpack.c.bf16 %v1818_v19, %v1811_v8 }
 0x1db   :  { %7856 = vpow2.f32 %v5376_v1  ;;  %v1832_v1 = vand.u32 4294901760, %v1831_v41 }
 0x1e5   :  { %v7857_v55 = vpop.eup %7856 }
 0x1e6   :  { %v1670_v60 = vadd.f32 1.0, %v7857_v55 }
 0x1e8   :  { %7858 = vrcp.f32 %v1670_v60  ;;  %v1844_v60 = vand.u32 4294901760, %v1843_v13 }
 0x1f2   :  { %v7859_v44 = vpop.eup %7858 }
 0x1f3   :  { %v1673_v52 = vmul.f32 %v7859_v44, %v7764_v59  ;;  %v1676_v49 = vsub.f32 1.0, %v7859_v44 }
 0x1f5   :  { %v1674_v53 = vadd.f32 %v7762_v9, %v1673_v52  ;;  %v1823_v9 = vand.u32 4294901760, %v1822_v43 }
 0x1f7   :  { %7860 = vtanh.f32 %v1674_v53  ;;  %v1824_v35 = vsub.f32 %v1822_v43, %v1823_v9  ;;  %v7166_v37 = vpack.c.bf16 %v1830_v18, %v1823_v9  ;;  %v2358_v43 = vand.u32 4294901760, %v8823_v27 }
 0x1f9   :  { %v1825_v25 = vand.u32 4294901760, %v1824_v35  ;;  %v2359_v9 = vsub.f32 %v8823_v27, %v2358_v43 }
 0x1fb   :  { %v7130_v29 = vpack.c.bf16 %v1832_v1, %v1825_v25  ;;  %v2360_v41 = vand.u32 4294901760, %v2359_v9  ;;  %v2810_v9 = vld [vmem:[%s10067_s10 + $0x38] sm:$0xff] }
 0x201   :  { %v7861_v24 = vpop.eup %7860 }
 0x202   :  { %1678 = vrot.lane.b32.xlu0 %v7861_v24, %s7940_s21 }
 0x206   :  { %1682 = vrot.lane.b32.xlu0 %v8437_v58, %s7940_s21  ;;  %v1698_v58 = vld [vmem:[%s10063_s6 + $0x30] sm:$0xff] }
 0x207   :  { %v1728_v45 = vand.u32 4294901760, %v1698_v58 }
 0x209   :  { %v8734_v20 = vpack.c.bf16 %v1731_v51, %v1728_v45  ;;  %v1836_v4 = vsub.f32 %v1698_v58, %v1728_v45 }
 0x20b   :  { %7122 = vmatpush3.bf16.msra.mxu1 %v8734_v20  ;;  %v1837_v55 = vand.u32 4294901760, %v1836_v4  ;;  %v7145_v6 = vpack.c.bf16 %v1843_v13, %v1836_v4 }
 0x20c   :  { %7123 = vmatprep.subr.bf16.mxu1 %v7939_v3 }
 0x20d   :  { %v1838_v59 = vsub.f32 %v1836_v4, %v1837_v55  ;;  %v7169_v24 = vpack.c.bf16 %v1844_v60, %v1837_v55 }
 0x20f   :  { %v1839_v52 = vand.u32 4294901760, %v1838_v59 }
 0x274   :  { %v1679_v36 = vpop.permute.xlu0 %1678 }
 0x275   :  { %v1681_v17 = vmul.f32 %v1679_v36, %v1676_v49  ;;  %v2251_v36 = vld [vmem:[%s10065_s8 + $0x20] sm:$0xff] }
 0x276   :  { %v2278_v47 = vand.u32 4294901760, %v2251_v36 }
 0x278   :  { %v1683_v16 = vpop.permute.xlu0 %1682 }
 0x279   :  { %v1685_v38 = vmul.f32 %v7859_v44, %v1683_v16  ;;  %v1845_v44 = vsub.f32 %v1843_v13, %v1844_v60  ;;  %v2254_v16 = vld [vmem:[%s10065_s8 + $0x38] sm:$0xff]  ;;  %v8841_v13 = vsub.f32 %v2251_v36, %v2278_v47 }
 0x27a   :  { %v2287_v63 = vand.u32 4294901760, %v2254_v16 }
 0x27b   :  { %v1686_v33 = vadd.f32 %v1685_v38, %v1681_v17  ;;  %v1846_v53 = vand.u32 4294901760, %v1845_v44  ;;  %v2253_v17 = vld [vmem:[%s10065_s8 + $0x30] sm:$0xff] }
 0x27c   :  { %v2284_v39 = vand.u32 4294901760, %v2253_v17  ;;  %v8849_v22 = vsub.f32 %v2254_v16, %v2287_v63  ;;  %v2805_v16 = vld [vmem:[%s10067_s10 + $0x10] sm:$0xff] }
 0x27d   :  { %1688 = vrot.lane.b32.xlu1 %v1686_v33, %s7940_s21  ;;  %v7133_v10 = vpack.c.bf16 %v1846_v53, %v1839_v52 }
 0x27e   :  { %v8845_v12 = vpack.c.bf16 %v2287_v63, %v2284_v39  ;;  %v8847_v33 = vsub.f32 %v2253_v17, %v2284_v39  ;;  %v2806_v39 = vld [vmem:[%s10067_s10 + $0x18] sm:$0xff]  ;;  %v2828_v63 = vand.u32 4294901760, %v2805_v16 }
 0x2ef   :  { %v1689_v5 = vpop.permute.xlu1 %1688 }
 0x2f0   :  { %v1707_v34 = vsel %vm1015_vm0, %v1689_v5, 0  ;;  %1691 = vst.msk [vmem:[#allocation7] sm:$0xff] %vm1015_vm0, %v1689_v5 }
 0x2f1   :  { %v1782_v48 = vand.u32 4294901760, %v1707_v34 }
 0x2f3   :  { %v1783_v30 = vsub.f32 %v1707_v34, %v1782_v48 }
 0x2f5   :  { %v1784_v58 = vand.u32 4294901760, %v1783_v30 }
 0x2f7   :  { %v1785_v40 = vsub.f32 %v1783_v30, %v1784_v58 }
 0x2f9   :  { %v1786_v45 = vand.u32 4294901760, %v1785_v40 }
 0x2fb   :  { %5868 = vmatmul.mubr.f32.vlgmr.msra.gmra.mrb[4].mxu1 %v1786_v45 }
 0x2fc   :  { %7125 = vmatpush3.bf16.msra.mxu1 %v7124_v7  ;;  %5886 = vmatprep.mubr.msk.f32.mxu1 %vm7941_vm1, %v10167_v11 }
 0x2fd   :  { %7126 = vmatprep.subr.bf16.mxu1 %v7939_v3 }
 0x300   :  { %7128 = vmatpush3.bf16.msra.mxu1 %v7127_v42 }
 0x301   :  { %7129 = vmatprep.subr.bf16.mxu1 %v7939_v3 }
 0x304   :  { %7131 = vmatpush3.bf16.msra.mxu1 %v7130_v29  ;;  %v2379_v29 = vand.u32 4294901760, %v8841_v13 }
 0x305   :  { %7132 = vmatprep.subr.bf16.mxu1 %v7939_v3 }
 0x306   :  { %v2380_v52 = vsub.f32 %v8841_v13, %v2379_v29 }
 0x308   :  { %7134 = vmatpush3.bf16.msra.mxu1 %v7133_v10  ;;  %v2381_v10 = vand.u32 4294901760, %v2380_v52 }
 0x309   :  { %7135 = vmatprep.subr.bf16.mxu1 %v7939_v3 }
 0x30b   :  { %5887 = vmatmul.mubr.f32.vlgmr.msra.gmra.mrb[4].mxu1 %v1782_v48 }
 0x30c   :  { %7137 = vmatpush3.bf16.msra.mxu1 %v7136_v56  ;;  %5905 = vmatprep.mubr.msk.f32.mxu1 %vm7941_vm1, %v10167_v11 }
 0x30d   :  { %7138 = vmatprep.subr.bf16.mxu1 %v7939_v3 }
 0x310   :  { %7140 = vmatpush3.bf16.msra.mxu1 %v7139_v14  ;;  %v2393_v14 = vand.u32 4294901760, %v8847_v33 }
 0x311   :  { %7141 = vmatprep.subr.bf16.mxu1 %v7939_v3 }
 0x314   :  { %7143 = vmatpush3.bf16.msra.mxu1 %v7142_v23  ;;  %v2400_v23 = vand.u32 4294901760, %v8849_v22 }
 0x315   :  { %7144 = vmatprep.subr.bf16.mxu1 %v7939_v3 }
 0x316   :  { %v7241_v46 = vpack.c.bf16 %v2400_v23, %v2393_v14 }
 0x318   :  { %7146 = vmatpush3.bf16.msra.mxu1 %v7145_v6 }
 0x319   :  { %7147 = vmatprep.subr.bf16.mxu1 %v7939_v3 }
 0x31b   :  { %5906 = vmatmul.mubr.f32.vlgmr.msra.gmra.mrb[4].mxu1 %v1783_v30 }
 0x31c   :  { %7149 = vmatpush3.bf16.msra.mxu1 %v8697_v57  ;;  %5924 = vmatprep.mubr.msk.f32.mxu1 %vm7941_vm1, %v10167_v11 }
 0x31d   :  { %7150 = vmatprep.subr.bf16.mxu1 %v7939_v3 }
 0x320   :  { %7152 = vmatpush3.bf16.msra.mxu1 %v8709_v62 }
 0x321   :  { %7153 = vmatprep.subr.bf16.mxu1 %v7939_v3 }
 0x324   :  { %7155 = vmatpush3.bf16.msra.mxu1 %v8722_v0 }
 0x325   :  { %7156 = vmatprep.subr.bf16.mxu1 %v7939_v3 }
 0x328   :  { %7158 = vmatpush3.bf16.msra.mxu1 %v8734_v20 }
 0x329   :  { %7159 = vmatprep.subr.bf16.mxu1 %v7939_v3 }
 0x32b   :  { %5925 = vmatmul.mubr.f32.vlgmr.msra.gmra.mrb[4].mxu1 %v1784_v58  ;;  %v7217_v58 = vpack.c.bf16 %v8849_v22, %v8847_v33 }
 0x32c   :  { %7161 = vmatpush3.bf16.msra.mxu1 %v7160_v2  ;;  %5943 = vmatprep.mubr.msk.f32.mxu1 %vm7941_vm1, %v10167_v11  ;;  %v2394_v2 = vsub.f32 %v8847_v33, %v2393_v14 }
 0x32d   :  { %7162 = vmatprep.subr.bf16.mxu1 %v7939_v3 }
 0x330   :  { %7164 = vmatpush3.bf16.msra.mxu1 %v7163_v26  ;;  %v2401_v26 = vsub.f32 %v8849_v22, %v2400_v23 }
 0x331   :  { %7165 = vmatprep.subr.bf16.mxu1 %v7939_v3 }
 0x334   :  { %7167 = vmatpush3.bf16.msra.mxu1 %v7166_v37  ;;  %v2395_v37 = vand.u32 4294901760, %v2394_v2 }
 0x335   :  { %7168 = vmatprep.subr.bf16.mxu1 %v7939_v3 }
 0x338   :  { %7170 = vmatpush3.bf16.msra.mxu1 %v7169_v24  ;;  %v2402_v24 = vand.u32 4294901760, %v2401_v26 }
 0x339   :  { %7171 = vmatprep.subr.bf16.mxu1 %v7939_v3 }
 0x33a   :  { %v7205_v5 = vpack.c.bf16 %v2402_v24, %v2395_v37 }
 0x33b   :  { %5944 = vmatmul.mubr.f32.vlgmr.msra.gmra.mrb[4].mxu1 %v1782_v48 }
 0x33c   :  { %7173 = vmatpush3.bf16.msra.mxu1 %v8697_v57  ;;  %5962 = vmatprep.mubr.msk.f32.mxu1 %vm7941_vm1, %v10167_v11  ;;  %v2247_v57 = vld [vmem:[%s10065_s8] sm:$0xff] }
 0x33d   :  { %7174 = vmatprep.subr.bf16.mxu1 %v7939_v3  ;;  %v2266_v61 = vand.u32 4294901760, %v2247_v57 }
 0x33f   :  { %v8801_v28 = vpack.c.bf16 %v2269_v32, %v2266_v61  ;;  %v8821_v49 = vsub.f32 %v2247_v57, %v2266_v61  ;;  %v5377_v61 = vld [vmem:[%s10064_s7] ss:$0 sm:$0xff] }
 0x340   :  { %7176 = vmatpush3.bf16.msra.mxu1 %v8709_v62  ;;  %v2249_v62 = vld [vmem:[%s10065_s8 + $0x10] sm:$0xff] }
 0x341   :  { %7177 = vmatprep.subr.bf16.mxu1 %v7939_v3  ;;  %7185 = vmatpush3.bf16.msra.mxu0 %v8801_v28  ;;  %v2272_v51 = vand.u32 4294901760, %v2249_v62  ;;  %v2351_v38 = vand.u32 4294901760, %v8821_v49  ;;  %v7208_v34 = vpack.c.bf16 %v8823_v27, %v8821_v49 }
 0x342   :  { %7186 = vmatprep.subr.bf16.mxu0 %v7939_v3 }
 0x343   :  { %v8837_v15 = vsub.f32 %v2249_v62, %v2272_v51  ;;  %v2352_v8 = vsub.f32 %v8821_v49, %v2351_v38  ;;  %v7232_v40 = vpack.c.bf16 %v2358_v43, %v2351_v38  ;;  %v2831_v38 = vand.u32 4294901760, %v2806_v39 }
 0x344   :  { %7179 = vmatpush3.bf16.msra.mxu1 %v8722_v0  ;;  %v2250_v0 = vld [vmem:[%s10065_s8 + $0x18] sm:$0xff] }
 0x345   :  { %7180 = vmatprep.subr.bf16.mxu1 %v7939_v3  ;;  %v2275_v54 = vand.u32 4294901760, %v2250_v0  ;;  %v2353_v18 = vand.u32 4294901760, %v2352_v8  ;;  %v2365_v19 = vand.u32 4294901760, %v8837_v15  ;;  %v8935_v43 = vpack.c.bf16 %v2831_v38, %v2828_v63  ;;  %v2809_v8 = vld [vmem:[%s10067_s10 + $0x30] sm:$0xff] }
 0x347   :  { %v8811_v21 = vpack.c.bf16 %v2275_v54, %v2272_v51  ;;  %v8839_v4 = vsub.f32 %v2250_v0, %v2275_v54  ;;  %v2366_v42 = vsub.f32 %v8837_v15, %v2365_v19  ;;  %v7196_v1 = vpack.c.bf16 %v2360_v41, %v2353_v18 }
 0x348   :  { %7182 = vmatpush3.bf16.msra.mxu1 %v8734_v20  ;;  %v2252_v20 = vld [vmem:[%s10065_s8 + $0x28] sm:$0xff]  ;;  %v2840_v18 = vand.u32 4294901760, %v2809_v8 }
 0x349   :  { %7255 = vmatprep.subr.bf16.mxu1 %v7939_v3  ;;  %7188 = vmatpush3.bf16.msra.mxu0 %v8811_v21  ;;  %v2281_v50 = vand.u32 4294901760, %v2252_v20  ;;  %v2372_v35 = vand.u32 4294901760, %v8839_v4  ;;  %v2367_v55 = vand.u32 4294901760, %v2366_v42  ;;  %v8961_v42 = vsub.f32 %v2805_v16, %v2828_v63  ;;  %v3361_v16 = vld [vmem:[%s10069_s12 + $0x10] sm:$0xff] }
 0x34a   :  { %7189 = vmatprep.subr.bf16.mxu0 %v7939_v3 }
 0x34b   :  { %5963 = vmatmul.mubr.f32.vlgmr.msra.gmra.mrb[4].mxu1 %v1782_v48  ;;  %v8825_v31 = vpack.c.bf16 %v2281_v50, %v2278_v47  ;;  %v8843_v7 = vsub.f32 %v2252_v20, %v2281_v50  ;;  %v2373_v25 = vsub.f32 %v8839_v4, %v2372_v35  ;;  %v7211_v48 = vpack.c.bf16 %v8839_v4, %v8837_v15  ;;  %v2807_v15 = vld [vmem:[%s10067_s10 + $0x20] sm:$0xff]  ;;  %v2808_v4 = vld [vmem:[%s10067_s10 + $0x28] sm:$0xff] }
 0x34c   :  { %6095 = vmatprep.mubr.msk.f32.mxu1 %vm7941_vm1, %v10167_v11  ;;  %v7235_v45 = vpack.c.bf16 %v2372_v35, %v2365_v19  ;;  %v2843_v19 = vand.u32 4294901760, %v2810_v9 }
 0x34d   :  { %7191 = vmatpush3.bf16.msra.mxu0 %v8825_v31  ;;  %v2374_v60 = vand.u32 4294901760, %v2373_v25  ;;  %v2386_v59 = vand.u32 4294901760, %v8843_v7  ;;  %v7214_v30 = vpack.c.bf16 %v8843_v7, %v8841_v13  ;;  %v2834_v13 = vand.u32 4294901760, %v2807_v15 }
 0x34e   :  { %7192 = vmatprep.subr.bf16.mxu0 %v7939_v3  ;;  %v8963_v25 = vsub.f32 %v2806_v39, %v2831_v38  ;;  %v3362_v38 = vld [vmem:[%s10069_s12 + $0x18] sm:$0xff] }
 0x34f   :  { %v7199_v44 = vpack.c.bf16 %v2374_v60, %v2367_v55  ;;  %v2387_v53 = vsub.f32 %v8843_v7, %v2386_v59  ;;  %v7238_v57 = vpack.c.bf16 %v2386_v59, %v2379_v29  ;;  %v2837_v7 = vand.u32 4294901760, %v2808_v4 }
 0x350   :  { %v8969_v60 = vpack.c.bf16 %v2843_v19, %v2840_v18  ;;  %v8971_v29 = vsub.f32 %v2809_v8, %v2840_v18  ;;  %v8973_v59 = vsub.f32 %v2810_v9, %v2843_v19  ;;  %v3365_v18 = vld [vmem:[%s10069_s12 + $0x30] sm:$0xff]  ;;  %v3366_v19 = vld [vmem:[%s10069_s12 + $0x38] sm:$0xff] }
 0x351   :  { %7194 = vmatpush3.bf16.msra.mxu0 %v8845_v12  ;;  %v2388_v56 = vand.u32 4294901760, %v2387_v53  ;;  %v8949_v22 = vpack.c.bf16 %v2837_v7, %v2834_v13  ;;  %v8967_v55 = vsub.f32 %v2808_v4, %v2837_v7  ;;  %v3363_v4 = vld [vmem:[%s10069_s12 + $0x20] sm:$0xff]  ;;  %v3392_v7 = vand.u32 4294901760, %v3362_v38 }
 0x352   :  { %7195 = vmatprep.subr.bf16.mxu0 %v7939_v3  ;;  %v3395_v8 = vand.u32 4294901760, %v3363_v4 }
 0x353   :  { %v7202_v6 = vpack.c.bf16 %v2388_v56, %v2381_v10  ;;  %v2921_v10 = vand.u32 4294901760, %v8961_v42  ;;  %v2928_v56 = vand.u32 4294901760, %v8963_v25 }
 0x355   :  { %v2922_v23 = vsub.f32 %v8961_v42, %v2921_v10 }
 0x357   :  { %v2923_v26 = vand.u32 4294901760, %v2922_v23  ;;  %v9057_v23 = vsub.f32 %v3363_v4, %v3395_v8 }
 0x41e   :  { %v2242_v32 = vpop.f32.mrb[4].mxu1 }
 0x41f   :  { %v7765_v62 = vadd.f32 %v5377_v61, %v2242_v32  ;;  %v5964_v0 = vpop.f32.mrb[5].mxu1 }
 0x421   :  { %v2246_v51 = vmax.f32 %v7765_v62, 0.0 }
 0x423   :  { %v2263_v54 = vsel %vm1015_vm0, %v2246_v51, 0 }
 0x424   :  { %v2338_v36 = vand.u32 4294901760, %v2263_v54 }
 0x426   :  { %v2339_v20 = vsub.f32 %v2263_v54, %v2338_v36 }
 0x428   :  { %v2340_v47 = vand.u32 4294901760, %v2339_v20 }
 0x42a   :  { %v2341_v50 = vsub.f32 %v2339_v20, %v2340_v47 }
 0x42c   :  { %v2342_v49 = vand.u32 4294901760, %v2341_v50 }
 0x42e   :  { %5982 = vmatmul.mubr.f32.vlgmr.msra.gmra.mrb[2].mxu0 %v2342_v49  ;;  %v9009_v49 = vpack.c.bf16 %v2928_v56, %v2921_v10  ;;  %v3368_v10 = vld [vmem:[%s10069_s12 + $0x48] sm:$0xff] }
 0x42f   :  { %7197 = vmatpush3.bf16.msra.mxu0 %v7196_v1  ;;  %6000 = vmatprep.mubr.msk.f32.mxu0 %vm7941_vm1, %v10167_v11  ;;  %v8965_v1 = vsub.f32 %v2807_v15, %v2834_v13  ;;  %v3389_v15 = vand.u32 4294901760, %v3361_v16  ;;  %v3364_v13 = vld [vmem:[%s10069_s12 + $0x28] sm:$0xff] }
 0x430   :  { %7198 = vmatprep.subr.bf16.mxu0 %v7939_v3  ;;  %v3398_v9 = vand.u32 4294901760, %v3364_v13 }
 0x431   :  { %v2935_v24 = vand.u32 4294901760, %v8965_v1 }
 0x433   :  { %7200 = vmatpush3.bf16.msra.mxu0 %v7199_v44 }
 0x434   :  { %7201 = vmatprep.subr.bf16.mxu0 %v7939_v3 }
 0x437   :  { %7203 = vmatpush3.bf16.msra.mxu0 %v7202_v6  ;;  %v2929_v6 = vsub.f32 %v8963_v25, %v2928_v56  ;;  %v9053_v56 = vpack.c.bf16 %v3392_v7, %v3389_v15 }
 0x438   :  { %7204 = vmatprep.subr.bf16.mxu0 %v7939_v3 }
 0x439   :  { %v2930_v37 = vand.u32 4294901760, %v2929_v6  ;;  %v9060_v6 = vsub.f32 %v3364_v13, %v3398_v9 }
 0x43b   :  { %7206 = vmatpush3.bf16.msra.mxu0 %v7205_v5  ;;  %v2942_v5 = vand.u32 4294901760, %v8967_v55 }
 0x43c   :  { %7207 = vmatprep.subr.bf16.mxu0 %v7939_v3 }
 0x43e   :  { %6001 = vmatmul.mubr.f32.vlgmr.msra.gmra.mrb[2].mxu0 %v2338_v36 }
 0x43f   :  { %7209 = vmatpush3.bf16.msra.mxu0 %v7208_v34  ;;  %6019 = vmatprep.mubr.msk.f32.mxu0 %vm7941_vm1, %v10167_v11  ;;  %v8987_v34 = vpack.c.bf16 %v2930_v37, %v2923_v26  ;;  %v3401_v26 = vand.u32 4294901760, %v3365_v18  ;;  %v3404_v37 = vand.u32 4294901760, %v3366_v19 }
 0x440   :  { %7210 = vmatprep.subr.bf16.mxu0 %v7939_v3 }
 0x443   :  { %7212 = vmatpush3.bf16.msra.mxu0 %v7211_v48  ;;  %v2936_v48 = vsub.f32 %v8965_v1, %v2935_v24 }
 0x444   :  { %7213 = vmatprep.subr.bf16.mxu0 %v7939_v3 }
 0x447   :  { %7215 = vmatpush3.bf16.msra.mxu0 %v7214_v30  ;;  %v2943_v30 = vsub.f32 %v8967_v55, %v2942_v5 }
 0x448   :  { %7216 = vmatprep.subr.bf16.mxu0 %v7939_v3 }
 0x44b   :  { %7218 = vmatpush3.bf16.msra.mxu0 %v7217_v58  ;;  %v2937_v58 = vand.u32 4294901760, %v2936_v48  ;;  %v9063_v48 = vsub.f32 %v3365_v18, %v3401_v26 }
 0x44c   :  { %7219 = vmatprep.subr.bf16.mxu0 %v7939_v3 }
 0x44e   :  { %6020 = vmatmul.mubr.f32.vlgmr.msra.gmra.mrb[2].mxu0 %v2339_v20  ;;  %v7286_v20 = vpack.c.bf16 %v8967_v55, %v8965_v1 }
 0x44f   :  { %7221 = vmatpush3.bf16.msra.mxu0 %v8801_v28  ;;  %6038 = vmatprep.mubr.msk.f32.mxu0 %vm7941_vm1, %v10167_v11 }
 0x450   :  { %7222 = vmatprep.subr.bf16.mxu0 %v7939_v3 }
 0x453   :  { %7224 = vmatpush3.bf16.msra.mxu0 %v8811_v21 }
 0x454   :  { %7225 = vmatprep.subr.bf16.mxu0 %v7939_v3 }
 0x457   :  { %7227 = vmatpush3.bf16.msra.mxu0 %v8825_v31 }
 0x458   :  { %7228 = vmatprep.subr.bf16.mxu0 %v7939_v3 }
 0x45b   :  { %7230 = vmatpush3.bf16.msra.mxu0 %v8845_v12 }
 0x45c   :  { %7231 = vmatprep.subr.bf16.mxu0 %v7939_v3 }
 0x45e   :  { %6039 = vmatmul.mubr.f32.vlgmr.msra.gmra.mrb[2].mxu0 %v2340_v47  ;;  %v7289_v47 = vpack.c.bf16 %v8973_v59, %v8971_v29 }
 0x45f   :  { %7233 = vmatpush3.bf16.msra.mxu0 %v7232_v40  ;;  %6057 = vmatprep.mubr.msk.f32.mxu0 %vm7941_vm1, %v10167_v11  ;;  %v2944_v40 = vand.u32 4294901760, %v2943_v30  ;;  %v9065_v30 = vsub.f32 %v3366_v19, %v3404_v37 }
 0x460   :  { %7234 = vmatprep.subr.bf16.mxu0 %v7939_v3 }
 0x463   :  { %7236 = vmatpush3.bf16.msra.mxu0 %v7235_v45  ;;  %v2949_v45 = vand.u32 4294901760, %v8971_v29 }
 0x464   :  { %7237 = vmatprep.subr.bf16.mxu0 %v7939_v3 }
 0x465   :  { %v2950_v61 = vsub.f32 %v8971_v29, %v2949_v45  ;;  %v3373_v29 = vld [vmem:[%s10069_s12 + $0x70] sm:$0xff] }
 0x467   :  { %7239 = vmatpush3.bf16.msra.mxu0 %v7238_v57  ;;  %v2956_v57 = vand.u32 4294901760, %v8973_v59  ;;  %v2951_v62 = vand.u32 4294901760, %v2950_v61 }
 0x468   :  { %7240 = vmatprep.subr.bf16.mxu0 %v7939_v3 }
 0x469   :  { %v2957_v32 = vsub.f32 %v8973_v59, %v2956_v57  ;;  %v3374_v59 = vld [vmem:[%s10069_s12 + $0x78] sm:$0xff] }
 0x46b   :  { %7242 = vmatpush3.bf16.msra.mxu0 %v7241_v46  ;;  %v8993_v46 = vpack.c.bf16 %v2944_v40, %v2937_v58  ;;  %v2958_v0 = vand.u32 4294901760, %v2957_v32  ;;  %v5378_v32 = vld [vmem:[%s10066_s9] ss:$0 sm:$0xff] }
 0x46c   :  { %7243 = vmatprep.subr.bf16.mxu0 %v7939_v3 }
 0x46d   :  { %v8997_v51 = vpack.c.bf16 %v2958_v0, %v2951_v62 }
 0x46e   :  { %6058 = vmatmul.mubr.f32.vlgmr.msra.gmra.mrb[2].mxu0 %v2338_v36 }
 0x46f   :  { %7245 = vmatpush3.bf16.msra.mxu0 %v8801_v28  ;;  %6076 = vmatprep.mubr.msk.f32.mxu0 %vm7941_vm1, %v10167_v11  ;;  %v2803_v28 = vld [vmem:[%s10067_s10] sm:$0xff] }
 0x470   :  { %7246 = vmatprep.subr.bf16.mxu0 %v7939_v3  ;;  %v2822_v27 = vand.u32 4294901760, %v2803_v28 }
 0x473   :  { %7248 = vmatpush3.bf16.msra.mxu0 %v8811_v21  ;;  %v2804_v21 = vld [vmem:[%s10067_s10 + $0x8] sm:$0xff] }
 0x474   :  { %7249 = vmatprep.subr.bf16.mxu0 %v7939_v3 }
 0x477   :  { %7251 = vmatpush3.bf16.msra.mxu0 %v8825_v31  ;;  %v2825_v31 = vand.u32 4294901760, %v2804_v21 }
 0x478   :  { %7252 = vmatprep.subr.bf16.mxu0 %v7939_v3 }
 0x479   :  { %v8925_v17 = vpack.c.bf16 %v2825_v31, %v2822_v27  ;;  %v8947_v33 = vsub.f32 %v2804_v21, %v2825_v31  ;;  %v9013_v21 = vpack.c.bf16 %v2956_v57, %v2949_v45  ;;  %v3360_v31 = vld [vmem:[%s10069_s12 + $0x8] sm:$0xff]  ;;  %v9072_v45 = vpack.c.bf16 %v3398_v9, %v3395_v8 }
 0x47a   :  { %v3386_v63 = vand.u32 4294901760, %v3360_v31  ;;  %v9076_v57 = vpack.c.bf16 %v3404_v37, %v3401_v26  ;;  %v10119_v26 = vand.u32 4294901760, %v9057_v23  ;;  %v10118_v37 = vand.u32 4294901760, %v9060_v6 }
 0x47b   :  { %7254 = vmatpush3.bf16.msra.mxu0 %v8845_v12  ;;  %7257 = vmatpush3.bf16.msra.mxu1 %v8925_v17  ;;  %v8945_v12 = vsub.f32 %v2803_v28, %v2822_v27  ;;  %v2914_v41 = vand.u32 4294901760, %v8947_v33  ;;  %v9011_v28 = vpack.c.bf16 %v2942_v5, %v2935_v24  ;;  %v3359_v27 = vld [vmem:[%s10069_s12] sm:$0xff]  ;;  %v3410_v5 = vand.u32 4294901760, %v3368_v10 }
 0x47c   :  { %7327 = vmatprep.subr.bf16.mxu0 %v7939_v3  ;;  %7258 = vmatprep.subr.bf16.mxu1 %v7939_v3  ;;  %v3383_v39 = vand.u32 4294901760, %v3359_v27 }
 0x47d   :  { %v2907_v35 = vand.u32 4294901760, %v8945_v12  ;;  %v2915_v52 = vsub.f32 %v8947_v33, %v2914_v41  ;;  %v7280_v54 = vpack.c.bf16 %v8947_v33, %v8945_v12  ;;  %v9069_v40 = vsub.f32 %v3368_v10, %v3410_v5 }
 0x47e   :  { %6077 = vmatmul.mubr.f32.vlgmr.msra.gmra.mrb[2].mxu0 %v2338_v36  ;;  %v7283_v36 = vpack.c.bf16 %v8963_v25, %v8961_v42  ;;  %v3371_v42 = vld [vmem:[%s10069_s12 + $0x60] sm:$0xff]  ;;  %v3372_v25 = vld [vmem:[%s10069_s12 + $0x68] sm:$0xff] }
 0x47f   :  { %6225 = vmatprep.mubr.msk.f32.mxu0 %vm7941_vm1, %v10167_v11  ;;  %7260 = vmatpush3.bf16.msra.mxu1 %v8935_v43  ;;  %v2908_v44 = vsub.f32 %v8945_v12, %v2907_v35  ;;  %v2916_v14 = vand.u32 4294901760, %v2915_v52  ;;  %v9007_v50 = vpack.c.bf16 %v2914_v41, %v2907_v35  ;;  %v3367_v35 = vld [vmem:[%s10069_s12 + $0x40] sm:$0xff]  ;;  %v9042_v41 = vpack.c.bf16 %v3386_v63, %v3383_v39 }
 0x480   :  { %7261 = vmatprep.subr.bf16.mxu1 %v7939_v3  ;;  %v9046_v52 = vsub.f32 %v3360_v31, %v3386_v63  ;;  %v3407_v24 = vand.u32 4294901760, %v3367_v35  ;;  %v3419_v1 = vand.u32 4294901760, %v3371_v42  ;;  %v3422_v55 = vand.u32 4294901760, %v3372_v25 }
 0x481   :  { %v2909_v53 = vand.u32 4294901760, %v2908_v44  ;;  %v9044_v44 = vsub.f32 %v3359_v27, %v3383_v39  ;;  %7329 = vmatpush3.bf16.msra.mxu0 %v9042_v41 }
 0x482   :  { %7330 = vmatprep.subr.bf16.mxu0 %v7939_v3  ;;  %v9067_v58 = vsub.f32 %v3367_v35, %v3407_v24  ;;  %v9080_v61 = vpack.c.bf16 %v3410_v5, %v3407_v24 }
 0x483   :  { %7263 = vmatpush3.bf16.msra.mxu1 %v8949_v22  ;;  %v8983_v2 = vpack.c.bf16 %v2916_v14, %v2909_v53  ;;  %v9048_v53 = vsub.f32 %v3361_v16, %v3389_v15  ;;  %v9055_v14 = vsub.f32 %v3362_v38, %v3392_v7 }
 0x484   :  { %7264 = vmatprep.subr.bf16.mxu1 %v7939_v3 }
 0x485   :  { %7332 = vmatpush3.bf16.msra.mxu0 %v9053_v56  ;;  %v3490_v9 = vand.u32 4294901760, %v9048_v53  ;;  %v3497_v18 = vand.u32 4294901760, %v9055_v14 }
 0x486   :  { %7333 = vmatprep.subr.bf16.mxu0 %v7939_v3 }
 0x487   :  { %7266 = vmatpush3.bf16.msra.mxu1 %v8969_v60  ;;  %v3491_v35 = vsub.f32 %v9048_v53, %v3490_v9  ;;  %v3498_v10 = vsub.f32 %v9055_v14, %v3497_v18 }
 0x488   :  { %7267 = vmatprep.subr.bf16.mxu1 %v7939_v3 }
 0x489   :  { %7335 = vmatpush3.bf16.msra.mxu0 %v9072_v45  ;;  %v3492_v24 = vand.u32 4294901760, %v3491_v35  ;;  %v3499_v5 = vand.u32 4294901760, %v3498_v10 }
 0x48a   :  { %7336 = vmatprep.subr.bf16.mxu0 %v7939_v3 }
 0x48d   :  { %7338 = vmatpush3.bf16.msra.mxu0 %v9076_v57 }
 0x48e   :  { %7339 = vmatprep.subr.bf16.mxu0 %v7939_v3 }
 0x491   :  { %7341 = vmatpush3.bf16.msra.mxu0 %v9080_v61 }
 0x492   :  { %7342 = vmatprep.subr.bf16.mxu0 %v7939_v3 }
 0x551   :  { %v2798_v62 = vpop.f32.mrb[2].mxu0 }
 0x552   :  { %v7766_v0 = vadd.f32 %v5378_v32, %v2798_v62  ;;  %v6078_v27 = vpop.f32.mrb[3].mxu0  ;;  %v3505_v32 = vsub.f32 %v9057_v23, %v10119_v26  ;;  %v3512_v62 = vsub.f32 %v9060_v6, %v10118_v37 }
 0x554   :  { %v2802_v31 = vmax.f32 %v7766_v0, 0.0  ;;  %v7355_v0 = vpack.c.bf16 %v3499_v5, %v3492_v24  ;;  %v3506_v27 = vand.u32 4294901760, %v3505_v32 }
 0x556   :  { %v2819_v16 = vsel %vm1015_vm0, %v2802_v31, 0  ;;  %v3513_v31 = vand.u32 4294901760, %v3512_v62 }
 0x557   :  { %v2894_v39 = vand.u32 4294901760, %v2819_v16 }
 0x559   :  { %v2895_v63 = vsub.f32 %v2819_v16, %v2894_v39  ;;  %v10117_v16 = vand.u32 4294901760, %v9063_v48 }
 0x55b   :  { %v2896_v38 = vand.u32 4294901760, %v2895_v63 }
 0x55d   :  { %v2897_v15 = vsub.f32 %v2895_v63, %v2896_v38 }
 0x55f   :  { %v2898_v4 = vand.u32 4294901760, %v2897_v15 }
 0x561   :  { %6096 = vmatmul.mubr.f32.vlgmr.msra.gmra.mrb[6].mxu1 %v2898_v4 }
 0x562   :  { %7269 = vmatpush3.bf16.msra.mxu1 %v8983_v2  ;;  %6114 = vmatprep.mubr.msk.f32.mxu1 %vm7941_vm1, %v10167_v11  ;;  %v3425_v2 = vand.u32 4294901760, %v3373_v29 }
 0x563   :  { %7270 = vmatprep.subr.bf16.mxu1 %v7939_v3 }
 0x566   :  { %7272 = vmatpush3.bf16.msra.mxu1 %v8987_v34  ;;  %v3428_v34 = vand.u32 4294901760, %v3374_v59 }
 0x567   :  { %7273 = vmatprep.subr.bf16.mxu1 %v7939_v3 }
 0x568   :  { %v9196_v13 = vsub.f32 %v3374_v59, %v3428_v34 }
 0x56a   :  { %7275 = vmatpush3.bf16.msra.mxu1 %v8993_v46  ;;  %v3476_v46 = vand.u32 4294901760, %v9044_v44 }
 0x56b   :  { %7276 = vmatprep.subr.bf16.mxu1 %v7939_v3 }
 0x56e   :  { %7278 = vmatpush3.bf16.msra.mxu1 %v8997_v51  ;;  %v3483_v51 = vand.u32 4294901760, %v9046_v52 }
 0x56f   :  { %7279 = vmatprep.subr.bf16.mxu1 %v7939_v3 }
 0x571   :  { %6115 = vmatmul.mubr.f32.vlgmr.msra.gmra.mrb[6].mxu1 %v2894_v39 }
 0x572   :  { %7281 = vmatpush3.bf16.msra.mxu1 %v7280_v54  ;;  %6133 = vmatprep.mubr.msk.f32.mxu1 %vm7941_vm1, %v10167_v11  ;;  %v9177_v54 = vpack.c.bf16 %v3428_v34, %v3425_v2 }
 0x573   :  { %7282 = vmatprep.subr.bf16.mxu1 %v7939_v3 }
 0x576   :  { %7284 = vmatpush3.bf16.msra.mxu1 %v7283_v36  ;;  %v3477_v36 = vsub.f32 %v9044_v44, %v3476_v46 }
 0x577   :  { %7285 = vmatprep.subr.bf16.mxu1 %v7939_v3 }
 0x578   :  { %v3478_v7 = vand.u32 4294901760, %v3477_v36 }
 0x57a   :  { %7287 = vmatpush3.bf16.msra.mxu1 %v7286_v20  ;;  %v3484_v20 = vsub.f32 %v9046_v52, %v3483_v51 }
 0x57b   :  { %7288 = vmatprep.subr.bf16.mxu1 %v7939_v3 }
 0x57c   :  { %v3485_v8 = vand.u32 4294901760, %v3484_v20 }
 0x57e   :  { %7290 = vmatpush3.bf16.msra.mxu1 %v7289_v47  ;;  %v9201_v19 = vpack.c.bf16 %v3485_v8, %v3478_v7 }
 0x57f   :  { %7291 = vmatprep.subr.bf16.mxu1 %v7939_v3 }
 0x581   :  { %6134 = vmatmul.mubr.f32.vlgmr.msra.gmra.mrb[6].mxu1 %v2895_v63  ;;  %v7358_v63 = vpack.c.bf16 %v3513_v31, %v3506_v27  ;;  %v10108_v31 = vand.u32 4294901760, %v9196_v13 }
 0x582   :  { %7293 = vmatpush3.bf16.msra.mxu1 %v8925_v17  ;;  %6152 = vmatprep.mubr.msk.f32.mxu1 %vm7941_vm1, %v10167_v11 }
 0x583   :  { %7294 = vmatprep.subr.bf16.mxu1 %v7939_v3 }
 0x586   :  { %7296 = vmatpush3.bf16.msra.mxu1 %v8935_v43 }
 0x587   :  { %7297 = vmatprep.subr.bf16.mxu1 %v7939_v3 }
 0x58a   :  { %7299 = vmatpush3.bf16.msra.mxu1 %v8949_v22 }
 0x58b   :  { %7300 = vmatprep.subr.bf16.mxu1 %v7939_v3 }
 0x58e   :  { %7302 = vmatpush3.bf16.msra.mxu1 %v8969_v60 }
 0x58f   :  { %7303 = vmatprep.subr.bf16.mxu1 %v7939_v3 }
 0x591   :  { %6153 = vmatmul.mubr.f32.vlgmr.msra.gmra.mrb[6].mxu1 %v2896_v38  ;;  %v3519_v38 = vsub.f32 %v9063_v48, %v10117_v16 }
 0x592   :  { %7305 = vmatpush3.bf16.msra.mxu1 %v9007_v50  ;;  %6171 = vmatprep.mubr.msk.f32.mxu1 %vm7941_vm1, %v10167_v11 }
 0x593   :  { %7306 = vmatprep.subr.bf16.mxu1 %v7939_v3  ;;  %v3520_v4 = vand.u32 4294901760, %v3519_v38 }
 0x596   :  { %7308 = vmatpush3.bf16.msra.mxu1 %v9009_v49  ;;  %v9189_v49 = vsub.f32 %v3371_v42, %v3419_v1 }
 0x597   :  { %7309 = vmatprep.subr.bf16.mxu1 %v7939_v3 }
 0x598   :  { %v10111_v8 = vand.u32 4294901760, %v9189_v49 }
 0x59a   :  { %7311 = vmatpush3.bf16.msra.mxu1 %v9011_v28  ;;  %v9191_v28 = vsub.f32 %v3372_v25, %v3422_v55  ;;  %v3561_v24 = vsub.f32 %v9189_v49, %v10111_v8 }
 0x59b   :  { %7312 = vmatprep.subr.bf16.mxu1 %v7939_v3 }
 0x59c   :  { %v10110_v35 = vand.u32 4294901760, %v9191_v28  ;;  %v3562_v32 = vand.u32 4294901760, %v3561_v24  ;;  %v7394_v24 = vpack.c.bf16 %v9191_v28, %v9189_v49 }
 0x59e   :  { %7314 = vmatpush3.bf16.msra.mxu1 %v9013_v21  ;;  %v9194_v21 = vsub.f32 %v3373_v29, %v3425_v2  ;;  %v3568_v5 = vsub.f32 %v9191_v28, %v10110_v35 }
 0x59f   :  { %7315 = vmatprep.subr.bf16.mxu1 %v7939_v3 }
 0x5a0   :  { %v3569_v62 = vand.u32 4294901760, %v3568_v5  ;;  %v10109_v27 = vand.u32 4294901760, %v9194_v21  ;;  %v7397_v5 = vpack.c.bf16 %v9196_v13, %v9194_v21 }
 0x5a1   :  { %6172 = vmatmul.mubr.f32.vlgmr.msra.gmra.mrb[6].mxu1 %v2894_v39 }
 0x5a2   :  { %7317 = vmatpush3.bf16.msra.mxu1 %v8925_v17  ;;  %6190 = vmatprep.mubr.msk.f32.mxu1 %vm7941_vm1, %v10167_v11  ;;  %v3369_v17 = vld [vmem:[%s10069_s12 + $0x50] sm:$0xff]  ;;  %v7370_v38 = vpack.c.bf16 %v3569_v62, %v3562_v32  ;;  %v5379_v32 = vld [vmem:[%s10068_s11] ss:$0 sm:$0xff] }
 0x5a3   :  { %7318 = vmatprep.subr.bf16.mxu1 %v7939_v3  ;;  %v3413_v12 = vand.u32 4294901760, %v3369_v17 }
 0x5a5   :  { %v9185_v47 = vsub.f32 %v3369_v17, %v3413_v12 }
 0x5a6   :  { %7320 = vmatpush3.bf16.msra.mxu1 %v8935_v43  ;;  %v3370_v43 = vld [vmem:[%s10069_s12 + $0x58] sm:$0xff] }
 0x5a7   :  { %7321 = vmatprep.subr.bf16.mxu1 %v7939_v3  ;;  %v3416_v33 = vand.u32 4294901760, %v3370_v43  ;;  %v10113_v29 = vand.u32 4294901760, %v9185_v47 }
 0x5a9   :  { %v9187_v50 = vsub.f32 %v3370_v43, %v3416_v33  ;;  %v10115_v43 = vand.u32 4294901760, %v9067_v58  ;;  %v3547_v34 = vsub.f32 %v9185_v47, %v10113_v29 }
 0x5aa   :  { %7323 = vmatpush3.bf16.msra.mxu1 %v8949_v22  ;;  %v9155_v22 = vpack.c.bf16 %v3416_v33, %v3413_v12  ;;  %v10114_v12 = vand.u32 4294901760, %v9069_v40 }
 0x5ab   :  { %7324 = vmatprep.subr.bf16.mxu1 %v7939_v3  ;;  %v3533_v42 = vsub.f32 %v9067_v58, %v10115_v43  ;;  %v10112_v59 = vand.u32 4294901760, %v9187_v50  ;;  %v3548_v20 = vand.u32 4294901760, %v3547_v34  ;;  %v7382_v34 = vpack.c.bf16 %v9060_v6, %v9057_v23  ;;  %v4033_v43 = vld [vmem:[%s10071_s14 + $0x48] sm:$0xff] }
 0x5ac   :  { %7344 = vmatpush3.bf16.msra.mxu0 %v9155_v22  ;;  %v3540_v25 = vsub.f32 %v9069_v40, %v10114_v12 }
 0x5ad   :  { %7345 = vmatprep.subr.bf16.mxu0 %v7939_v3  ;;  %v3554_v36 = vsub.f32 %v9187_v50, %v10112_v59 }
 0x5ae   :  { %7326 = vmatpush3.bf16.msra.mxu1 %v8969_v60  ;;  %v9165_v60 = vpack.c.bf16 %v3422_v55, %v3419_v1  ;;  %v3534_v1 = vand.u32 4294901760, %v3533_v42  ;;  %v3541_v55 = vand.u32 4294901760, %v3540_v25 }
 0x5af   :  { %7471 = vmatprep.subr.bf16.mxu1 %v7939_v3  ;;  %v3555_v7 = vand.u32 4294901760, %v3554_v36  ;;  %v7385_v36 = vpack.c.bf16 %v9065_v30, %v9063_v48 }
 0x5b0   :  { %7347 = vmatpush3.bf16.msra.mxu0 %v9165_v60  ;;  %v7364_v2 = vpack.c.bf16 %v3541_v55, %v3534_v1  ;;  %v7376_v1 = vpack.c.bf16 %v9046_v52, %v9044_v44  ;;  %v7379_v55 = vpack.c.bf16 %v9055_v14, %v9048_v53  ;;  %v10194_v44 = vand.u32 4294901760, %v9057_v23 }
 0x5b1   :  { %6191 = vmatmul.mubr.f32.vlgmr.msra.gmra.mrb[6].mxu1 %v2894_v39  ;;  %7348 = vmatprep.subr.bf16.mxu0 %v7939_v3  ;;  %v10116_v39 = vand.u32 4294901760, %v9065_v30  ;;  %v7367_v10 = vpack.c.bf16 %v3555_v7, %v3548_v20  ;;  %v7388_v20 = vpack.c.bf16 %v9069_v40, %v9067_v58  ;;  %v7391_v7 = vpack.c.bf16 %v9187_v50, %v9185_v47 }
 0x5b2   :  { %6435 = vmatprep.mubr.msk.f32.mxu1 %vm7941_vm1, %v10167_v11  ;;  %v10195_v52 = vand.u32 4294901760, %v9060_v6  ;;  %v10197_v53 = vand.u32 4294901760, %v9065_v30  ;;  %v10200_v23 = vand.u32 4294901760, %v9185_v47  ;;  %v10201_v6 = vand.u32 4294901760, %v9187_v50 }
 0x5b3   :  { %v3526_v15 = vsub.f32 %v9065_v30, %v10116_v39  ;;  %v10203_v30 = vand.u32 4294901760, %v9191_v28  ;;  %v4039_v28 = vld [vmem:[%s10071_s14 + $0x78] sm:$0xff] }
 0x5b4   :  { %7350 = vmatpush3.bf16.msra.mxu0 %v9177_v54 }
 0x5b5   :  { %7351 = vmatprep.subr.bf16.mxu0 %v7939_v3  ;;  %v3527_v17 = vand.u32 4294901760, %v3526_v15  ;;  %v3575_v15 = vsub.f32 %v9194_v21, %v10109_v27 }
 0x5b7   :  { %v7361_v33 = vpack.c.bf16 %v3527_v17, %v3520_v4  ;;  %v3582_v4 = vsub.f32 %v9196_v13, %v10108_v31  ;;  %v3576_v17 = vand.u32 4294901760, %v3575_v15 }
 0x5b9   :  { %v3583_v42 = vand.u32 4294901760, %v3582_v4 }
 0x5bb   :  { %v7373_v25 = vpack.c.bf16 %v3583_v42, %v3576_v17 }
 0x684   :  { %v3354_v62 = vpop.f32.mrb[6].mxu1 }
 0x685   :  { %v7767_v15 = vadd.f32 %v5379_v32, %v3354_v62  ;;  %v6192_v4 = vpop.f32.mrb[7].mxu1  ;;  %v4030_v62 = vld [vmem:[%s10071_s14 + $0x30] sm:$0xff] }
 0x686   :  { %v4032_v4 = vld [vmem:[%s10071_s14 + $0x40] sm:$0xff] }
 0x687   :  { %v3358_v17 = vmax.f32 %v7767_v15, 0.0  ;;  %v4031_v15 = vld [vmem:[%s10071_s14 + $0x38] sm:$0xff] }
 0x689   :  { %v9276_v42 = vand.u32 4294901760, %v3358_v17 }
 0x68b   :  { %v9279_v31 = vsub.f32 %v3358_v17, %v9276_v42 }
 0x68d   :  { %v3465_v27 = vand.u32 4294901760, %v9279_v31 }
 0x68f   :  { %v3466_v35 = vsub.f32 %v9279_v31, %v3465_v27 }
 0x691   :  { %v3467_v8 = vand.u32 4294901760, %v3466_v35 }
 0x693   :  { %6226 = vmatmul.mubr.f32.vlgmr.msra.gmra.mrb[4].mxu0 %v3467_v8  ;;  %v4027_v8 = vld [vmem:[%s10071_s14 + $0x18] sm:$0xff] }
 0x694   :  { %7353 = vmatpush3.bf16.msra.mxu0 %v9201_v19  ;;  %6260 = vmatprep.mubr.msk.f32.mxu0 %vm7941_vm1, %v10167_v11  ;;  %v4024_v19 = vld [vmem:[%s10071_s14] sm:$0xff] }
 0x695   :  { %7354 = vmatprep.subr.bf16.mxu0 %v7939_v3 }
 0x698   :  { %7356 = vmatpush3.bf16.msra.mxu0 %v7355_v0  ;;  %v4025_v0 = vld [vmem:[%s10071_s14 + $0x8] sm:$0xff] }
 0x699   :  { %7357 = vmatprep.subr.bf16.mxu0 %v7939_v3 }
 0x69c   :  { %7359 = vmatpush3.bf16.msra.mxu0 %v7358_v63  ;;  %v4026_v63 = vld [vmem:[%s10071_s14 + $0x10] sm:$0xff] }
 0x69d   :  { %7360 = vmatprep.subr.bf16.mxu0 %v7939_v3  ;;  %v4054_v35 = vand.u32 4294901760, %v4026_v63 }
 0x69f   :  { %v9333_v12 = vsub.f32 %v4026_v63, %v4054_v35  ;;  %v4075_v63 = vand.u32 4294901760, %v4033_v43 }
 0x6a0   :  { %7362 = vmatpush3.bf16.msra.mxu0 %v7361_v33  ;;  %v4048_v33 = vand.u32 4294901760, %v4024_v19 }
 0x6a1   :  { %7363 = vmatprep.subr.bf16.mxu0 %v7939_v3 }
 0x6a2   :  { %v9329_v59 = vsub.f32 %v4024_v19, %v4048_v33  ;;  %v4066_v19 = vand.u32 4294901760, %v4030_v62 }
 0x6a4   :  { %7365 = vmatpush3.bf16.msra.mxu0 %v7364_v2  ;;  %v4051_v2 = vand.u32 4294901760, %v4025_v0 }
 0x6a5   :  { %7366 = vmatprep.subr.bf16.mxu0 %v7939_v3 }
 0x6a6   :  { %v9327_v17 = vpack.c.bf16 %v4051_v2, %v4048_v33  ;;  %v9331_v29 = vsub.f32 %v4025_v0, %v4051_v2  ;;  %v4069_v0 = vand.u32 4294901760, %v4031_v15  ;;  %v4072_v33 = vand.u32 4294901760, %v4032_v4 }
 0x6a7   :  { %v9349_v2 = vsub.f32 %v4030_v62, %v4066_v19 }
 0x6a8   :  { %7368 = vmatpush3.bf16.msra.mxu0 %v7367_v10  ;;  %v4028_v10 = vld [vmem:[%s10071_s14 + $0x20] sm:$0xff]  ;;  %7473 = vmatpush3.bf16.msra.mxu1 %v9327_v17 }
 0x6a9   :  { %7369 = vmatprep.subr.bf16.mxu0 %v7939_v3  ;;  %7474 = vmatprep.subr.bf16.mxu1 %v7939_v3 }
 0x6ac   :  { %7371 = vmatpush3.bf16.msra.mxu0 %v7370_v38  ;;  %v4029_v38 = vld [vmem:[%s10071_s14 + $0x28] sm:$0xff] }
 0x6ad   :  { %7372 = vmatprep.subr.bf16.mxu0 %v7939_v3  ;;  %v4063_v32 = vand.u32 4294901760, %v4029_v38 }
 0x6af   :  { %v9345_v26 = vsub.f32 %v4029_v38, %v4063_v32 }
 0x6b0   :  { %7374 = vmatpush3.bf16.msra.mxu0 %v7373_v25  ;;  %v4057_v25 = vand.u32 4294901760, %v4027_v8 }
 0x6b1   :  { %7375 = vmatprep.subr.bf16.mxu0 %v7939_v3 }
 0x6b2   :  { %v9338_v39 = vpack.c.bf16 %v4057_v25, %v4054_v35  ;;  %v9340_v16 = vsub.f32 %v4027_v8, %v4057_v25  ;;  %v9351_v35 = vsub.f32 %v4031_v15, %v4069_v0  ;;  %v9353_v8 = vsub.f32 %v4032_v4, %v4072_v33 }
 0x6b3   :  { %6261 = vmatmul.mubr.f32.vlgmr.msra.gmra.mrb[4].mxu0 %v9276_v42 }
 0x6b4   :  { %7377 = vmatpush3.bf16.msra.mxu0 %v7376_v1  ;;  %6295 = vmatprep.mubr.msk.f32.mxu0 %vm7941_vm1, %v10167_v11  ;;  %v4060_v1 = vand.u32 4294901760, %v4028_v10 }
 0x6b5   :  { %7378 = vmatprep.subr.bf16.mxu0 %v7939_v3  ;;  %7476 = vmatpush3.bf16.msra.mxu1 %v9338_v39 }
 0x6b6   :  { %v9342_v37 = vsub.f32 %v4028_v10, %v4060_v1  ;;  %v9355_v10 = vsub.f32 %v4033_v43, %v4075_v63  ;;  %7477 = vmatprep.subr.bf16.mxu1 %v7939_v3  ;;  %v9369_v43 = vpack.c.bf16 %v4069_v0, %v4066_v19 }
 0x6b8   :  { %7380 = vmatpush3.bf16.msra.mxu0 %v7379_v55  ;;  %v9361_v55 = vpack.c.bf16 %v4063_v32, %v4060_v1 }
 0x6b9   :  { %7381 = vmatprep.subr.bf16.mxu0 %v7939_v3 }
 0x6ba   :  { %7479 = vmatpush3.bf16.msra.mxu1 %v9361_v55 }
 0x6bb   :  { %7480 = vmatprep.subr.bf16.mxu1 %v7939_v3 }
 0x6bc   :  { %7383 = vmatpush3.bf16.msra.mxu0 %v7382_v34  ;;  %v9377_v34 = vpack.c.bf16 %v4075_v63, %v4072_v33 }
 0x6bd   :  { %7384 = vmatprep.subr.bf16.mxu0 %v7939_v3 }
 0x6be   :  { %7482 = vmatpush3.bf16.msra.mxu1 %v9369_v43 }
 0x6bf   :  { %7483 = vmatprep.subr.bf16.mxu1 %v7939_v3 }
 0x6c0   :  { %7386 = vmatpush3.bf16.msra.mxu0 %v7385_v36  ;;  %v7424_v36 = vpack.c.bf16 %v3483_v51, %v3476_v46  ;;  %v7430_v46 = vpack.c.bf16 %v10195_v52, %v10194_v44  ;;  %v10196_v51 = vand.u32 4294901760, %v9063_v48  ;;  %v10202_v48 = vand.u32 4294901760, %v9189_v49  ;;  %v4038_v49 = vld [vmem:[%s10071_s14 + $0x70] sm:$0xff] }
 0x6c1   :  { %7387 = vmatprep.subr.bf16.mxu0 %v7939_v3 }
 0x6c2   :  { %7485 = vmatpush3.bf16.msra.mxu1 %v9377_v34  ;;  %v7433_v14 = vpack.c.bf16 %v10197_v53, %v10196_v51  ;;  %v10131_v51 = vand.u32 4294901760, %v9342_v37  ;;  %v10130_v53 = vand.u32 4294901760, %v9345_v26 }
 0x6c3   :  { %7486 = vmatprep.subr.bf16.mxu1 %v7939_v3 }
 0x6c4   :  { %7389 = vmatpush3.bf16.msra.mxu0 %v7388_v20  ;;  %v7427_v20 = vpack.c.bf16 %v3497_v18, %v3490_v9  ;;  %v10198_v9 = vand.u32 4294901760, %v9067_v58  ;;  %v10199_v18 = vand.u32 4294901760, %v9069_v40  ;;  %v10204_v58 = vand.u32 4294901760, %v9194_v21 }
 0x6c5   :  { %7390 = vmatprep.subr.bf16.mxu0 %v7939_v3  ;;  %v10205_v40 = vand.u32 4294901760, %v9196_v13  ;;  %v4090_v21 = vand.u32 4294901760, %v4038_v49  ;;  %v4093_v13 = vand.u32 4294901760, %v4039_v28 }
 0x6c7   :  { %v9508_v38 = vpack.c.bf16 %v4093_v13, %v4090_v21  ;;  %v9525_v19 = vsub.f32 %v4038_v49, %v4090_v21  ;;  %v9527_v0 = vsub.f32 %v4039_v28, %v4093_v13 }
 0x6c8   :  { %7392 = vmatpush3.bf16.msra.mxu0 %v7391_v7  ;;  %v7442_v7 = vpack.c.bf16 %v10203_v30, %v10202_v48  ;;  %v10129_v48 = vand.u32 4294901760, %v9349_v2  ;;  %v10128_v30 = vand.u32 4294901760, %v9351_v35 }
 0x6c9   :  { %7393 = vmatprep.subr.bf16.mxu0 %v7939_v3 }
 0x6cc   :  { %7395 = vmatpush3.bf16.msra.mxu0 %v7394_v24  ;;  %v7445_v24 = vpack.c.bf16 %v10205_v40, %v10204_v58  ;;  %v4184_v58 = vsub.f32 %v9349_v2, %v10129_v48  ;;  %v4191_v40 = vsub.f32 %v9351_v35, %v10128_v30 }
 0x6cd   :  { %7396 = vmatprep.subr.bf16.mxu0 %v7939_v3 }
 0x6d0   :  { %7398 = vmatpush3.bf16.msra.mxu0 %v7397_v5  ;;  %v4141_v5 = vand.u32 4294901760, %v9329_v59 }
 0x6d1   :  { %7399 = vmatprep.subr.bf16.mxu0 %v7939_v3 }
 0x6d2   :  { %v4142_v25 = vsub.f32 %v9329_v59, %v4141_v5 }
 0x6d3   :  { %6296 = vmatmul.mubr.f32.vlgmr.msra.gmra.mrb[4].mxu0 %v9279_v31  ;;  %v7439_v31 = vpack.c.bf16 %v10201_v6, %v10200_v23 }
 0x6d4   :  { %7401 = vmatpush3.bf16.msra.mxu0 %v9042_v41  ;;  %6330 = vmatprep.mubr.msk.f32.mxu0 %vm7941_vm1, %v10167_v11  ;;  %v4143_v33 = vand.u32 4294901760, %v4142_v25 }
 0x6d5   :  { %7402 = vmatprep.subr.bf16.mxu0 %v7939_v3 }
 0x6d8   :  { %7404 = vmatpush3.bf16.msra.mxu0 %v9053_v56 }
 0x6d9   :  { %7405 = vmatprep.subr.bf16.mxu0 %v7939_v3 }
 0x6dc   :  { %7407 = vmatpush3.bf16.msra.mxu0 %v9072_v45 }
 0x6dd   :  { %7408 = vmatprep.subr.bf16.mxu0 %v7939_v3 }
 0x6e0   :  { %7410 = vmatpush3.bf16.msra.mxu0 %v9076_v57 }
 0x6e1   :  { %7411 = vmatprep.subr.bf16.mxu0 %v7939_v3 }
 0x6e4   :  { %7413 = vmatpush3.bf16.msra.mxu0 %v9080_v61 }
 0x6e5   :  { %7414 = vmatprep.subr.bf16.mxu0 %v7939_v3 }
 0x6e8   :  { %7416 = vmatpush3.bf16.msra.mxu0 %v9155_v22 }
 0x6e9   :  { %7417 = vmatprep.subr.bf16.mxu0 %v7939_v3 }
 0x6ec   :  { %7419 = vmatpush3.bf16.msra.mxu0 %v9165_v60 }
 0x6ed   :  { %7420 = vmatprep.subr.bf16.mxu0 %v7939_v3 }
 0x6f0   :  { %7422 = vmatpush3.bf16.msra.mxu0 %v9177_v54 }
 0x6f1   :  { %7423 = vmatprep.subr.bf16.mxu0 %v7939_v3 }
 0x6f3   :  { %6331 = vmatmul.mubr.f32.vlgmr.msra.gmra.mrb[4].mxu0 %v3465_v27  ;;  %v7436_v27 = vpack.c.bf16 %v10199_v18, %v10198_v9  ;;  %v4170_v18 = vsub.f32 %v9342_v37, %v10131_v51 }
 0x6f4   :  { %7425 = vmatpush3.bf16.msra.mxu0 %v7424_v36  ;;  %6365 = vmatprep.mubr.msk.f32.mxu0 %vm7941_vm1, %v10167_v11  ;;  %v4155_v36 = vand.u32 4294901760, %v9333_v12 }
 0x6f5   :  { %7426 = vmatprep.subr.bf16.mxu0 %v7939_v3  ;;  %v4171_v6 = vand.u32 4294901760, %v4170_v18 }
 0x6f6   :  { %v4156_v52 = vsub.f32 %v9333_v12, %v4155_v36 }
 0x6f8   :  { %7428 = vmatpush3.bf16.msra.mxu0 %v7427_v20  ;;  %v4162_v20 = vand.u32 4294901760, %v9340_v16 }
 0x6f9   :  { %7429 = vmatprep.subr.bf16.mxu0 %v7939_v3 }
 0x6fc   :  { %7431 = vmatpush3.bf16.msra.mxu0 %v7430_v46  ;;  %v4163_v46 = vsub.f32 %v9340_v16, %v4162_v20 }
 0x6fd   :  { %7432 = vmatprep.subr.bf16.mxu0 %v7939_v3 }
 0x6fe   :  { %v4164_v9 = vand.u32 4294901760, %v4163_v46 }
 0x700   :  { %7434 = vmatpush3.bf16.msra.mxu0 %v7433_v14  ;;  %v4157_v14 = vand.u32 4294901760, %v4156_v52 }
 0x701   :  { %7435 = vmatprep.subr.bf16.mxu0 %v7939_v3 }
 0x702   :  { %v7499_v23 = vpack.c.bf16 %v4164_v9, %v4157_v14 }
 0x704   :  { %7437 = vmatpush3.bf16.msra.mxu0 %v7436_v27  ;;  %v4177_v27 = vsub.f32 %v9345_v26, %v10130_v53 }
 0x705   :  { %7438 = vmatprep.subr.bf16.mxu0 %v7939_v3 }
 0x708   :  { %7440 = vmatpush3.bf16.msra.mxu0 %v7439_v31  ;;  %v4178_v31 = vand.u32 4294901760, %v4177_v27 }
 0x709   :  { %7441 = vmatprep.subr.bf16.mxu0 %v7939_v3 }
 0x70c   :  { %7443 = vmatpush3.bf16.msra.mxu0 %v7442_v7  ;;  %v7502_v7 = vpack.c.bf16 %v4178_v31, %v4171_v6  ;;  %v10121_v6 = vand.u32 4294901760, %v9525_v19  ;;  %v10120_v31 = vand.u32 4294901760, %v9527_v0 }
 0x70d   :  { %7444 = vmatprep.subr.bf16.mxu0 %v7939_v3 }
 0x710   :  { %7446 = vmatpush3.bf16.msra.mxu0 %v7445_v24  ;;  %v4185_v24 = vand.u32 4294901760, %v4184_v58 }
 0x711   :  { %7447 = vmatprep.subr.bf16.mxu0 %v7939_v3 }
 0x713   :  { %6366 = vmatmul.mubr.f32.vlgmr.msra.gmra.mrb[4].mxu0 %v9276_v42 }
 0x714   :  { %7449 = vmatpush3.bf16.msra.mxu0 %v9042_v41  ;;  %6400 = vmatprep.mubr.msk.f32.mxu0 %vm7941_vm1, %v10167_v11  ;;  %v4034_v41 = vld [vmem:[%s10071_s14 + $0x50] sm:$0xff] }
 0x715   :  { %7450 = vmatprep.subr.bf16.mxu0 %v7939_v3 }
 0x718   :  { %7452 = vmatpush3.bf16.msra.mxu0 %v9053_v56  ;;  %v4035_v56 = vld [vmem:[%s10071_s14 + $0x58] sm:$0xff] }
 0x719   :  { %7453 = vmatprep.subr.bf16.mxu0 %v7939_v3 }
 0x71c   :  { %7455 = vmatpush3.bf16.msra.mxu0 %v9072_v45  ;;  %v4078_v45 = vand.u32 4294901760, %v4034_v41 }
 0x71d   :  { %7456 = vmatprep.subr.bf16.mxu0 %v7939_v3 }
 0x71e   :  { %v9516_v32 = vsub.f32 %v4034_v41, %v4078_v45  ;;  %v4192_v41 = vand.u32 4294901760, %v4191_v40  ;;  %v4240_v40 = vsub.f32 %v9525_v19, %v10121_v6 }
 0x720   :  { %7458 = vmatpush3.bf16.msra.mxu0 %v9076_v57  ;;  %v4081_v57 = vand.u32 4294901760, %v4035_v56  ;;  %v10125_v49 = vand.u32 4294901760, %v9516_v32 }
 0x721   :  { %7459 = vmatprep.subr.bf16.mxu0 %v7939_v3 }
 0x722   :  { %v9518_v62 = vsub.f32 %v4035_v56, %v4081_v57  ;;  %v10127_v56 = vand.u32 4294901760, %v9353_v8  ;;  %v4212_v13 = vsub.f32 %v9516_v32, %v10125_v49 }
 0x724   :  { %7461 = vmatpush3.bf16.msra.mxu0 %v9080_v61  ;;  %v9486_v61 = vpack.c.bf16 %v4081_v57, %v4078_v45  ;;  %v10126_v45 = vand.u32 4294901760, %v9355_v10  ;;  %v7505_v57 = vpack.c.bf16 %v4192_v41, %v4185_v24  ;;  %v10124_v28 = vand.u32 4294901760, %v9518_v62 }
 0x725   :  { %7462 = vmatprep.subr.bf16.mxu0 %v7939_v3  ;;  %v4247_v24 = vsub.f32 %v9527_v0, %v10120_v31  ;;  %v4241_v41 = vand.u32 4294901760, %v4240_v40 }
 0x726   :  { %7488 = vmatpush3.bf16.msra.mxu1 %v9486_v61  ;;  %v4219_v25 = vsub.f32 %v9518_v62, %v10124_v28 }
 0x727   :  { %7489 = vmatprep.subr.bf16.mxu1 %v7939_v3 }
 0x728   :  { %7464 = vmatpush3.bf16.msra.mxu0 %v9155_v22  ;;  %v4036_v22 = vld [vmem:[%s10071_s14 + $0x60] sm:$0xff] }
 0x729   :  { %7465 = vmatprep.subr.bf16.mxu0 %v7939_v3 }
 0x72c   :  { %7467 = vmatpush3.bf16.msra.mxu0 %v9165_v60  ;;  %v4037_v60 = vld [vmem:[%s10071_s14 + $0x68] sm:$0xff] }
 0x72d   :  { %7468 = vmatprep.subr.bf16.mxu0 %v7939_v3  ;;  %v4087_v47 = vand.u32 4294901760, %v4037_v60 }
 0x72f   :  { %v9522_v4 = vsub.f32 %v4037_v60, %v4087_v47  ;;  %v4205_v60 = vsub.f32 %v9355_v10, %v10126_v45 }
 0x730   :  { %7470 = vmatpush3.bf16.msra.mxu0 %v9177_v54  ;;  %v4084_v54 = vand.u32 4294901760, %v4036_v22 }
 0x731   :  { %7615 = vmatprep.subr.bf16.mxu0 %v7939_v3  ;;  %v10122_v52 = vand.u32 4294901760, %v9522_v4 }
 0x732   :  { %v9496_v50 = vpack.c.bf16 %v4087_v47, %v4084_v54  ;;  %v9520_v15 = vsub.f32 %v4036_v22, %v4084_v54  ;;  %v4198_v22 = vsub.f32 %v9353_v8, %v10127_v56  ;;  %v4206_v47 = vand.u32 4294901760, %v4205_v60  ;;  %v4698_v56 = vld [vmem:[%s10073_s16 + $0x48] sm:$0xff] }
 0x733   :  { %6401 = vmatmul.mubr.f32.vlgmr.msra.gmra.mrb[4].mxu0 %v9276_v42  ;;  %v4148_v42 = vand.u32 4294901760, %v9331_v29  ;;  %v4233_v9 = vsub.f32 %v9522_v4, %v10122_v52 }
 0x734   :  { %6645 = vmatprep.mubr.msk.f32.mxu0 %vm7941_vm1, %v10167_v11  ;;  %7491 = vmatpush3.bf16.msra.mxu1 %v9496_v50  ;;  %v4199_v54 = vand.u32 4294901760, %v4198_v22  ;;  %v4248_v22 = vand.u32 4294901760, %v4247_v24 }
 0x735   :  { %7492 = vmatprep.subr.bf16.mxu1 %v7939_v3  ;;  %v4149_v1 = vsub.f32 %v9331_v29, %v4148_v42  ;;  %v4234_v27 = vand.u32 4294901760, %v4233_v9  ;;  %v7541_v9 = vpack.c.bf16 %v9527_v0, %v9525_v19 }
 0x736   :  { %v7508_v21 = vpack.c.bf16 %v4206_v47, %v4199_v54  ;;  %v7517_v60 = vpack.c.bf16 %v4248_v22, %v4241_v41  ;;  %v7520_v54 = vpack.c.bf16 %v9331_v29, %v9329_v59  ;;  %v7523_v47 = vpack.c.bf16 %v9340_v16, %v9333_v12 }
 0x737   :  { %v4150_v63 = vand.u32 4294901760, %v4149_v1  ;;  %v4213_v1 = vand.u32 4294901760, %v4212_v13  ;;  %v7526_v13 = vpack.c.bf16 %v9345_v26, %v9342_v37  ;;  %v10206_v29 = vand.u32 4294901760, %v9342_v37 }
 0x738   :  { %7494 = vmatpush3.bf16.msra.mxu1 %v9508_v38  ;;  %v10207_v59 = vand.u32 4294901760, %v9345_v26  ;;  %v10209_v12 = vand.u32 4294901760, %v9351_v35  ;;  %v10212_v26 = vand.u32 4294901760, %v9516_v32  ;;  %v10213_v37 = vand.u32 4294901760, %v9518_v62 }
 0x739   :  { %7495 = vmatprep.subr.bf16.mxu1 %v7939_v3  ;;  %v9532_v44 = vpack.c.bf16 %v4150_v63, %v4143_v33  ;;  %v4220_v33 = vand.u32 4294901760, %v4219_v25  ;;  %v10123_v63 = vand.u32 4294901760, %v9520_v15  ;;  %v7529_v25 = vpack.c.bf16 %v9351_v35, %v9349_v2 }
 0x73a   :  { %v10215_v35 = vand.u32 4294901760, %v9522_v4 }
 0x73b   :  { %v7511_v46 = vpack.c.bf16 %v4220_v33, %v4213_v1  ;;  %v4226_v14 = vsub.f32 %v9520_v15, %v10123_v63  ;;  %v7532_v1 = vpack.c.bf16 %v9355_v10, %v9353_v8  ;;  %v7535_v33 = vpack.c.bf16 %v9518_v62, %v9516_v32 }
 0x73d   :  { %v4227_v18 = vand.u32 4294901760, %v4226_v14  ;;  %v7538_v14 = vpack.c.bf16 %v9522_v4, %v9520_v15  ;;  %v4704_v4 = vld [vmem:[%s10073_s16 + $0x78] sm:$0xff] }
 0x73f   :  { %v7514_v58 = vpack.c.bf16 %v4234_v27, %v4227_v18  ;;  %v5380_v18 = vld [vmem:[%s10070_s13] ss:$0 sm:$0xff] }
 0x806   :  { %v4019_v27 = vpop.f32.mrb[4].mxu0 }
 0x807   :  { %v7768_v40 = vadd.f32 %v5380_v18, %v4019_v27  ;;  %v6402_v24 = vpop.f32.mrb[5].mxu0  ;;  %v4695_v27 = vld [vmem:[%s10073_s16 + $0x30] sm:$0xff] }
 0x808   :  { %v4697_v24 = vld [vmem:[%s10073_s16 + $0x40] sm:$0xff] }
 0x809   :  { %v4023_v41 = vmax.f32 %v7768_v40, 0.0  ;;  %v4696_v40 = vld [vmem:[%s10073_s16 + $0x38] sm:$0xff] }
 0x80b   :  { %v9607_v22 = vand.u32 4294901760, %v4023_v41 }
 0x80d   :  { %v9610_v31 = vsub.f32 %v4023_v41, %v9607_v22 }
 0x80f   :  { %v4130_v6 = vand.u32 4294901760, %v9610_v31 }
 0x811   :  { %v4131_v52 = vsub.f32 %v9610_v31, %v4130_v6 }
 0x813   :  { %v4132_v63 = vand.u32 4294901760, %v4131_v52 }
 0x815   :  { %6436 = vmatmul.mubr.f32.vlgmr.msra.gmra.mrb[8].mxu1 %v4132_v63  ;;  %v4692_v63 = vld [vmem:[%s10073_s16 + $0x18] sm:$0xff] }
 0x816   :  { %7497 = vmatpush3.bf16.msra.mxu1 %v9532_v44  ;;  %6470 = vmatprep.mubr.msk.f32.mxu1 %vm7941_vm1, %v10167_v11  ;;  %v4689_v44 = vld [vmem:[%s10073_s16] sm:$0xff] }
 0x817   :  { %7498 = vmatprep.subr.bf16.mxu1 %v7939_v3 }
 0x81a   :  { %7500 = vmatpush3.bf16.msra.mxu1 %v7499_v23  ;;  %v4690_v23 = vld [vmem:[%s10073_s16 + $0x8] sm:$0xff] }
 0x81b   :  { %7501 = vmatprep.subr.bf16.mxu1 %v7939_v3 }
 0x81e   :  { %7503 = vmatpush3.bf16.msra.mxu1 %v7502_v7  ;;  %v4691_v7 = vld [vmem:[%s10073_s16 + $0x10] sm:$0xff] }
 0x81f   :  { %7504 = vmatprep.subr.bf16.mxu1 %v7939_v3  ;;  %v4719_v52 = vand.u32 4294901760, %v4691_v7 }
 0x821   :  { %v9664_v45 = vsub.f32 %v4691_v7, %v4719_v52  ;;  %v4740_v7 = vand.u32 4294901760, %v4698_v56 }
 0x822   :  { %7506 = vmatpush3.bf16.msra.mxu1 %v7505_v57  ;;  %v4713_v57 = vand.u32 4294901760, %v4689_v44 }
 0x823   :  { %7507 = vmatprep.subr.bf16.mxu1 %v7939_v3 }
 0x824   :  { %v9660_v28 = vsub.f32 %v4689_v44, %v4713_v57  ;;  %v4731_v44 = vand.u32 4294901760, %v4695_v27 }
 0x826   :  { %7509 = vmatpush3.bf16.msra.mxu1 %v7508_v21  ;;  %v4716_v21 = vand.u32 4294901760, %v4690_v23 }
 0x827   :  { %7510 = vmatprep.subr.bf16.mxu1 %v7939_v3 }
 0x828   :  { %v9658_v41 = vpack.c.bf16 %v4716_v21, %v4713_v57  ;;  %v9662_v49 = vsub.f32 %v4690_v23, %v4716_v21  ;;  %v4734_v23 = vand.u32 4294901760, %v4696_v40  ;;  %v4737_v57 = vand.u32 4294901760, %v4697_v24 }
 0x829   :  { %v9680_v21 = vsub.f32 %v4695_v27, %v4731_v44 }
 0x82a   :  { %7512 = vmatpush3.bf16.msra.mxu1 %v7511_v46  ;;  %v4693_v46 = vld [vmem:[%s10073_s16 + $0x20] sm:$0xff]  ;;  %7617 = vmatpush3.bf16.msra.mxu0 %v9658_v41 }
 0x82b   :  { %7513 = vmatprep.subr.bf16.mxu1 %v7939_v3  ;;  %7618 = vmatprep.subr.bf16.mxu0 %v7939_v3 }
 0x82e   :  { %7515 = vmatpush3.bf16.msra.mxu1 %v7514_v58  ;;  %v4694_v58 = vld [vmem:[%s10073_s16 + $0x28] sm:$0xff] }
 0x82f   :  { %7516 = vmatprep.subr.bf16.mxu1 %v7939_v3  ;;  %v4728_v18 = vand.u32 4294901760, %v4694_v58 }
 0x831   :  { %v9676_v51 = vsub.f32 %v4694_v58, %v4728_v18 }
 0x832   :  { %7518 = vmatpush3.bf16.msra.mxu1 %v7517_v60  ;;  %v4722_v60 = vand.u32 4294901760, %v4692_v63 }
 0x833   :  { %7519 = vmatprep.subr.bf16.mxu1 %v7939_v3 }
 0x834   :  { %v9669_v30 = vpack.c.bf16 %v4722_v60, %v4719_v52  ;;  %v9671_v48 = vsub.f32 %v4692_v63, %v4722_v60  ;;  %v9682_v52 = vsub.f32 %v4696_v40, %v4734_v23  ;;  %v9684_v63 = vsub.f32 %v4697_v24, %v4737_v57 }
 0x835   :  { %6471 = vmatmul.mubr.f32.vlgmr.msra.gmra.mrb[8].mxu1 %v9607_v22 }
 0x836   :  { %7521 = vmatpush3.bf16.msra.mxu1 %v7520_v54  ;;  %6505 = vmatprep.mubr.msk.f32.mxu1 %vm7941_vm1, %v10167_v11  ;;  %v4725_v54 = vand.u32 4294901760, %v4693_v46 }
 0x837   :  { %7522 = vmatprep.subr.bf16.mxu1 %v7939_v3  ;;  %7620 = vmatpush3.bf16.msra.mxu0 %v9669_v30 }
 0x838   :  { %v9673_v53 = vsub.f32 %v4693_v46, %v4725_v54  ;;  %v9686_v46 = vsub.f32 %v4698_v56, %v4740_v7  ;;  %7621 = vmatprep.subr.bf16.mxu0 %v7939_v3  ;;  %v9700_v56 = vpack.c.bf16 %v4734_v23, %v4731_v44 }
 0x83a   :  { %7524 = vmatpush3.bf16.msra.mxu1 %v7523_v47  ;;  %v9692_v47 = vpack.c.bf16 %v4728_v18, %v4725_v54 }
 0x83b   :  { %7525 = vmatprep.subr.bf16.mxu1 %v7939_v3 }
 0x83c   :  { %7623 = vmatpush3.bf16.msra.mxu0 %v9692_v47 }
 0x83d   :  { %7624 = vmatprep.subr.bf16.mxu0 %v7939_v3 }
 0x83e   :  { %7527 = vmatpush3.bf16.msra.mxu1 %v7526_v13  ;;  %v9708_v13 = vpack.c.bf16 %v4740_v7, %v4737_v57 }
 0x83f   :  { %7528 = vmatprep.subr.bf16.mxu1 %v7939_v3 }
 0x840   :  { %7626 = vmatpush3.bf16.msra.mxu0 %v9700_v56 }
 0x841   :  { %7627 = vmatprep.subr.bf16.mxu0 %v7939_v3 }
 0x842   :  { %7530 = vmatpush3.bf16.msra.mxu1 %v7529_v25  ;;  %v7568_v25 = vpack.c.bf16 %v4148_v42, %v4141_v5  ;;  %v7574_v5 = vpack.c.bf16 %v10207_v59, %v10206_v29  ;;  %v10208_v42 = vand.u32 4294901760, %v9349_v2  ;;  %v10214_v2 = vand.u32 4294901760, %v9520_v15  ;;  %v4703_v15 = vld [vmem:[%s10073_s16 + $0x70] sm:$0xff] }
 0x843   :  { %7531 = vmatprep.subr.bf16.mxu1 %v7939_v3 }
 0x844   :  { %7629 = vmatpush3.bf16.msra.mxu0 %v9708_v13  ;;  %v7577_v16 = vpack.c.bf16 %v10209_v12, %v10208_v42  ;;  %v4834_v42 = vand.u32 4294901760, %v9673_v53  ;;  %v4841_v12 = vand.u32 4294901760, %v9676_v51 }
 0x845   :  { %7630 = vmatprep.subr.bf16.mxu0 %v7939_v3 }
 0x846   :  { %7533 = vmatpush3.bf16.msra.mxu1 %v7532_v1  ;;  %v7571_v1 = vpack.c.bf16 %v4162_v20, %v4155_v36  ;;  %v10210_v36 = vand.u32 4294901760, %v9353_v8  ;;  %v10211_v20 = vand.u32 4294901760, %v9355_v10  ;;  %v10216_v8 = vand.u32 4294901760, %v9525_v19 }
 0x847   :  { %7534 = vmatprep.subr.bf16.mxu1 %v7939_v3  ;;  %v10217_v10 = vand.u32 4294901760, %v9527_v0  ;;  %v4755_v19 = vand.u32 4294901760, %v4703_v15  ;;  %v4758_v0 = vand.u32 4294901760, %v4704_v4 }
 0x849   :  { %v9836_v58 = vpack.c.bf16 %v4758_v0, %v4755_v19  ;;  %v9853_v44 = vsub.f32 %v4703_v15, %v4755_v19  ;;  %v9855_v23 = vsub.f32 %v4704_v4, %v4758_v0 }
 0x84a   :  { %7536 = vmatpush3.bf16.msra.mxu1 %v7535_v33  ;;  %v7586_v33 = vpack.c.bf16 %v10215_v35, %v10214_v2  ;;  %v4848_v2 = vand.u32 4294901760, %v9680_v21  ;;  %v4855_v35 = vand.u32 4294901760, %v9682_v52 }
 0x84b   :  { %7537 = vmatprep.subr.bf16.mxu1 %v7939_v3 }
 0x84e   :  { %7539 = vmatpush3.bf16.msra.mxu1 %v7538_v14  ;;  %v7589_v14 = vpack.c.bf16 %v10217_v10, %v10216_v8  ;;  %v4849_v8 = vsub.f32 %v9680_v21, %v4848_v2  ;;  %v4856_v10 = vsub.f32 %v9682_v52, %v4855_v35 }
 0x84f   :  { %7540 = vmatprep.subr.bf16.mxu1 %v7939_v3 }
 0x852   :  { %7542 = vmatpush3.bf16.msra.mxu1 %v7541_v9  ;;  %v4806_v9 = vand.u32 4294901760, %v9660_v28 }
 0x853   :  { %7543 = vmatprep.subr.bf16.mxu1 %v7939_v3 }
 0x854   :  { %v4807_v60 = vsub.f32 %v9660_v28, %v4806_v9 }
 0x855   :  { %6506 = vmatmul.mubr.f32.vlgmr.msra.gmra.mrb[8].mxu1 %v9610_v31  ;;  %v7583_v31 = vpack.c.bf16 %v10213_v37, %v10212_v26 }
 0x856   :  { %7545 = vmatpush3.bf16.msra.mxu1 %v9327_v17  ;;  %6540 = vmatprep.mubr.msk.f32.mxu1 %vm7941_vm1, %v10167_v11  ;;  %v4808_v57 = vand.u32 4294901760, %v4807_v60 }
 0x857   :  { %7546 = vmatprep.subr.bf16.mxu1 %v7939_v3 }
 0x85a   :  { %7548 = vmatpush3.bf16.msra.mxu1 %v9338_v39 }
 0x85b   :  { %7549 = vmatprep.subr.bf16.mxu1 %v7939_v3 }
 0x85e   :  { %7551 = vmatpush3.bf16.msra.mxu1 %v9361_v55 }
 0x85f   :  { %7552 = vmatprep.subr.bf16.mxu1 %v7939_v3 }
 0x862   :  { %7554 = vmatpush3.bf16.msra.mxu1 %v9369_v43 }
 0x863   :  { %7555 = vmatprep.subr.bf16.mxu1 %v7939_v3 }
 0x866   :  { %7557 = vmatpush3.bf16.msra.mxu1 %v9377_v34 }
 0x867   :  { %7558 = vmatprep.subr.bf16.mxu1 %v7939_v3 }
 0x86a   :  { %7560 = vmatpush3.bf16.msra.mxu1 %v9486_v61 }
 0x86b   :  { %7561 = vmatprep.subr.bf16.mxu1 %v7939_v3 }
 0x86e   :  { %7563 = vmatpush3.bf16.msra.mxu1 %v9496_v50 }
 0x86f   :  { %7564 = vmatprep.subr.bf16.mxu1 %v7939_v3 }
 0x872   :  { %7566 = vmatpush3.bf16.msra.mxu1 %v9508_v38 }
 0x873   :  { %7567 = vmatprep.subr.bf16.mxu1 %v7939_v3 }
 0x875   :  { %6541 = vmatmul.mubr.f32.vlgmr.msra.gmra.mrb[8].mxu1 %v4130_v6  ;;  %v7580_v6 = vpack.c.bf16 %v10211_v20, %v10210_v36  ;;  %v4835_v20 = vsub.f32 %v9673_v53, %v4834_v42 }
 0x876   :  { %7569 = vmatpush3.bf16.msra.mxu1 %v7568_v25  ;;  %6575 = vmatprep.mubr.msk.f32.mxu1 %vm7941_vm1, %v10167_v11  ;;  %v4820_v25 = vand.u32 4294901760, %v9664_v45 }
 0x877   :  { %7570 = vmatprep.subr.bf16.mxu1 %v7939_v3  ;;  %v4836_v37 = vand.u32 4294901760, %v4835_v20 }
 0x878   :  { %v4821_v59 = vsub.f32 %v9664_v45, %v4820_v25 }
 0x87a   :  { %7572 = vmatpush3.bf16.msra.mxu1 %v7571_v1  ;;  %v4827_v1 = vand.u32 4294901760, %v9671_v48 }
 0x87b   :  { %7573 = vmatprep.subr.bf16.mxu1 %v7939_v3 }
 0x87e   :  { %7575 = vmatpush3.bf16.msra.mxu1 %v7574_v5  ;;  %v4828_v5 = vsub.f32 %v9671_v48, %v4827_v1 }
 0x87f   :  { %7576 = vmatprep.subr.bf16.mxu1 %v7939_v3 }
 0x880   :  { %v4829_v36 = vand.u32 4294901760, %v4828_v5 }
 0x882   :  { %7578 = vmatpush3.bf16.msra.mxu1 %v7577_v16  ;;  %v4822_v16 = vand.u32 4294901760, %v4821_v59 }
 0x883   :  { %7579 = vmatprep.subr.bf16.mxu1 %v7939_v3 }
 0x884   :  { %v7643_v26 = vpack.c.bf16 %v4829_v36, %v4822_v16 }
 0x886   :  { %7581 = vmatpush3.bf16.msra.mxu1 %v7580_v6  ;;  %v4842_v6 = vsub.f32 %v9676_v51, %v4841_v12 }
 0x887   :  { %7582 = vmatprep.subr.bf16.mxu1 %v7939_v3 }
 0x88a   :  { %7584 = vmatpush3.bf16.msra.mxu1 %v7583_v31  ;;  %v4843_v31 = vand.u32 4294901760, %v4842_v6 }
 0x88b   :  { %7585 = vmatprep.subr.bf16.mxu1 %v7939_v3 }
 0x88e   :  { %7587 = vmatpush3.bf16.msra.mxu1 %v7586_v33  ;;  %v7646_v33 = vpack.c.bf16 %v4843_v31, %v4836_v37  ;;  %v10133_v37 = vand.u32 4294901760, %v9853_v44  ;;  %v10132_v31 = vand.u32 4294901760, %v9855_v23 }
 0x88f   :  { %7588 = vmatprep.subr.bf16.mxu1 %v7939_v3 }
 0x892   :  { %7590 = vmatpush3.bf16.msra.mxu1 %v7589_v14  ;;  %v4850_v14 = vand.u32 4294901760, %v4849_v8 }
 0x893   :  { %7591 = vmatprep.subr.bf16.mxu1 %v7939_v3 }
 0x895   :  { %6576 = vmatmul.mubr.f32.vlgmr.msra.gmra.mrb[8].mxu1 %v9607_v22 }
 0x896   :  { %7593 = vmatpush3.bf16.msra.mxu1 %v9327_v17  ;;  %6610 = vmatprep.mubr.msk.f32.mxu1 %vm7941_vm1, %v10167_v11  ;;  %v4700_v17 = vld [vmem:[%s10073_s16 + $0x58] sm:$0xff] }
 0x897   :  { %7594 = vmatprep.subr.bf16.mxu1 %v7939_v3 }
 0x89a   :  { %7596 = vmatpush3.bf16.msra.mxu1 %v9338_v39  ;;  %v4699_v39 = vld [vmem:[%s10073_s16 + $0x50] sm:$0xff] }
 0x89b   :  { %7597 = vmatprep.subr.bf16.mxu1 %v7939_v3 }
 0x89e   :  { %7599 = vmatpush3.bf16.msra.mxu1 %v9361_v55  ;;  %v4743_v55 = vand.u32 4294901760, %v4699_v39 }
 0x89f   :  { %7600 = vmatprep.subr.bf16.mxu1 %v7939_v3 }
 0x8a0   :  { %v9844_v18 = vsub.f32 %v4699_v39, %v4743_v55  ;;  %v4857_v39 = vand.u32 4294901760, %v4856_v10  ;;  %v4905_v10 = vsub.f32 %v9853_v44, %v10133_v37 }
 0x8a2   :  { %7602 = vmatpush3.bf16.msra.mxu1 %v9369_v43  ;;  %v4746_v43 = vand.u32 4294901760, %v4700_v17  ;;  %v4876_v15 = vand.u32 4294901760, %v9844_v18 }
 0x8a3   :  { %7603 = vmatprep.subr.bf16.mxu1 %v7939_v3 }
 0x8a4   :  { %v9846_v27 = vsub.f32 %v4700_v17, %v4746_v43  ;;  %v4862_v17 = vand.u32 4294901760, %v9684_v63  ;;  %v4877_v0 = vsub.f32 %v9844_v18, %v4876_v15 }
 0x8a6   :  { %7605 = vmatpush3.bf16.msra.mxu1 %v9377_v34  ;;  %v9814_v34 = vpack.c.bf16 %v4746_v43, %v4743_v55  ;;  %v4869_v55 = vand.u32 4294901760, %v9686_v46  ;;  %v7649_v43 = vpack.c.bf16 %v4857_v39, %v4850_v14  ;;  %v4883_v4 = vand.u32 4294901760, %v9846_v27 }
 0x8a7   :  { %7606 = vmatprep.subr.bf16.mxu1 %v7939_v3  ;;  %v4912_v14 = vsub.f32 %v9855_v23, %v10132_v31  ;;  %v4906_v39 = vand.u32 4294901760, %v4905_v10 }
 0x8a8   :  { %7632 = vmatpush3.bf16.msra.mxu0 %v9814_v34  ;;  %v4884_v60 = vsub.f32 %v9846_v27, %v4883_v4 }
 0x8a9   :  { %7633 = vmatprep.subr.bf16.mxu0 %v7939_v3 }
 0x8aa   :  { %7608 = vmatpush3.bf16.msra.mxu1 %v9486_v61  ;;  %v4701_v61 = vld [vmem:[%s10073_s16 + $0x60] sm:$0xff] }
 0x8ab   :  { %7609 = vmatprep.subr.bf16.mxu1 %v7939_v3 }
 0x8ae   :  { %7611 = vmatpush3.bf16.msra.mxu1 %v9496_v50  ;;  %v4702_v50 = vld [vmem:[%s10073_s16 + $0x68] sm:$0xff] }
 0x8af   :  { %7612 = vmatprep.subr.bf16.mxu1 %v7939_v3  ;;  %v4752_v32 = vand.u32 4294901760, %v4702_v50 }
 0x8b1   :  { %v9850_v24 = vsub.f32 %v4702_v50, %v4752_v32  ;;  %v4870_v50 = vsub.f32 %v9686_v46, %v4869_v55 }
 0x8b2   :  { %7614 = vmatpush3.bf16.msra.mxu1 %v9508_v38  ;;  %v4749_v38 = vand.u32 4294901760, %v4701_v61 }
 0x8b3   :  { %v10134_v59 = vand.u32 4294901760, %v9850_v24 }
 0x8b4   :  { %v9824_v62 = vpack.c.bf16 %v4752_v32, %v4749_v38  ;;  %v9848_v40 = vsub.f32 %v4701_v61, %v4749_v38  ;;  %v4863_v61 = vsub.f32 %v9684_v63, %v4862_v17  ;;  %v4871_v32 = vand.u32 4294901760, %v4870_v50 }
 0x8b5   :  { %6611 = vmatmul.mubr.f32.vlgmr.msra.gmra.mrb[8].mxu1 %v9607_v22  ;;  %v4813_v22 = vand.u32 4294901760, %v9662_v49  ;;  %v4898_v36 = vsub.f32 %v9850_v24, %v10134_v59 }
 0x8b6   :  { %7635 = vmatpush3.bf16.msra.mxu0 %v9824_v62  ;;  %v4864_v38 = vand.u32 4294901760, %v4863_v61  ;;  %v4913_v61 = vand.u32 4294901760, %v4912_v14 }
 0x8b7   :  { %7636 = vmatprep.subr.bf16.mxu0 %v7939_v3  ;;  %v4814_v54 = vsub.f32 %v9662_v49, %v4813_v22  ;;  %v4899_v6 = vand.u32 4294901760, %v4898_v36  ;;  %v7685_v36 = vpack.c.bf16 %v9855_v23, %v9853_v44 }
 0x8b8   :  { %v7652_v19 = vpack.c.bf16 %v4871_v32, %v4864_v38  ;;  %v7661_v50 = vpack.c.bf16 %v4913_v61, %v4906_v39  ;;  %v7664_v38 = vpack.c.bf16 %v9662_v49, %v9660_v28  ;;  %v7667_v32 = vpack.c.bf16 %v9671_v48, %v9664_v45 }
 0x8b9   :  { %v4815_v7 = vand.u32 4294901760, %v4814_v54  ;;  %v4878_v54 = vand.u32 4294901760, %v4877_v0  ;;  %v7670_v0 = vpack.c.bf16 %v9676_v51, %v9673_v53  ;;  %v7718_v49 = vpack.c.bf16 %v4841_v12, %v4834_v42 }
 0x8ba   :  { %7638 = vmatpush3.bf16.msra.mxu0 %v9836_v58  ;;  %v7721_v48 = vpack.c.bf16 %v4855_v35, %v4848_v2  ;;  %v7724_v45 = vpack.c.bf16 %v4869_v55, %v4862_v17  ;;  %v7727_v51 = vpack.c.bf16 %v4883_v4, %v4876_v15  ;;  %v10218_v53 = vand.u32 4294901760, %v9848_v40 }
 0x8bb   :  { %7639 = vmatprep.subr.bf16.mxu0 %v7939_v3  ;;  %v9860_v29 = vpack.c.bf16 %v4815_v7, %v4808_v57  ;;  %v4885_v57 = vand.u32 4294901760, %v4884_v60  ;;  %v10135_v7 = vand.u32 4294901760, %v9848_v40  ;;  %v7673_v60 = vpack.c.bf16 %v9682_v52, %v9680_v21 }
 0x8bc   :  { %v10219_v28 = vand.u32 4294901760, %v9850_v24  ;;  %v10220_v52 = vand.u32 4294901760, %v9853_v44 }
 0x8bd   :  { %v7655_v5 = vpack.c.bf16 %v4885_v57, %v4878_v54  ;;  %v4891_v16 = vsub.f32 %v9848_v40, %v10135_v7  ;;  %v7676_v54 = vpack.c.bf16 %v9686_v46, %v9684_v63  ;;  %v7679_v57 = vpack.c.bf16 %v9846_v27, %v9844_v18 }
 0x8be   :  { %v7730_v21 = vpack.c.bf16 %v10219_v28, %v10218_v53  ;;  %v10221_v63 = vand.u32 4294901760, %v9855_v23 }
 0x8bf   :  { %v4892_v20 = vand.u32 4294901760, %v4891_v16  ;;  %v7682_v16 = vpack.c.bf16 %v9850_v24, %v9848_v40 }
 0x8c0   :  { %v7733_v46 = vpack.c.bf16 %v10221_v63, %v10220_v52 }
 0x8c1   :  { %v7658_v8 = vpack.c.bf16 %v4899_v6, %v4892_v20  ;;  %v5381_v20 = vld [vmem:[%s10072_s15] ss:$0 sm:$0xff]  ;;  %s7942_s15 = smov [#allocation7]  }
 0x8c2   :  { %s5364_s7 = sshll.u32 %s7942_s15, 4  ;;  %s5365_s7 = int_to_ptr.vmem [resolvable:$true] %s5364_s7 }
 0x8c3   :  { %s7908_s30 = scalar_lea.vmem %s5365_s7, 128  ;;  %p7913_p3 = scmp.lt.s32.totalorder %s5365_s7, %s5365_s7 }
 0x8c4   :  { %p7909_p2 = scmp.ne.s32.totalorder %s5365_s7, %s7908_s30  ;;  %p7914_p4 = scmp.lt.s32.totalorder %s7908_s30, %s7908_s30 }
 0x8c6   :  { %p7915_p5 = por %p7914_p4, %p7913_p3 }
 0x8c8   :  { %p7916_p6 = pnand %p7915_p5, %p7909_p2 }
 0x988   :  { %v4684_v6 = vpop.f32.mrb[8].mxu1 }
 0x989   :  { %v7769_v10 = vadd.f32 %v5381_v20, %v4684_v6  ;;  %v6612_v14 = vpop.f32.mrb[9].mxu1 }
 0x98b   :  { %v4688_v39 = vmax.f32 %v7769_v10, 0.0 }
 0x98d   :  { %v9935_v61 = vand.u32 4294901760, %v4688_v39 }
 0x98f   :  { %v4794_v31 = vsub.f32 %v4688_v39, %v9935_v61 }
 0x991   :  { %v4795_v37 = vand.u32 4294901760, %v4794_v31 }
 0x993   :  { %v4796_v59 = vsub.f32 %v4794_v31, %v4795_v37 }
 0x995   :  { %v4797_v7 = vand.u32 4294901760, %v4796_v59 }
 0x997   :  { %6646 = vmatmul.mubr.f32.vlgmr.msra.gmra.mrb[6].mxu0 %v4797_v7 }
 0x998   :  { %7641 = vmatpush3.bf16.msra.mxu0 %v9860_v29  ;;  %6680 = vmatprep.mubr.msk.f32.mxu0 %vm7941_vm1, %v10167_v11  ;;  %v7712_v29 = vpack.c.bf16 %v4813_v22, %v4806_v9 }
 0x999   :  { %7642 = vmatprep.subr.bf16.mxu0 %v7939_v3 }
 0x99c   :  { %7644 = vmatpush3.bf16.msra.mxu0 %v7643_v26  ;;  %v7715_v26 = vpack.c.bf16 %v4827_v1, %v4820_v25 }
 0x99d   :  { %7645 = vmatprep.subr.bf16.mxu0 %v7939_v3 }
 0x9a0   :  { %7647 = vmatpush3.bf16.msra.mxu0 %v7646_v33 }
 0x9a1   :  { %7648 = vmatprep.subr.bf16.mxu0 %v7939_v3 }
 0x9a4   :  { %7650 = vmatpush3.bf16.msra.mxu0 %v7649_v43 }
 0x9a5   :  { %7651 = vmatprep.subr.bf16.mxu0 %v7939_v3 }
 0x9a8   :  { %7653 = vmatpush3.bf16.msra.mxu0 %v7652_v19 }
 0x9a9   :  { %7654 = vmatprep.subr.bf16.mxu0 %v7939_v3 }
 0x9ac   :  { %7656 = vmatpush3.bf16.msra.mxu0 %v7655_v5 }
 0x9ad   :  { %7657 = vmatprep.subr.bf16.mxu0 %v7939_v3 }
 0x9b0   :  { %7659 = vmatpush3.bf16.msra.mxu0 %v7658_v8 }
 0x9b1   :  { %7660 = vmatprep.subr.bf16.mxu0 %v7939_v3 }
 0x9b4   :  { %7662 = vmatpush3.bf16.msra.mxu0 %v7661_v50 }
 0x9b5   :  { %7663 = vmatprep.subr.bf16.mxu0 %v7939_v3 }
 0x9b7   :  { %6681 = vmatmul.mubr.f32.vlgmr.msra.gmra.mrb[6].mxu0 %v9935_v61 }
 0x9b8   :  { %7665 = vmatpush3.bf16.msra.mxu0 %v7664_v38  ;;  %6715 = vmatprep.mubr.msk.f32.mxu0 %vm7941_vm1, %v10167_v11 }
 0x9b9   :  { %7666 = vmatprep.subr.bf16.mxu0 %v7939_v3 }
 0x9bc   :  { %7668 = vmatpush3.bf16.msra.mxu0 %v7667_v32 }
 0x9bd   :  { %7669 = vmatprep.subr.bf16.mxu0 %v7939_v3 }
 0x9c0   :  { %7671 = vmatpush3.bf16.msra.mxu0 %v7670_v0 }
 0x9c1   :  { %7672 = vmatprep.subr.bf16.mxu0 %v7939_v3 }
 0x9c4   :  { %7674 = vmatpush3.bf16.msra.mxu0 %v7673_v60 }
 0x9c5   :  { %7675 = vmatprep.subr.bf16.mxu0 %v7939_v3 }
 0x9c8   :  { %7677 = vmatpush3.bf16.msra.mxu0 %v7676_v54 }
 0x9c9   :  { %7678 = vmatprep.subr.bf16.mxu0 %v7939_v3 }
 0x9cc   :  { %7680 = vmatpush3.bf16.msra.mxu0 %v7679_v57 }
 0x9cd   :  { %7681 = vmatprep.subr.bf16.mxu0 %v7939_v3 }
 0x9d0   :  { %7683 = vmatpush3.bf16.msra.mxu0 %v7682_v16 }
 0x9d1   :  { %7684 = vmatprep.subr.bf16.mxu0 %v7939_v3 }
 0x9d4   :  { %7686 = vmatpush3.bf16.msra.mxu0 %v7685_v36 }
 0x9d5   :  { %7687 = vmatprep.subr.bf16.mxu0 %v7939_v3 }
 0x9d7   :  { %6716 = vmatmul.mubr.f32.vlgmr.msra.gmra.mrb[6].mxu0 %v4794_v31 }
 0x9d8   :  { %7689 = vmatpush3.bf16.msra.mxu0 %v9658_v41  ;;  %6750 = vmatprep.mubr.msk.f32.mxu0 %vm7941_vm1, %v10167_v11 }
 0x9d9   :  { %7690 = vmatprep.subr.bf16.mxu0 %v7939_v3 }
 0x9dc   :  { %7692 = vmatpush3.bf16.msra.mxu0 %v9669_v30 }
 0x9dd   :  { %7693 = vmatprep.subr.bf16.mxu0 %v7939_v3 }
 0x9e0   :  { %7695 = vmatpush3.bf16.msra.mxu0 %v9692_v47 }
 0x9e1   :  { %7696 = vmatprep.subr.bf16.mxu0 %v7939_v3 }
 0x9e4   :  { %7698 = vmatpush3.bf16.msra.mxu0 %v9700_v56 }
 0x9e5   :  { %7699 = vmatprep.subr.bf16.mxu0 %v7939_v3 }
 0x9e8   :  { %7701 = vmatpush3.bf16.msra.mxu0 %v9708_v13 }
 0x9e9   :  { %7702 = vmatprep.subr.bf16.mxu0 %v7939_v3 }
 0x9ec   :  { %7704 = vmatpush3.bf16.msra.mxu0 %v9814_v34 }
 0x9ed   :  { %7705 = vmatprep.subr.bf16.mxu0 %v7939_v3 }
 0x9f0   :  { %7707 = vmatpush3.bf16.msra.mxu0 %v9824_v62 }
 0x9f1   :  { %7708 = vmatprep.subr.bf16.mxu0 %v7939_v3 }
 0x9f4   :  { %7710 = vmatpush3.bf16.msra.mxu0 %v9836_v58 }
 0x9f5   :  { %7711 = vmatprep.subr.bf16.mxu0 %v7939_v3 }
 0x9f7   :  { %6751 = vmatmul.mubr.f32.vlgmr.msra.gmra.mrb[6].mxu0 %v4795_v37 }
 0x9f8   :  { %7713 = vmatpush3.bf16.msra.mxu0 %v7712_v29  ;;  %6785 = vmatprep.mubr.msk.f32.mxu0 %vm7941_vm1, %v10167_v11 }
 0x9f9   :  { %7714 = vmatprep.subr.bf16.mxu0 %v7939_v3 }
 0x9fc   :  { %7716 = vmatpush3.bf16.msra.mxu0 %v7715_v26 }
 0x9fd   :  { %7717 = vmatprep.subr.bf16.mxu0 %v7939_v3 }
 0xa00   :  { %7719 = vmatpush3.bf16.msra.mxu0 %v7718_v49 }
 0xa01   :  { %7720 = vmatprep.subr.bf16.mxu0 %v7939_v3 }
 0xa04   :  { %7722 = vmatpush3.bf16.msra.mxu0 %v7721_v48 }
 0xa05   :  { %7723 = vmatprep.subr.bf16.mxu0 %v7939_v3 }
 0xa08   :  { %7725 = vmatpush3.bf16.msra.mxu0 %v7724_v45 }
 0xa09   :  { %7726 = vmatprep.subr.bf16.mxu0 %v7939_v3 }
 0xa0c   :  { %7728 = vmatpush3.bf16.msra.mxu0 %v7727_v51 }
 0xa0d   :  { %7729 = vmatprep.subr.bf16.mxu0 %v7939_v3 }
 0xa10   :  { %7731 = vmatpush3.bf16.msra.mxu0 %v7730_v21 }
 0xa11   :  { %7732 = vmatprep.subr.bf16.mxu0 %v7939_v3 }
 0xa14   :  { %7734 = vmatpush3.bf16.msra.mxu0 %v7733_v46 }
 0xa15   :  { %7735 = vmatprep.subr.bf16.mxu0 %v7939_v3 }
 0xa17   :  { %6786 = vmatmul.mubr.f32.vlgmr.msra.gmra.mrb[6].mxu0 %v9935_v61 }
 0xa18   :  { %7737 = vmatpush3.bf16.msra.mxu0 %v9658_v41  ;;  %6820 = vmatprep.mubr.msk.f32.mxu0 %vm7941_vm1, %v10167_v11 }
 0xa19   :  { %7738 = vmatprep.subr.bf16.mxu0 %v7939_v3 }
 0xa1c   :  { %7740 = vmatpush3.bf16.msra.mxu0 %v9669_v30 }
 0xa1d   :  { %7741 = vmatprep.subr.bf16.mxu0 %v7939_v3 }
 0xa20   :  { %7743 = vmatpush3.bf16.msra.mxu0 %v9692_v47 }
 0xa21   :  { %7744 = vmatprep.subr.bf16.mxu0 %v7939_v3 }
 0xa24   :  { %7746 = vmatpush3.bf16.msra.mxu0 %v9700_v56 }
 0xa25   :  { %7747 = vmatprep.subr.bf16.mxu0 %v7939_v3 }
 0xa28   :  { %7749 = vmatpush3.bf16.msra.mxu0 %v9708_v13 }
 0xa29   :  { %7750 = vmatprep.subr.bf16.mxu0 %v7939_v3 }
 0xa2c   :  { %7752 = vmatpush3.bf16.msra.mxu0 %v9814_v34 }
 0xa2d   :  { %7753 = vmatprep.subr.bf16.mxu0 %v7939_v3 }
 0xa30   :  { %7755 = vmatpush3.bf16.msra.mxu0 %v9824_v62 }
 0xa31   :  { %7756 = vmatprep.subr.bf16.mxu0 %v7939_v3 }
 0xa34   :  { %7758 = vmatpush3.bf16.msra.mxu0 %v9836_v58 }
 0xa37   :  { %6821 = vmatmul.mubr.f32.vlgmr.msra.gmra.mrb[6].mxu0 %v9935_v61 }
 0xa38   :  { %7919 = shalt.err (!%p7916_p6)
}
 0xa39   :  { %s7920_s27 = scalar_lea.hbm %s10076_s19, 128 }
 0xa3a   :  { %p7921_p7 = scmp.ne.s32.totalorder %s10076_s19, %s7920_s27  ;;  %p7924_p8 = scmp.lt.u32.totalorder %s7920_s27, %s10076_s19 }
 0xa3c   :  { %p7926_p9 = pnand %p7924_p8, %p7921_p7 }
 0xa3e   :  { %7929 = shalt.err (!%p7926_p9)
}
 0xa3f   :  { %5367 = dma.vmem_to_hbm [thread:$0]  %s5365_s7, 128, %s10076_s19, [#allocation4]   ;;  %v5382_v11 = vld [vmem:[%s10074_s17] ss:$0 sm:$0xff]  ;;  %vm5354_vm2 = vcmask 15360  }
 0xb0a   :  { %v5349_v3 = vpop.f32.mrb[6].mxu0 }
 0xb0b   :  { %v7770_v30 = vadd.f32 %v5382_v11, %v5349_v3  ;;  %v6822_v41 = vpop.f32.mrb[7].mxu0 }
 0xb0d   :  { %7862 = vtanh.f32 %v7770_v30 }
 0xb17   :  { %v7863_v47 = vpop.eup %7862 }
 0xb18   :  { %5355 = vst.msk [vmem:[%s10075_s18] sm:$0xff] %vm5354_vm2, %v7863_v47 }
 0xb19   :  { %7934 = dma.done.wait [#allocation4], 128  }
 0xb1a   :  { %7935 = vsyncadd [#allocation4], 4294967168 }
 0xb1b   :  { %5373 = vsyncpa [#allocation3], 1 }
 0xb1c   :  { %5374 = vsyncpa [#allocation6], 1 }
 0xb1d   :  { %5375 = vsyncpa [#allocation4], 1 }

</bundles_post_ra>
